<compile_context>
chip_gen: v7x
topology: tpu7x:2x2x1
jax: 0.10.0
libtpu: 0.0.40
codegen_flags: <defaults>
</compile_context>

<pallas_src>
import jax
import jax.numpy as jnp
from jax.experimental import pallas as pl
from jax.experimental.pallas import tpu as pltpu

# ---- dims implied by the module's __init__ ----------------------------------
C1 = 1792          # efficientnet_b4 feature dim
C2 = 2048          # timm xception num_features
C3 = 512           # CLIP ViT-B/32 image feature dim
DR = 16
OUT_DIM = DR * DR  # 256
TOTAL_DIM = C1 + C2 + C3  # 4352


def _ensemble_kernel(f1_ref, f2_ref, f3_ref, w_ref, b_ref, o_ref):
    # f1_ref: (TB, HW1, C1) f32   f2_ref: (TB, HW2, C2) f32   f3_ref: (TB, C3) f32
    # w_ref:  (TOTAL_DIM, OUT_DIM) bf16  (pre-transposed, MXU-native (K, N))
    # b_ref:  (1, OUT_DIM) f32           o_ref: (TB, OUT_DIM) f32

    # AdaptiveAvgPool2d(1): mean over the spatial (sublane) axis. Inputs are f32,
    # so the reduction accumulates natively in f32 with no full-block temporary,
    # and the (TB, C) results land lane-major, ready for the MXU.
    p1 = jnp.mean(f1_ref[...], axis=1)                          # (TB, C1) f32
    p2 = jnp.mean(f2_ref[...], axis=1)                          # (TB, C2) f32

    # proj(cat([p1, p2, f3])) as three partial matmuls into one f32 accumulator:
    # avoids the (TB, 4352) concat temporary; bf16 operands, f32 accumulation.
    acc = jnp.dot(p1.astype(jnp.bfloat16), w_ref[:C1, :],
                  preferred_element_type=jnp.float32)           # (TB, OUT)
    acc += jnp.dot(p2.astype(jnp.bfloat16), w_ref[C1:C1 + C2, :],
                   preferred_element_type=jnp.float32)
    acc += jnp.dot(f3_ref[...].astype(jnp.bfloat16), w_ref[C1 + C2:, :],
                   preferred_element_type=jnp.float32)
    o_ref[...] = (acc + b_ref[...]).astype(o_ref.dtype)


def prepare_proj_params(weight, bias):
    """One-time (model-load) prep of nn.Linear(TOTAL_DIM, 256) parameters:
    weight (OUT, TOTAL) -> MXU-native (TOTAL, OUT) bf16, bias -> (1, OUT) f32.
    Done once, NOT per forward call (no per-call weight cast/transpose traffic)."""
    w_t = jnp.asarray(weight, jnp.float32).T.astype(jnp.bfloat16)   # (TOTAL, OUT)
    b2d = jnp.asarray(bias, jnp.float32).reshape(1, OUT_DIM)
    return w_t, b2d


def _choose_batch_tile(B):
    # B <= 8: a single grid step (nothing worth splitting).  Larger B: keep >= 2
    # grid steps so both of v7x's TensorCores get work, 8-row sublane granularity,
    # capped at 16 so the double-buffered f32 (TB, 49, 2048) feature blocks stay
    # well inside v7x's 64 MiB VMEM (v5e/v6e's 128 MiB have even more headroom).
    if B <= 8:
        return B
    half = pl.cdiv(B, 2)
    return min(16, ((half + 7) // 8) * 8)


def spatial_ensemble_forward(f1_map_nhwc, f2_map_nhwc, f3, w_t, b2d):
    """f1_map_nhwc: (B, H1, W1, C1) efficientnet_b4 feature map, NHWC, f32
       f2_map_nhwc: (B, H2, W2, C2) xception feature map, NHWC, f32
       f3:          (B, C3)         CLIP image features, f32
       w_t, b2d:    outputs of prepare_proj_params (static, prepared once)

    NHWC is the natural layout for TPU/XLA conv backbones; if a backbone hands
    back NCHW, transpose it once upstream rather than paying a bad in-kernel layout.
    """
    B = f1_map_nhwc.shape[0]
    hw1 = f1_map_nhwc.shape[1] * f1_map_nhwc.shape[2]
    hw2 = f2_map_nhwc.shape[1] * f2_map_nhwc.shape[2]

    # Pure reshapes of contiguous NHWC (no transpose, no dtype cast, no extra HBM pass).
    f1 = f1_map_nhwc.reshape(B, hw1, C1)
    f2 = f2_map_nhwc.reshape(B, hw2, C2)

    TB = _choose_batch_tile(B)
    grid = (pl.cdiv(B, TB),)

    return pl.pallas_call(
        _ensemble_kernel,
        out_shape=jax.ShapeDtypeStruct((B, OUT_DIM), jnp.float32),
        grid=grid,
        in_specs=[
            pl.BlockSpec((TB, hw1, C1), lambda i: (i, 0, 0)),
            pl.BlockSpec((TB, hw2, C2), lambda i: (i, 0, 0)),
            pl.BlockSpec((TB, C3), lambda i: (i, 0)),
            # Grid-invariant operands: fetched once, single-buffered.
            pl.BlockSpec((TOTAL_DIM, OUT_DIM), lambda i: (0, 0),
                         pipeline_mode=pl.Buffered(1)),
            pl.BlockSpec((1, OUT_DIM), lambda i: (0, 0),
                         pipeline_mode=pl.Buffered(1)),
        ],
        out_specs=pl.BlockSpec((TB, OUT_DIM), lambda i: (i, 0)),
        compiler_params=pltpu.CompilerParams(
            dimension_semantics=("parallel",),
            # Peak ~31 MiB at TB=16 (double-buffered f32 feature blocks + bf16
            # weight); 48 MiB keeps >=16 MiB headroom under v7x's 64 MiB physical
            # VMEM and is comfortably inside v5e/v6e's 128 MiB.
            vmem_limit_bytes=48 << 20,
        ),
    )(f1, f2, f3, w_t, b2d)


def _reference(f1_map_nhwc, f2_map_nhwc, f3, weight, bias):
    p1 = jnp.mean(f1_map_nhwc, axis=(1, 2))        # (B, C1)  AdaptiveAvgPool2d(1)
    p2 = jnp.mean(f2_map_nhwc, axis=(1, 2))        # (B, C2)
    feats = jnp.concatenate([p1, p2, f3], axis=1)  # (B, TOTAL_DIM)
    return feats @ weight.T + bias                 # nn.Linear


if __name__ == "__main__":
    key = jax.random.PRNGKey(0)
    k1, k2, k3, kw, kb = jax.random.split(key, 5)

    B, H, W = 2, 7, 7  # 224x224 input -> 7x7 backbone feature maps

    # Synthetic backbone outputs (stand-ins for efficientnet/xception/clip),
    # emitted in NHWC as a TPU/XLA conv stack would produce.
    f1_map = jax.random.normal(k1, (B, H, W, C1), dtype=jnp.float32)
    f2_map = jax.random.normal(k2, (B, H, W, C2), dtype=jnp.float32)
    f3 = jax.random.normal(k3, (B, C3), dtype=jnp.float32)

    # Deterministic init of self.proj = nn.Linear(TOTAL_DIM, 256).
    bound = 1.0 / (TOTAL_DIM ** 0.5)
    proj_w = jax.random.uniform(kw, (OUT_DIM, TOTAL_DIM), jnp.float32,
                                minval=-bound, maxval=bound)
    proj_b = jax.random.uniform(kb, (OUT_DIM,), jnp.float32,
                                minval=-bound, maxval=bound)

    # One-time model-load prep (pre-transposed bf16 weight, 2-D f32 bias).
    w_t, b2d = prepare_proj_params(proj_w, proj_b)

    out = spatial_ensemble_forward(f1_map, f2_map, f3, w_t, b2d)
    out = jax.block_until_ready(out)

    ref = _reference(f1_map, f2_map, f3, proj_w, proj_b)
    assert out.shape == (B, OUT_DIM)
    # bf16 weight with f32 accumulation: compare at a bf16-appropriate tolerance.
    assert jnp.allclose(out, ref, atol=2e-2, rtol=2e-2), "mismatch vs reference"

    print("KERNEL_OK")
</pallas_src>

<mosaic_0001>
module attributes {stable_mosaic.version = 11 : i64} {
  func.func @_ensemble_kernel(%arg0: i32, %arg1: memref<2x49x1792xf32, #tpu.memory_space<vmem>>, %arg2: memref<2x49x2048xf32, #tpu.memory_space<vmem>>, %arg3: memref<2x512xf32, #tpu.memory_space<vmem>>, %arg4: memref<4352x256xbf16, #tpu.memory_space<vmem>>, %arg5: memref<1x256xf32, #tpu.memory_space<vmem>>, %arg6: memref<2x256xf32, #tpu.memory_space<vmem>>) attributes {dimension_semantics = [#tpu.dimension_semantics<parallel>], iteration_bounds = array<i64: 1>, scalar_prefetch = 0 : i64, scratch_operands = 0 : i64, tpu.core_type = #tpu.core_type<tc>, window_params = [{transform_indices = @transform_0, window_bounds = array<i64: 2, 49, 1792>}, {transform_indices = @transform_1, window_bounds = array<i64: 2, 49, 2048>}, {transform_indices = @transform_2, window_bounds = array<i64: 2, 512>}, {pipeline_mode = #tpu.pipeline_mode<synchronous>, transform_indices = @transform_3, window_bounds = array<i64: 4352, 256>}, {pipeline_mode = #tpu.pipeline_mode<synchronous>, transform_indices = @transform_4, window_bounds = array<i64: 1, 256>}, {transform_indices = @transform_5, window_bounds = array<i64: 2, 256>}]} {
    %c0 = arith.constant 0 : index
    %c0_0 = arith.constant 0 : index
    %c0_1 = arith.constant 0 : index
    %0 = vector.load %arg1[%c0, %c0_0, %c0_1] : memref<2x49x1792xf32, #tpu.memory_space<vmem>>, vector<2x49x1792xf32>
    %cst = arith.constant dense<0.000000e+00> : vector<2x1792xf32>
    %1 = vector.multi_reduction <add>, %0, %cst [1] : vector<2x49x1792xf32> to vector<2x1792xf32>
    %cst_2 = arith.constant 4.900000e+01 : f32
    %2 = vector.broadcast %cst_2 : f32 to vector<2x1792xf32>
    %3 = arith.divf %1, %2 : vector<2x1792xf32>
    %c0_3 = arith.constant 0 : index
    %c0_4 = arith.constant 0 : index
    %c0_5 = arith.constant 0 : index
    %4 = vector.load %arg2[%c0_3, %c0_4, %c0_5] : memref<2x49x2048xf32, #tpu.memory_space<vmem>>, vector<2x49x2048xf32>
    %cst_6 = arith.constant dense<0.000000e+00> : vector<2x2048xf32>
    %5 = vector.multi_reduction <add>, %4, %cst_6 [1] : vector<2x49x2048xf32> to vector<2x2048xf32>
    %cst_7 = arith.constant 4.900000e+01 : f32
    %6 = vector.broadcast %cst_7 : f32 to vector<2x2048xf32>
    %7 = arith.divf %5, %6 : vector<2x2048xf32>
    %8 = arith.truncf %3 : vector<2x1792xf32> to vector<2x1792xbf16>
    %c0_8 = arith.constant 0 : index
    %c0_9 = arith.constant 0 : index
    %9 = vector.load %arg4[%c0_8, %c0_9] : memref<4352x256xbf16, #tpu.memory_space<vmem>>, vector<1792x256xbf16>
    %cst_10 = arith.constant dense<0.000000e+00> : vector<2x256xf32>
    %10 = tpu.matmul %8, %9, %cst_10 {dimension_numbers = #tpu.dot_dimension_numbers<[1], [0], [0], [1], [0, 0, 1, 1], [], []>} : vector<2x1792xbf16>, vector<1792x256xbf16>, vector<2x256xf32> -> vector<2x256xf32>
    %11 = arith.truncf %7 : vector<2x2048xf32> to vector<2x2048xbf16>
    %c1792 = arith.constant 1792 : index
    %c0_11 = arith.constant 0 : index
    %12 = vector.load %arg4[%c1792, %c0_11] : memref<4352x256xbf16, #tpu.memory_space<vmem>>, vector<2048x256xbf16>
    %cst_12 = arith.constant dense<0.000000e+00> : vector<2x256xf32>
    %13 = tpu.matmul %11, %12, %cst_12 {dimension_numbers = #tpu.dot_dimension_numbers<[1], [0], [0], [1], [0, 0, 1, 1], [], []>} : vector<2x2048xbf16>, vector<2048x256xbf16>, vector<2x256xf32> -> vector<2x256xf32>
    %14 = arith.addf %10, %13 : vector<2x256xf32>
    %c0_13 = arith.constant 0 : index
    %c0_14 = arith.constant 0 : index
    %15 = vector.load %arg3[%c0_13, %c0_14] : memref<2x512xf32, #tpu.memory_space<vmem>>, vector<2x512xf32>
    %16 = arith.truncf %15 : vector<2x512xf32> to vector<2x512xbf16>
    %c3840 = arith.constant 3840 : index
    %c0_15 = arith.constant 0 : index
    %17 = vector.load %arg4[%c3840, %c0_15] : memref<4352x256xbf16, #tpu.memory_space<vmem>>, vector<512x256xbf16>
    %cst_16 = arith.constant dense<0.000000e+00> : vector<2x256xf32>
    %18 = tpu.matmul %16, %17, %cst_16 {dimension_numbers = #tpu.dot_dimension_numbers<[1], [0], [0], [1], [0, 0, 1, 1], [], []>} : vector<2x512xbf16>, vector<512x256xbf16>, vector<2x256xf32> -> vector<2x256xf32>
    %19 = arith.addf %14, %18 : vector<2x256xf32>
    %c0_17 = arith.constant 0 : index
    %c0_18 = arith.constant 0 : index
    %20 = vector.load %arg5[%c0_17, %c0_18] : memref<1x256xf32, #tpu.memory_space<vmem>>, vector<1x256xf32>
    %21 = vector.broadcast %20 : vector<1x256xf32> to vector<2x256xf32>
    %22 = arith.addf %19, %21 : vector<2x256xf32>
    %c0_19 = arith.constant 0 : index
    %c0_20 = arith.constant 0 : index
    %23 = vector.load %arg6[%c0_19, %c0_20] : memref<2x256xf32, #tpu.memory_space<vmem>>, vector<2x256xf32>
    tpu.vector_store %arg6[%c0_19, %c0_20], %22 {strides = array<i32>} : memref<2x256xf32, #tpu.memory_space<vmem>>, vector<2x256xf32>,
    return
  }
  func.func @transform_0(%arg0: i32) -> (i32, i32, i32) {
    %c0_i32 = arith.constant 0 : i32
    %c0_i32_0 = arith.constant 0 : i32
    %c0_i32_1 = arith.constant 0 : i32
    return %arg0, %c0_i32, %c0_i32_0 : i32, i32, i32
  }
  func.func @transform_1(%arg0: i32) -> (i32, i32, i32) {
    %c0_i32 = arith.constant 0 : i32
    %c0_i32_0 = arith.constant 0 : i32
    %c0_i32_1 = arith.constant 0 : i32
    return %arg0, %c0_i32, %c0_i32_0 : i32, i32, i32
  }
  func.func @transform_2(%arg0: i32) -> (i32, i32) {
    %c0_i32 = arith.constant 0 : i32
    %c0_i32_0 = arith.constant 0 : i32
    return %arg0, %c0_i32 : i32, i32
  }
  func.func @transform_3(%arg0: i32) -> (i32, i32) {
    %c0_i32 = arith.constant 0 : i32
    %c0_i32_0 = arith.constant 0 : i32
    %c0_i32_1 = arith.constant 0 : i32
    return %c0_i32, %c0_i32_0 : i32, i32
  }
  func.func @transform_4(%arg0: i32) -> (i32, i32) {
    %c0_i32 = arith.constant 0 : i32
    %c0_i32_0 = arith.constant 0 : i32
    %c0_i32_1 = arith.constant 0 : i32
    return %c0_i32, %c0_i32_0 : i32, i32
  }
  func.func @transform_5(%arg0: i32) -> (i32, i32) {
    %c0_i32 = arith.constant 0 : i32
    %c0_i32_0 = arith.constant 0 : i32
    return %arg0, %c0_i32 : i32, i32
  }
}

</mosaic_0001>

<bundles_post_ra>
// kernel: tpu_custom_call.1
= control target key start
LH: loop header
LB: loop body
LE: loop exit
PB: predicated region body
PF: predicated region fallthrough
CT: control target
= control target key end

     0   :  { %vm222_vm0 = vcmask 1040384   ;;  %vm1887_vm1 = vcmask 1041409   ;;  %s10081_s0 = inlined_call_operand.vmem [shape: f32[2,49,1792], index: 0, kind: input, shape index: {}]   ;;  %s10082_s1 = inlined_call_operand.vmem [shape: f32[2,49,2048], index: 1, kind: input, shape index: {}]   ;;  %s10083_s2 = inlined_call_operand.vmem [shape: f32[2,512], index: 2, kind: input, shape index: {}]   ;;  %s10084_s3 = inlined_call_operand.vmem [shape: bf16[4352,256], index: 3, kind: input, shape index: {}]   ;;  %s10085_s4 = inlined_call_operand.vmem [shape: f32[1,256], index: 4, kind: input, shape index: {}]   ;;  %s10086_s5 = inlined_call_operand.hbm [shape: f32[2,256], index: 5, kind: output, shape index: {}]  }
   0x1   :  { %v6131_v0 = vld [vmem:[%s10084_s3 + $0x704] ss:$8 sps:$4 sm:$0xff]   ;;  %v6135_v2 = vld [vmem:[%s10084_s3 + $0x700] ss:$8 sps:$4 sm:$0xff]   ;;  %v6137_v4 = vld [vmem:[%s10084_s3 + $0x714] ss:$8 sps:$4 sm:$0xff]  }
   0x2   :  { %v6133_v1 = vld [vmem:[%s10084_s3 + $0x804] ss:$8 sps:$4 sm:$0xff]   ;;  %3216 = vmatprep.subr.bf16.mxu0 %v6131_v0  ;;  %v6136_v3 = vld [vmem:[%s10084_s3 + $0x800] ss:$8 sps:$4 sm:$0xff]   ;;  %v6139_v5 = vld [vmem:[%s10084_s3 + $0x814] ss:$8 sps:$4 sm:$0xff]  }
   0x3   :  { %3257 = vmatprep.subr.bf16.mxu1 %v6133_v1  ;;  %3217 = vmatpush1.bf16.msra.mxu0 %v6135_v2  ;;  %v6141_v6 = vld [vmem:[%s10084_s3 + $0x710] ss:$8 sps:$4 sm:$0xff]   ;;  %v6143_v8 = vld [vmem:[%s10084_s3 + $0x724] ss:$8 sps:$4 sm:$0xff]   ;;  %v6147_v10 = vld [vmem:[%s10084_s3 + $0x720] ss:$8 sps:$4 sm:$0xff]  }
   0x4   :  { %3258 = vmatpush1.bf16.msra.mxu1 %v6136_v3  ;;  %3218 = vmatprep.subr.bf16.mxu0 %v6137_v4  ;;  %v6142_v7 = vld [vmem:[%s10084_s3 + $0x810] ss:$8 sps:$4 sm:$0xff]   ;;  %v6145_v9 = vld [vmem:[%s10084_s3 + $0x824] ss:$8 sps:$4 sm:$0xff]   ;;  %v6148_v11 = vld [vmem:[%s10084_s3 + $0x820] ss:$8 sps:$4 sm:$0xff]  }
   0x5   :  { %3259 = vmatprep.subr.bf16.mxu1 %v6139_v5  ;;  %v6149_v12 = vld [vmem:[%s10084_s3 + $0x734] ss:$8 sps:$4 sm:$0xff]   ;;  %v6153_v14 = vld [vmem:[%s10084_s3 + $0x730] ss:$8 sps:$4 sm:$0xff]   ;;  %v6155_v16 = vld [vmem:[%s10084_s3 + $0x744] ss:$8 sps:$4 sm:$0xff]  }
   0x6   :  { %v6151_v13 = vld [vmem:[%s10084_s3 + $0x834] ss:$8 sps:$4 sm:$0xff]   ;;  %v6154_v15 = vld [vmem:[%s10084_s3 + $0x830] ss:$8 sps:$4 sm:$0xff]   ;;  %v6157_v17 = vld [vmem:[%s10084_s3 + $0x844] ss:$8 sps:$4 sm:$0xff]  }
   0x7   :  { %3219 = vmatpush1.bf16.msra.mxu0 %v6141_v6  ;;  %v6159_v18 = vld [vmem:[%s10084_s3 + $0x740] ss:$8 sps:$4 sm:$0xff]   ;;  %v6161_v20 = vld [vmem:[%s10084_s3 + $0x754] ss:$8 sps:$4 sm:$0xff]   ;;  %v6165_v22 = vld [vmem:[%s10084_s3 + $0x750] ss:$8 sps:$4 sm:$0xff]  }
   0x8   :  { %3260 = vmatpush1.bf16.msra.mxu1 %v6142_v7  ;;  %3220 = vmatprep.subr.bf16.mxu0 %v6143_v8  ;;  %v6160_v19 = vld [vmem:[%s10084_s3 + $0x840] ss:$8 sps:$4 sm:$0xff]   ;;  %v6163_v21 = vld [vmem:[%s10084_s3 + $0x854] ss:$8 sps:$4 sm:$0xff]   ;;  %v6166_v23 = vld [vmem:[%s10084_s3 + $0x850] ss:$8 sps:$4 sm:$0xff]  }
   0x9   :  { %3261 = vmatprep.subr.bf16.mxu1 %v6145_v9  ;;  %v6167_v24 = vld [vmem:[%s10084_s3 + $0x764] ss:$8 sps:$4 sm:$0xff]   ;;  %v6171_v26 = vld [vmem:[%s10084_s3 + $0x760] ss:$8 sps:$4 sm:$0xff]   ;;  %v6173_v28 = vld [vmem:[%s10084_s3 + $0x774] ss:$8 sps:$4 sm:$0xff]  }
   0xa   :  { %v6169_v25 = vld [vmem:[%s10084_s3 + $0x864] ss:$8 sps:$4 sm:$0xff]   ;;  %v6172_v27 = vld [vmem:[%s10084_s3 + $0x860] ss:$8 sps:$4 sm:$0xff]   ;;  %v6175_v29 = vld [vmem:[%s10084_s3 + $0x874] ss:$8 sps:$4 sm:$0xff]  }
   0xb   :  { %3221 = vmatpush1.bf16.msra.mxu0 %v6147_v10  ;;  %v6177_v30 = vld [vmem:[%s10084_s3 + $0x770] ss:$8 sps:$4 sm:$0xff]   ;;  %v6179_v32 = vld [vmem:[%s10084_s3 + $0x784] ss:$8 sps:$4 sm:$0xff]   ;;  %v6183_v34 = vld [vmem:[%s10084_s3 + $0x780] ss:$8 sps:$4 sm:$0xff]  }
   0xc   :  { %3262 = vmatpush1.bf16.msra.mxu1 %v6148_v11  ;;  %3222 = vmatprep.subr.bf16.mxu0 %v6149_v12  ;;  %v6178_v31 = vld [vmem:[%s10084_s3 + $0x870] ss:$8 sps:$4 sm:$0xff]   ;;  %v6181_v33 = vld [vmem:[%s10084_s3 + $0x884] ss:$8 sps:$4 sm:$0xff]   ;;  %v6184_v35 = vld [vmem:[%s10084_s3 + $0x880] ss:$8 sps:$4 sm:$0xff]  }
   0xd   :  { %3263 = vmatprep.subr.bf16.mxu1 %v6151_v13  ;;  %v6185_v36 = vld [vmem:[%s10084_s3 + $0x794] ss:$8 sps:$4 sm:$0xff]   ;;  %v6189_v38 = vld [vmem:[%s10084_s3 + $0x790] ss:$8 sps:$4 sm:$0xff]   ;;  %v6191_v40 = vld [vmem:[%s10084_s3 + $0x7a4] ss:$8 sps:$4 sm:$0xff]  }
   0xe   :  { %v6187_v37 = vld [vmem:[%s10084_s3 + $0x894] ss:$8 sps:$4 sm:$0xff]   ;;  %v6190_v39 = vld [vmem:[%s10084_s3 + $0x890] ss:$8 sps:$4 sm:$0xff]   ;;  %v6193_v41 = vld [vmem:[%s10084_s3 + $0x8a4] ss:$8 sps:$4 sm:$0xff]  }
   0xf   :  { %3223 = vmatpush1.bf16.msra.mxu0 %v6153_v14  ;;  %v6195_v42 = vld [vmem:[%s10084_s3 + $0x7a0] ss:$8 sps:$4 sm:$0xff]   ;;  %v6197_v44 = vld [vmem:[%s10084_s3 + $0x7b4] ss:$8 sps:$4 sm:$0xff]   ;;  %v6201_v46 = vld [vmem:[%s10084_s3 + $0x7b0] ss:$8 sps:$4 sm:$0xff]  }
  0x10   :  { %3264 = vmatpush1.bf16.msra.mxu1 %v6154_v15  ;;  %3224 = vmatprep.subr.bf16.mxu0 %v6155_v16  ;;  %v6196_v43 = vld [vmem:[%s10084_s3 + $0x8a0] ss:$8 sps:$4 sm:$0xff]   ;;  %v6199_v45 = vld [vmem:[%s10084_s3 + $0x8b4] ss:$8 sps:$4 sm:$0xff]   ;;  %v6202_v48 = vld [vmem:[%s10084_s3 + $0x8b0] ss:$8 sps:$4 sm:$0xff]  }
  0x11   :  { %3265 = vmatprep.subr.bf16.mxu1 %v6157_v17  ;;  %v612_v47 = vld [vmem:[%s10082_s1 + $0x8] sm:$0xff]  ;;  %v6209_v63 = vld [vmem:[%s10084_s3 + $0x7d4] ss:$8 sps:$4 sm:$0xff]   ;;  %v6213_v15 = vld [vmem:[%s10084_s3 + $0x7d0] ss:$8 sps:$4 sm:$0xff]  }
  0x12   :  { %v628_v49 = vld [vmem:[%s10082_s1 + $0x88] sm:$0xff]  ;;  %v6211_v0 = vld [vmem:[%s10084_s3 + $0x8d4] ss:$8 sps:$4 sm:$0xff]   ;;  %v6214_v16 = vld [vmem:[%s10084_s3 + $0x8d0] ss:$8 sps:$4 sm:$0xff]  }
  0x13   :  { %3225 = vmatpush1.bf16.msra.mxu0 %v6159_v18  ;;  %v644_v50 = vld [vmem:[%s10082_s1 + $0x108] sm:$0xff]  ;;  %v848_v54 = vadd.f32 %v628_v49, %v612_v47  ;;  %v614_v3 = vld [vmem:[%s10082_s1 + $0x18] sm:$0xff]  ;;  %v707_v47 = vld [vmem:[%s10082_s1 + $0x300] sm:$0x1] }
  0x14   :  { %3266 = vmatpush1.bf16.msra.mxu1 %v6160_v19  ;;  %3226 = vmatprep.subr.bf16.mxu0 %v6161_v20  ;;  %v6203_v51 = vld [vmem:[%s10084_s3 + $0x7c4] ss:$8 sps:$4 sm:$0xff]   ;;  %v6207_v58 = vld [vmem:[%s10084_s3 + $0x7c0] ss:$8 sps:$4 sm:$0xff]   ;;  %v630_v4 = vld [vmem:[%s10082_s1 + $0x98] sm:$0xff] }
  0x15   :  { %3267 = vmatprep.subr.bf16.mxu1 %v6163_v21  ;;  %v6205_v52 = vld [vmem:[%s10084_s3 + $0x8c4] ss:$8 sps:$4 sm:$0xff]   ;;  %v6208_v59 = vld [vmem:[%s10084_s3 + $0x8c0] ss:$8 sps:$4 sm:$0xff]   ;;  %v849_v61 = vadd.f32 %v848_v54, %v644_v50  ;;  %v646_v9 = vld [vmem:[%s10082_s1 + $0x118] sm:$0xff]  ;;  %v874_v10 = vadd.f32 %v630_v4, %v614_v3  ;;  %v840_v4 = vsel %vm222_vm0, %v707_v47, 0.0 }
  0x16   :  { %v660_v53 = vld [vmem:[%s10082_s1 + $0x188] sm:$0xff]  ;;  %v662_v13 = vld [vmem:[%s10082_s1 + $0x198] sm:$0xff]  ;;  %v739_v49 = vld [vmem:[%s10082_s1 + $0x400] sm:$0xff] }
  0x17   :  { %3227 = vmatpush1.bf16.msra.mxu0 %v6165_v22  ;;  %v724_v55 = vld [vmem:[%s10082_s1 + $0x388] sm:$0xff]  ;;  %v850_v7 = vadd.f32 %v849_v61, %v660_v53  ;;  %v726_v14 = vld [vmem:[%s10082_s1 + $0x398] sm:$0xff]  ;;  %v875_v22 = vadd.f32 %v874_v10, %v646_v9  ;;  %v675_v54 = vld [vmem:[%s10082_s1 + $0x200] sm:$0xff] }
  0x18   :  { %3268 = vmatpush1.bf16.msra.mxu1 %v6166_v23  ;;  %3228 = vmatprep.subr.bf16.mxu0 %v6167_v24  ;;  %v740_v56 = vld [vmem:[%s10082_s1 + $0x408] sm:$0xff]  ;;  %v678_v19 = vld [vmem:[%s10082_s1 + $0x218] sm:$0xff] }
  0x19   :  { %3269 = vmatprep.subr.bf16.mxu1 %v6169_v25  ;;  %v756_v57 = vld [vmem:[%s10082_s1 + $0x488] sm:$0xff]  ;;  %v1056_v62 = vadd.f32 %v740_v56, %v724_v55  ;;  %v742_v20 = vld [vmem:[%s10082_s1 + $0x418] sm:$0xff]  ;;  %v755_v55 = vld [vmem:[%s10082_s1 + $0x480] sm:$0xff] }
  0x1a   :  { %v676_v60 = vld [vmem:[%s10082_s1 + $0x208] sm:$0xff]  ;;  %v758_v21 = vld [vmem:[%s10082_s1 + $0x498] sm:$0xff] }
  0x1b   :  { %3229 = vmatpush1.bf16.msra.mxu0 %v6171_v26  ;;  %v692_v1 = vld [vmem:[%s10082_s1 + $0x288] sm:$0xff]  ;;  %v1057_v8 = vadd.f32 %v1056_v62, %v756_v57  ;;  %v851_v17 = vadd.f32 %v850_v7, %v676_v60  ;;  %v694_v26 = vld [vmem:[%s10082_s1 + $0x298] sm:$0xff]  ;;  %v771_v62 = vld [vmem:[%s10082_s1 + $0x500] sm:$0xff] }
  0x1c   :  { %3270 = vmatpush1.bf16.msra.mxu1 %v6172_v27  ;;  %3230 = vmatprep.subr.bf16.mxu0 %v6173_v28  ;;  %v772_v2 = vld [vmem:[%s10082_s1 + $0x508] sm:$0xff]  ;;  %v710_v27 = vld [vmem:[%s10082_s1 + $0x318] sm:$0x1]  ;;  %v6221_v50 = vld [vmem:[%s10084_s3 + $0x7f4] ss:$8 sps:$4 sm:$0xff]  }
  0x1d   :  { %3271 = vmatprep.subr.bf16.mxu1 %v6175_v29  ;;  %v708_v5 = vld [vmem:[%s10082_s1 + $0x308] sm:$0x1]  ;;  %v1058_v18 = vadd.f32 %v1057_v8, %v772_v2  ;;  %v6215_v23 = vld [vmem:[%s10084_s3 + $0x7e4] ss:$8 sps:$4 sm:$0xff]   ;;  %v774_v28 = vld [vmem:[%s10082_s1 + $0x518] sm:$0xff]  ;;  %v1082_v29 = vadd.f32 %v742_v20, %v726_v14 }
  0x1e   :  { %v788_v6 = vld [vmem:[%s10082_s1 + $0x588] sm:$0xff]  ;;  %v853_v25 = vsel %vm222_vm0, %v708_v5, 0.0  ;;  %v645_v7 = vld [vmem:[%s10082_s1 + $0x110] sm:$0xff] }
  0x1f   :  { %3231 = vmatpush1.bf16.msra.mxu0 %v6177_v30  ;;  %v804_v11 = vld [vmem:[%s10082_s1 + $0x608] sm:$0xff]  ;;  %v852_v30 = vadd.f32 %v851_v17, %v692_v1  ;;  %v6223_v1 = vld [vmem:[%s10084_s3 + $0x8f4] ss:$8 sps:$4 sm:$0xff]  }
  0x20   :  { %3272 = vmatpush1.bf16.msra.mxu1 %v6178_v31  ;;  %3232 = vmatprep.subr.bf16.mxu0 %v6179_v32  ;;  %v820_v12 = vld [vmem:[%s10082_s1 + $0x688] sm:$0x1]  ;;  %v6217_v24 = vld [vmem:[%s10084_s3 + $0x8e4] ss:$8 sps:$4 sm:$0xff]   ;;  %v1059_v31 = vadd.f32 %v1058_v18, %v788_v6  ;;  %v876_v32 = vadd.f32 %v875_v22, %v662_v13  ;;  %v629_v6 = vld [vmem:[%s10082_s1 + $0x90] sm:$0xff] }
  0x21   :  { %3273 = vmatprep.subr.bf16.mxu1 %v6181_v33  ;;  %v611_v33 = vld [vmem:[%s10082_s1] sm:$0xff]  ;;  %v709_v13 = vld [vmem:[%s10082_s1 + $0x310] sm:$0x1] }
  0x23   :  { %3233 = vmatpush1.bf16.msra.mxu0 %v6183_v34  ;;  %v627_v34 = vld [vmem:[%s10082_s1 + $0x80] sm:$0xff] }
  0x24   :  { %3274 = vmatpush1.bf16.msra.mxu1 %v6184_v35  ;;  %3234 = vmatprep.subr.bf16.mxu0 %v6185_v36  ;;  %v643_v35 = vld [vmem:[%s10082_s1 + $0x100] sm:$0xff]  ;;  %v1061_v36 = vsel %vm222_vm0, %v820_v12, 0.0 }
  0x25   :  { %3275 = vmatprep.subr.bf16.mxu1 %v6187_v37  ;;  %v790_v37 = vld [vmem:[%s10082_s1 + $0x598] sm:$0xff]  ;;  %v787_v12 = vld [vmem:[%s10082_s1 + $0x580] sm:$0xff] }
  0x27   :  { %3235 = vmatpush1.bf16.msra.mxu0 %v6189_v38  ;;  %v822_v38 = vld [vmem:[%s10082_s1 + $0x698] sm:$0x1] }
  0x28   :  { %3276 = vmatpush1.bf16.msra.mxu1 %v6190_v39  ;;  %3236 = vmatprep.subr.bf16.mxu0 %v6191_v40  ;;  %v1083_v39 = vadd.f32 %v1082_v29, %v758_v21  ;;  %v659_v40 = vld [vmem:[%s10082_s1 + $0x180] sm:$0xff]  ;;  %v1087_v61 = vsel %vm222_vm0, %v822_v38, 0.0  ;;  %v661_v21 = vld [vmem:[%s10082_s1 + $0x190] sm:$0xff] }
  0x29   :  { %3277 = vmatprep.subr.bf16.mxu1 %v6193_v41  ;;  %v835_v41 = vadd.f32 %v627_v34, %v611_v33  ;;  %v866_v33 = vsel %vm222_vm0, %v709_v13, 0.0 }
  0x2a   :  { %v1084_v53 = vadd.f32 %v1083_v39, %v774_v28  ;;  %v6229_v39 = vld [vmem:[%s10084_s3 + $0x904] ss:$8 sps:$4 sm:$0xff]  }
  0x2b   :  { %3237 = vmatpush1.bf16.msra.mxu0 %v6195_v42  ;;  %v6219_v42 = vld [vmem:[%s10084_s3 + $0x7e0] ss:$8 sps:$4 sm:$0xff]   ;;  %v836_v56 = vadd.f32 %v835_v41, %v643_v35 }
  0x2c   :  { %3278 = vmatpush1.bf16.msra.mxu1 %v6196_v43  ;;  %3238 = vmatprep.subr.bf16.mxu0 %v6197_v44  ;;  %v6220_v43 = vld [vmem:[%s10084_s3 + $0x8e0] ss:$8 sps:$4 sm:$0xff]   ;;  %v854_v44 = vadd.f32 %v853_v25, %v852_v30  ;;  %v1085_v2 = vadd.f32 %v1084_v53, %v790_v37  ;;  %v757_v37 = vld [vmem:[%s10082_s1 + $0x490] sm:$0xff] }
  0x2d   :  { %3279 = vmatprep.subr.bf16.mxu1 %v6199_v45  ;;  %v1060_v45 = vadd.f32 %v1059_v31, %v804_v11  ;;  %v837_v3 = vadd.f32 %v836_v56, %v659_v40  ;;  %v691_v11 = vld [vmem:[%s10082_s1 + $0x280] sm:$0xff] }
  0x2e   :  { %v803_v25 = vld [vmem:[%s10082_s1 + $0x600] sm:$0xff] }
  0x2f   :  { %3239 = vmatpush1.bf16.msra.mxu0 %v6201_v46  ;;  %v877_v46 = vadd.f32 %v876_v32, %v678_v19  ;;  %v838_v18 = vadd.f32 %v837_v3, %v675_v54  ;;  %v677_v32 = vld [vmem:[%s10082_s1 + $0x210] sm:$0xff] }
  0x30   :  { %3280 = vmatpush1.bf16.msra.mxu1 %v6202_v48  ;;  %3240 = vmatprep.subr.bf16.mxu0 %v6203_v51  ;;  %v723_v48 = vld [vmem:[%s10082_s1 + $0x380] sm:$0xff]  ;;  %v806_v51 = vld [vmem:[%s10082_s1 + $0x618] sm:$0xff]  ;;  %v805_v3 = vld [vmem:[%s10082_s1 + $0x610] sm:$0xff] }
  0x31   :  { %3281 = vmatprep.subr.bf16.mxu1 %v6205_v52  ;;  %v879_v52 = vsel %vm222_vm0, %v710_v27, 0.0  ;;  %v1043_v57 = vadd.f32 %v739_v49, %v723_v48  ;;  %v878_v60 = vadd.f32 %v877_v46, %v694_v26  ;;  %v1086_v17 = vadd.f32 %v1085_v2, %v806_v51  ;;  %v725_v26 = vld [vmem:[%s10082_s1 + $0x390] sm:$0xff] }
  0x32   :  { %v741_v27 = vld [vmem:[%s10082_s1 + $0x410] sm:$0xff]  ;;  %v839_v30 = vadd.f32 %v838_v18, %v691_v11 }
  0x33   :  { %3241 = vmatpush1.bf16.msra.mxu0 %v6207_v58  ;;  %v855_v58 = vrot.slane %v854_v44, 4  ;;  %v1044_v5 = vadd.f32 %v1043_v57, %v755_v55  ;;  %v880_v10 = vadd.f32 %v879_v52, %v878_v60  ;;  %v1088_v29 = vadd.f32 %v1087_v61, %v1086_v17  ;;  %v773_v49 = vld [vmem:[%s10082_s1 + $0x510] sm:$0xff] }
  0x34   :  { %3282 = vmatpush1.bf16.msra.mxu1 %v6208_v59  ;;  %3242 = vmatprep.subr.bf16.mxu0 %v6209_v63  ;;  %v1062_v59 = vadd.f32 %v1061_v36, %v1060_v45  ;;  %v819_v63 = vld [vmem:[%s10082_s1 + $0x680] sm:$0x1]  ;;  %v841_v41 = vadd.f32 %v840_v4, %v839_v30  ;;  %v6232_v45 = vld [vmem:[%s10084_s3 + $0xa04] ss:$8 sps:$4 sm:$0xff]  }
  0x35   :  { %3283 = vmatprep.subr.bf16.mxu1 %v6211_v0  ;;  %v613_v0 = vld [vmem:[%s10082_s1 + $0x10] sm:$0xff]  ;;  %v856_v8 = vadd.f32 %v855_v58, %v854_v44  ;;  %v1045_v19 = vadd.f32 %v1044_v5, %v771_v62  ;;  %v1048_v20 = vsel %vm222_vm0, %v819_v63, 0.0  ;;  %v1089_v40 = vrot.slane %v1088_v29, 4 }
  0x36   :  { %v1063_v9 = vrot.slane %v1062_v59, 4  ;;  %v861_v14 = vadd.f32 %v629_v6, %v613_v0  ;;  %v1069_v44 = vadd.f32 %v741_v27, %v725_v26  ;;  %v842_v52 = vrot.slane %v841_v41, 4  ;;  %v789_v58 = vld [vmem:[%s10082_s1 + $0x590] sm:$0xff] }
  0x37   :  { %3243 = vmatpush1.bf16.msra.mxu0 %v6213_v15  ;;  %v6225_v15 = vld [vmem:[%s10084_s3 + $0x7f0] ss:$8 sps:$4 sm:$0xff]   ;;  %v857_v22 = vrot.slane %v856_v8, 2  ;;  %v1046_v31 = vadd.f32 %v1045_v19, %v787_v12  ;;  %v1090_v51 = vadd.f32 %v1089_v40, %v1088_v29 }
  0x38   :  { %3284 = vmatpush1.bf16.msra.mxu1 %v6214_v16  ;;  %3244 = vmatprep.subr.bf16.mxu0 %v6215_v23  ;;  %v6226_v16 = vld [vmem:[%s10084_s3 + $0x8f0] ss:$8 sps:$4 sm:$0xff]   ;;  %v1064_v23 = vadd.f32 %v1063_v9, %v1062_v59  ;;  %v862_v28 = vadd.f32 %v861_v14, %v645_v7  ;;  %v1070_v54 = vadd.f32 %v1069_v44, %v757_v37 }
  0x39   :  { %3285 = vmatprep.subr.bf16.mxu1 %v6217_v24  ;;  %v881_v24 = vrot.slane %v880_v10, 4  ;;  %v858_v34 = vadd.f32 %v857_v22, %v856_v8  ;;  %v1091_v60 = vrot.slane %v1090_v51, 2  ;;  %v843_v61 = vadd.f32 %v842_v52, %v841_v41  ;;  %v821_v12 = vld [vmem:[%s10082_s1 + $0x690] sm:$0x1] }
  0x3a   :  { %v1065_v35 = vrot.slane %v1064_v23, 2  ;;  %v863_v38 = vadd.f32 %v862_v28, %v661_v21  ;;  %v1071_v63 = vadd.f32 %v1070_v54, %v773_v49 }
  0x3b   :  { %3245 = vmatpush1.bf16.msra.mxu0 %v6219_v42  ;;  %v882_v36 = vadd.f32 %v881_v24, %v880_v10  ;;  %v1047_v42 = vadd.f32 %v1046_v31, %v803_v25  ;;  %v859_v46 = vrot.slane %v858_v34, 1  ;;  %v1092_v5 = vadd.f32 %v1091_v60, %v1090_v51 }
  0x3c   :  { %3286 = vmatpush1.bf16.msra.mxu1 %v6220_v43  ;;  %3246 = vmatprep.subr.bf16.mxu0 %v6221_v50  ;;  %v693_v43 = vld [vmem:[%s10082_s1 + $0x290] sm:$0xff]  ;;  %v1066_v47 = vadd.f32 %v1065_v35, %v1064_v23  ;;  %v864_v50 = vadd.f32 %v863_v38, %v677_v32  ;;  %v844_v6 = vrot.slane %v843_v61, 2  ;;  %v1072_v8 = vadd.f32 %v1071_v63, %v789_v58 }
  0x3d   :  { %3287 = vmatprep.subr.bf16.mxu1 %v6223_v1  ;;  %v883_v48 = vrot.slane %v882_v36, 2  ;;  %v1049_v53 = vadd.f32 %v1048_v20, %v1047_v42  ;;  %v860_v55 = vadd.f32 %v859_v46, %v858_v34  ;;  %v1093_v14 = vrot.slane %v1092_v5, 1  ;;  %v6233_v63 = vld [vmem:[%s10084_s3 + $0x910] ss:$8 sps:$4 sm:$0xff]  }
  0x3e   :  { %v1067_v56 = vrot.slane %v1066_v47, 1  ;;  %v865_v59 = vadd.f32 %v864_v50, %v693_v43  ;;  %v1073_v17 = vadd.f32 %v1072_v8, %v805_v3  ;;  %v1074_v25 = vsel %vm222_vm0, %v821_v12, 0.0  ;;  %v6253_v12 = vld [vmem:[%s10084_s3 + $0x944] ss:$8 sps:$4 sm:$0xff]  }
  0x3f   :  { %3247 = vmatpush1.bf16.msra.mxu0 %v6225_v15  ;;  %v884_v57 = vadd.f32 %v883_v48, %v882_v36  ;;  %v1050_v62 = vrot.slane %v1049_v53, 4  ;;  %v1252_v1 = vmul.f32 0.020408163, %v860_v55  ;;  %v845_v15 = vadd.f32 %v844_v6, %v843_v61  ;;  %v6235_v61 = vld [vmem:[%s10084_s3 + $0x914] ss:$8 sps:$4 sm:$0xff]  }
  0x40   :  { %3288 = vmatpush1.bf16.msra.mxu1 %v6226_v16  ;;  %3298 = vmatprep.subr.bf16.mxu0 %v6229_v39  ;;  %v1068_v0 = vadd.f32 %v1067_v56, %v1066_v47  ;;  %v867_v4 = vadd.f32 %v866_v33, %v865_v59  ;;  %v1094_v22 = vadd.f32 %v1093_v14, %v1092_v5  ;;  %v6230_v6 = vld [vmem:[%s10084_s3 + $0xa00] ss:$8 sps:$4 sm:$0xff]  }
  0x41   :  { %3339 = vmatprep.subr.bf16.mxu1 %v6232_v45  ;;  %v885_v2 = vrot.slane %v884_v57, 1  ;;  %v1051_v7 = vadd.f32 %v1050_v62, %v1049_v53  ;;  %v1536_v10 = vpack.c.bf16 %v1252_v1, %v1252_v1  ;;  %v846_v23 = vrot.slane %v845_v15, 1  ;;  %v6251_v14 = vld [vmem:[%s10084_s3 + $0x940] ss:$8 sps:$4 sm:$0xff]  }
  0x42   :  { %v1268_v9 = vmul.f32 0.020408163, %v1068_v0  ;;  %v868_v13 = vrot.slane %v867_v4, 4  ;;  %v1075_v29 = vadd.f32 %v1074_v25, %v1073_v17  ;;  %v1270_v30 = vmul.f32 0.020408163, %v1094_v22  ;;  %v632_v22 = vld [vmem:[%s10082_s1 + $0xa8] sm:$0xff] }
  0x43   :  { %v886_v11 = vadd.f32 %v885_v2, %v884_v57  ;;  %v1052_v16 = vrot.slane %v1051_v7, 2  ;;  %v1856_v19 = vunpack.c.l.b16 %v1536_v10  ;;  %v847_v31 = vadd.f32 %v846_v23, %v845_v15  ;;  %v6227_v57 = vld [vmem:[%s10084_s3 + $0x900] ss:$8 sps:$4 sm:$0xff]   ;;  %v6241_v2 = vld [vmem:[%s10084_s3 + $0x924] ss:$8 sps:$4 sm:$0xff]  }
  0x44   :  { %v1552_v18 = vpack.c.bf16 %v1268_v9, %v1268_v9  ;;  %v869_v21 = vadd.f32 %v868_v13, %v867_v4  ;;  %v1076_v36 = vrot.slane %v1075_v29, 4  ;;  %v1554_v38 = vpack.c.bf16 %v1270_v30, %v1270_v30  ;;  %v6239_v4 = vld [vmem:[%s10084_s3 + $0x920] ss:$8 sps:$4 sm:$0xff]   ;;  %v6238_v9 = vld [vmem:[%s10084_s3 + $0xa14] ss:$8 sps:$4 sm:$0xff]  }
  0x45   :  { %v1254_v20 = vmul.f32 0.020408163, %v886_v11  ;;  %v1053_v24 = vadd.f32 %v1052_v16, %v1051_v7  ;;  %v1251_v40 = vmul.f32 0.020408163, %v847_v31  ;;  %v6247_v7 = vld [vmem:[%s10084_s3 + $0x934] ss:$8 sps:$4 sm:$0xff]  }
  0x46   :  { %v1872_v26 = vunpack.c.l.b16 %v1552_v18  ;;  %v870_v28 = vrot.slane %v869_v21, 2  ;;  %v1077_v42 = vadd.f32 %v1076_v36, %v1075_v29  ;;  %v1874_v43 = vunpack.c.l.b16 %v1554_v38  ;;  %v6245_v10 = vld [vmem:[%s10084_s3 + $0x930] ss:$8 sps:$4 sm:$0xff]   ;;  %v6244_v13 = vld [vmem:[%s10084_s3 + $0xa24] ss:$8 sps:$4 sm:$0xff]  }
  0x47   :  { %v1538_v27 = vpack.c.bf16 %v1254_v20, %v1254_v20  ;;  %v1054_v32 = vrot.slane %v1053_v24, 1  ;;  %v1535_v45 = vpack.c.bf16 %v1251_v40, %v1251_v40  ;;  %v6236_v11 = vld [vmem:[%s10084_s3 + $0xa10] ss:$8 sps:$4 sm:$0xff]   ;;  %v6242_v15 = vld [vmem:[%s10084_s3 + $0xa20] ss:$8 sps:$4 sm:$0xff]  }
  0x48   :  { %v1889_v33 = vsel %vm1887_vm1, %v1872_v26, %v1856_v19  ;;  %v871_v35 = vadd.f32 %v870_v28, %v869_v21  ;;  %v1078_v47 = vrot.slane %v1077_v42, 2  ;;  %v6259_v16 = vld [vmem:[%s10084_s3 + $0x954] ss:$8 sps:$4 sm:$0xff]   ;;  %v6248_v18 = vld [vmem:[%s10084_s3 + $0xa30] ss:$8 sps:$4 sm:$0xff]   ;;  %v616_v20 = vld [vmem:[%s10082_s1 + $0x28] sm:$0xff] }
  0x49   :  { %v1858_v34 = vunpack.c.l.b16 %v1538_v27  ;;  %v1905_v37 = vpack.c.b16 %v1889_v33, %v1889_v33  ;;  %v1055_v39 = vadd.f32 %v1054_v32, %v1053_v24  ;;  %v1855_v50 = vunpack.c.l.b16 %v1535_v45  ;;  %v6250_v17 = vld [vmem:[%s10084_s3 + $0xa34] ss:$8 sps:$4 sm:$0xff]   ;;  %v6257_v19 = vld [vmem:[%s10084_s3 + $0x950] ss:$8 sps:$4 sm:$0xff]   ;;  %v6265_v21 = vld [vmem:[%s10084_s3 + $0x964] ss:$8 sps:$4 sm:$0xff]  }
  0x4a   :  { %v872_v41 = vrot.slane %v871_v35, 1  ;;  %v1079_v52 = vadd.f32 %v1078_v47, %v1077_v42  ;;  %v648_v23 = vld [vmem:[%s10082_s1 + $0x128] sm:$0xff]  ;;  %v900_v26 = vadd.f32 %v632_v22, %v616_v20  ;;  %v6262_v31 = vld [vmem:[%s10084_s3 + $0xa54] ss:$8 sps:$4 sm:$0xff]   ;;  %v615_v38 = vld [vmem:[%s10082_s1 + $0x20] sm:$0xff] }
  0x4b   :  { %3248 = vmatprep.mubr.bf16.mxu0 %v1905_v37  ;;  %v1267_v44 = vmul.f32 0.020408163, %v1055_v39  ;;  %v1891_v48 = vsel %vm1887_vm1, %v1874_v43, %v1858_v34  ;;  %v6256_v24 = vld [vmem:[%s10084_s3 + $0xa44] ss:$8 sps:$4 sm:$0xff]   ;;  %v6254_v27 = vld [vmem:[%s10084_s3 + $0xa40] ss:$8 sps:$4 sm:$0xff]  }
  0x4c   :  { %v873_v46 = vadd.f32 %v872_v41, %v871_v35  ;;  %v1907_v51 = vpack.c.b16 %v1891_v48, %v1891_v48  ;;  %v1080_v55 = vrot.slane %v1079_v52, 1  ;;  %v664_v25 = vld [vmem:[%s10082_s1 + $0x1a8] sm:$0xff]  ;;  %v6271_v33 = vld [vmem:[%s10084_s3 + $0x974] ss:$8 sps:$4 sm:$0xff]   ;;  %v901_v35 = vadd.f32 %v900_v26, %v648_v23  ;;  %v631_v39 = vld [vmem:[%s10082_s1 + $0xa0] sm:$0xff] }
  0x4d   :  { %v1551_v49 = vpack.c.bf16 %v1267_v44, %v1267_v44  ;;  %v728_v28 = vld [vmem:[%s10082_s1 + $0x3a8] sm:$0xff]  ;;  %v6269_v40 = vld [vmem:[%s10084_s3 + $0x970] ss:$8 sps:$4 sm:$0xff]   ;;  %v647_v45 = vld [vmem:[%s10082_s1 + $0x120] sm:$0xff] }
  0x4e   :  { %v1253_v53 = vmul.f32 0.020408163, %v873_v46  ;;  %3289 = vmatprep.mubr.bf16.mxu1 %v1907_v51  ;;  %v1081_v59 = vadd.f32 %v1080_v55, %v1079_v52  ;;  %v744_v29 = vld [vmem:[%s10082_s1 + $0x428] sm:$0xff]  ;;  %v902_v43 = vadd.f32 %v901_v35, %v664_v25  ;;  %v887_v46 = vadd.f32 %v631_v39, %v615_v38  ;;  %v6260_v47 = vld [vmem:[%s10084_s3 + $0xa50] ss:$8 sps:$4 sm:$0xff]   ;;  %v727_v51 = vld [vmem:[%s10082_s1 + $0x3a0] sm:$0xff] }
  0x4f   :  { %v1871_v54 = vunpack.c.l.b16 %v1551_v49  ;;  %v760_v30 = vld [vmem:[%s10082_s1 + $0x4a8] sm:$0xff]  ;;  %v1108_v36 = vadd.f32 %v744_v29, %v728_v28  ;;  %v666_v22 = vld [vmem:[%s10082_s1 + $0x1b8] sm:$0xff]  ;;  %v807_v28 = vld [vmem:[%s10082_s1 + $0x620] sm:$0xff] }
  0x50   :  { %v1537_v60 = vpack.c.bf16 %v1253_v53, %v1253_v53  ;;  %v1269_v62 = vmul.f32 0.020408163, %v1081_v59  ;;  %v6263_v32 = vld [vmem:[%s10084_s3 + $0x960] ss:$8 sps:$4 sm:$0xff]   ;;  %v6277_v48 = vld [vmem:[%s10084_s3 + $0x984] ss:$8 sps:$4 sm:$0xff]  }
  0x51   :  { %v1888_v56 = vsel %vm1887_vm1, %v1871_v54, %v1855_v50  ;;  %v680_v34 = vld [vmem:[%s10082_s1 + $0x228] sm:$0xff]  ;;  %v1109_v44 = vadd.f32 %v1108_v36, %v760_v30  ;;  %v663_v50 = vld [vmem:[%s10082_s1 + $0x1a0] sm:$0xff]  ;;  %v714_v23 = vld [vmem:[%s10082_s1 + $0x338] sm:$0x1] }
  0x52   :  { %v1904_v58 = vpack.c.b16 %v1888_v56, %v1888_v56  ;;  %v1553_v0 = vpack.c.bf16 %v1269_v62, %v1269_v62  ;;  %v1857_v1 = vunpack.c.l.b16 %v1537_v60  ;;  %v776_v37 = vld [vmem:[%s10082_s1 + $0x528] sm:$0xff]  ;;  %v903_v54 = vadd.f32 %v902_v43, %v680_v34  ;;  %v743_v56 = vld [vmem:[%s10082_s1 + $0x420] sm:$0xff]  ;;  %v6281_v25 = vld [vmem:[%s10084_s3 + $0x990] ss:$8 sps:$4 sm:$0xff]  }
  0x53   :  { %v696_v41 = vld [vmem:[%s10082_s1 + $0x2a8] sm:$0xff]  ;;  %v1110_v55 = vadd.f32 %v1109_v44, %v776_v37  ;;  %v711_v62 = vld [vmem:[%s10082_s1 + $0x320] sm:$0x1]  ;;  %v746_v30 = vld [vmem:[%s10082_s1 + $0x438] sm:$0xff] }
  0x54   :  { %3249 = vmatmul.mubr.bf16.vlgmr.msra.gmra.mrb[0].mxu0 %v1904_v58  ;;  %v1873_v3 = vunpack.c.l.b16 %v1553_v0  ;;  %v712_v42 = vld [vmem:[%s10082_s1 + $0x328] sm:$0x1]  ;;  %v6268_v52 = vld [vmem:[%s10084_s3 + $0xa64] ss:$8 sps:$4 sm:$0xff]   ;;  %v888_v58 = vadd.f32 %v887_v46, %v647_v45  ;;  %v892_v20 = vsel %vm222_vm0, %v711_v62, 0.0  ;;  %v682_v37 = vld [vmem:[%s10082_s1 + $0x238] sm:$0xff] }
  0x55   :  { %3299 = vmatpush1.bf16.msra.mxu0 %v6227_v57  ;;  %v792_v49 = vld [vmem:[%s10082_s1 + $0x5a8] sm:$0xff]  ;;  %v759_v57 = vld [vmem:[%s10082_s1 + $0x4a0] sm:$0xff]  ;;  %v905_v60 = vsel %vm222_vm0, %v712_v42, 0.0  ;;  %v778_v38 = vld [vmem:[%s10082_s1 + $0x538] sm:$0xff] }
  0x56   :  { %3300 = vmatprep.subr.bf16.mxu0 %v6235_v61  ;;  %v1890_v5 = vsel %vm1887_vm1, %v1873_v3, %v1857_v1  ;;  %v824_v53 = vld [vmem:[%s10082_s1 + $0x6a8] sm:$0x1]  ;;  %v679_v61 = vld [vmem:[%s10082_s1 + $0x220] sm:$0xff]  ;;  %v904_v1 = vadd.f32 %v903_v54, %v696_v41  ;;  %v826_v39 = vld [vmem:[%s10082_s1 + $0x6b8] sm:$0x1] }
  0x57   :  { %v1906_v8 = vpack.c.b16 %v1890_v5, %v1890_v5  ;;  %v808_v59 = vld [vmem:[%s10082_s1 + $0x628] sm:$0xff]  ;;  %v775_v3 = vld [vmem:[%s10082_s1 + $0x520] sm:$0xff]  ;;  %v1139_v54 = vsel %vm222_vm0, %v826_v39, 0.0  ;;  %v729_v62 = vld [vmem:[%s10082_s1 + $0x3b0] sm:$0xff] }
  0x58   :  { %v6275_v0 = vld [vmem:[%s10084_s3 + $0x980] ss:$8 sps:$4 sm:$0xff]   ;;  %v6289_v34 = vld [vmem:[%s10084_s3 + $0x9a4] ss:$8 sps:$4 sm:$0xff]  }
  0x59   :  { %3301 = vmatpush1.bf16.msra.mxu0 %v6233_v63  ;;  %3290 = vmatmul.mubr.bf16.vlgmr.msra.gmra.mrb[0].mxu1 %v1906_v8  ;;  %v1095_v63 = vadd.f32 %v743_v56, %v727_v51  ;;  %v6266_v5 = vld [vmem:[%s10084_s3 + $0xa60] ss:$8 sps:$4 sm:$0xff]   ;;  %v6280_v42 = vld [vmem:[%s10084_s3 + $0xa84] ss:$8 sps:$4 sm:$0xff]   ;;  %v698_v51 = vld [vmem:[%s10082_s1 + $0x2b8] sm:$0xff] }
  0x5a   :  { %3302 = vmatprep.subr.bf16.mxu0 %v6241_v2  ;;  %3340 = vmatpush1.bf16.msra.mxu1 %v6230_v6  ;;  %v1111_v2 = vadd.f32 %v1110_v55, %v792_v49  ;;  %v6283_v6 = vld [vmem:[%s10084_s3 + $0x994] ss:$8 sps:$4 sm:$0xff]   ;;  %v695_v8 = vld [vmem:[%s10082_s1 + $0x2a0] sm:$0xff] }
  0x5b   :  { %3341 = vmatprep.subr.bf16.mxu1 %v6238_v9  ;;  %v1096_v9 = vadd.f32 %v1095_v63, %v759_v57  ;;  %v649_v49 = vld [vmem:[%s10082_s1 + $0x130] sm:$0xff] }
  0x5c   :  { %v665_v55 = vld [vmem:[%s10082_s1 + $0x1b0] sm:$0xff] }
  0x5d   :  { %3303 = vmatpush1.bf16.msra.mxu0 %v6239_v4  ;;  %v889_v4 = vadd.f32 %v888_v58, %v663_v50  ;;  %v745_v63 = vld [vmem:[%s10082_s1 + $0x430] sm:$0xff] }
  0x5e   :  { %3304 = vmatprep.subr.bf16.mxu0 %v6247_v7  ;;  %3342 = vmatpush1.bf16.msra.mxu1 %v6236_v11  ;;  %v1113_v7 = vsel %vm222_vm0, %v824_v53, 0.0  ;;  %v634_v11 = vld [vmem:[%s10082_s1 + $0xb8] sm:$0xff] }
  0x5f   :  { %3343 = vmatprep.subr.bf16.mxu1 %v6244_v13  ;;  %v906_v13 = vadd.f32 %v905_v60, %v904_v1  ;;  %v6287_v1 = vld [vmem:[%s10084_s3 + $0x9a0] ss:$8 sps:$4 sm:$0xff]  }
  0x61   :  { %3305 = vmatpush1.bf16.msra.mxu0 %v6245_v10  ;;  %v618_v10 = vld [vmem:[%s10082_s1 + $0x38] sm:$0xff]  ;;  %v907_v26 = vrot.slane %v906_v13, 4 }
  0x62   :  { %3306 = vmatprep.subr.bf16.mxu0 %v6253_v12  ;;  %3344 = vmatpush1.bf16.msra.mxu1 %v6242_v15  ;;  %v6274_v12 = vld [vmem:[%s10084_s3 + $0xa74] ss:$8 sps:$4 sm:$0xff]   ;;  %v791_v15 = vld [vmem:[%s10082_s1 + $0x5a0] sm:$0xff] }
  0x63   :  { %3345 = vmatprep.subr.bf16.mxu1 %v6250_v17  ;;  %v890_v17 = vadd.f32 %v889_v4, %v679_v61  ;;  %v908_v43 = vadd.f32 %v907_v26, %v906_v13  ;;  %v713_v61 = vld [vmem:[%s10082_s1 + $0x330] sm:$0x1] }
  0x64   :  { %v761_v13 = vld [vmem:[%s10082_s1 + $0x4b0] sm:$0xff] }
  0x65   :  { %3307 = vmatpush1.bf16.msra.mxu0 %v6251_v14  ;;  %v1112_v14 = vadd.f32 %v1111_v2, %v808_v59  ;;  %v891_v29 = vadd.f32 %v890_v17, %v695_v8  ;;  %v909_v57 = vrot.slane %v908_v43, 2  ;;  %v697_v17 = vld [vmem:[%s10082_s1 + $0x2b0] sm:$0xff] }
  0x66   :  { %3308 = vmatprep.subr.bf16.mxu0 %v6259_v16  ;;  %3346 = vmatpush1.bf16.msra.mxu1 %v6248_v18  ;;  %v823_v16 = vld [vmem:[%s10082_s1 + $0x6a0] sm:$0x1]  ;;  %v650_v18 = vld [vmem:[%s10082_s1 + $0x138] sm:$0xff] }
  0x67   :  { %3347 = vmatprep.subr.bf16.mxu1 %v6256_v24  ;;  %v730_v24 = vld [vmem:[%s10082_s1 + $0x3b8] sm:$0xff]  ;;  %v1100_v36 = vsel %vm222_vm0, %v823_v16, 0.0  ;;  %v893_v45 = vadd.f32 %v892_v20, %v891_v29  ;;  %v910_v8 = vadd.f32 %v909_v57, %v908_v43  ;;  %v6290_v57 = vld [vmem:[%s10084_s3 + $0xaa0] ss:$8 sps:$4 sm:$0xff]  }
  0x68   :  { %v1134_v41 = vadd.f32 %v746_v30, %v730_v24  ;;  %v777_v24 = vld [vmem:[%s10082_s1 + $0x530] sm:$0xff]  ;;  %v6292_v30 = vld [vmem:[%s10084_s3 + $0xaa4] ss:$8 sps:$4 sm:$0xff]  }
  0x69   :  { %3309 = vmatpush1.bf16.msra.mxu0 %v6257_v19  ;;  %v926_v19 = vadd.f32 %v634_v11, %v618_v10  ;;  %v894_v59 = vrot.slane %v893_v45, 4  ;;  %v911_v20 = vrot.slane %v910_v8, 1 }
  0x6a   :  { %3310 = vmatprep.subr.bf16.mxu0 %v6265_v21  ;;  %3348 = vmatpush1.bf16.msra.mxu1 %v6254_v27  ;;  %v1097_v21 = vadd.f32 %v1096_v9, %v775_v3  ;;  %v1114_v27 = vadd.f32 %v1113_v7, %v1112_v14  ;;  %v810_v3 = vld [vmem:[%s10082_s1 + $0x638] sm:$0xff] }
  0x6b   :  { %3349 = vmatprep.subr.bf16.mxu1 %v6262_v31  ;;  %v762_v31 = vld [vmem:[%s10082_s1 + $0x4b8] sm:$0xff]  ;;  %v895_v10 = vadd.f32 %v894_v59, %v893_v45 }
  0x6c   :  { %v1098_v35 = vadd.f32 %v1097_v21, %v791_v15  ;;  %v1115_v44 = vrot.slane %v1114_v27, 4  ;;  %v1135_v53 = vadd.f32 %v1134_v41, %v762_v31  ;;  %v6286_v7 = vld [vmem:[%s10084_s3 + $0xa94] ss:$8 sps:$4 sm:$0xff]   ;;  %v6293_v31 = vld [vmem:[%s10084_s3 + $0x9b0] ss:$8 sps:$4 sm:$0xff]  }
  0x6d   :  { %3311 = vmatpush1.bf16.msra.mxu0 %v6263_v32  ;;  %v927_v32 = vadd.f32 %v926_v19, %v650_v18  ;;  %v6295_v14 = vld [vmem:[%s10084_s3 + $0x9b4] ss:$8 sps:$4 sm:$0xff]   ;;  %v1121_v19 = vadd.f32 %v745_v63, %v729_v62 }
  0x6e   :  { %3312 = vmatprep.subr.bf16.mxu0 %v6271_v33  ;;  %3350 = vmatpush1.bf16.msra.mxu1 %v6260_v47  ;;  %v6272_v33 = vld [vmem:[%s10084_s3 + $0xa70] ss:$8 sps:$4 sm:$0xff]   ;;  %v1099_v50 = vadd.f32 %v1098_v35, %v807_v28  ;;  %v1116_v58 = vadd.f32 %v1115_v44, %v1114_v27  ;;  %v1136_v4 = vadd.f32 %v1135_v53, %v778_v38  ;;  %v6298_v63 = vld [vmem:[%s10084_s3 + $0xab4] ss:$8 sps:$4 sm:$0xff]  }
  0x6f   :  { %3351 = vmatprep.subr.bf16.mxu1 %v6268_v52  ;;  %v928_v46 = vadd.f32 %v927_v32, %v666_v22  ;;  %v617_v47 = vld [vmem:[%s10082_s1 + $0x30] sm:$0xff]  ;;  %v794_v52 = vld [vmem:[%s10082_s1 + $0x5b8] sm:$0xff]  ;;  %v896_v22 = vrot.slane %v895_v10, 2  ;;  %v1122_v29 = vadd.f32 %v1121_v19, %v761_v13  ;;  %v912_v32 = vadd.f32 %v911_v20, %v910_v8 }
  0x70   :  { %v1101_v2 = vadd.f32 %v1100_v36, %v1099_v50  ;;  %v1117_v9 = vrot.slane %v1116_v58, 2  ;;  %v1137_v16 = vadd.f32 %v1136_v4, %v794_v52  ;;  %v793_v36 = vld [vmem:[%s10082_s1 + $0x5b0] sm:$0xff] }
  0x71   :  { %3313 = vmatpush1.bf16.msra.mxu0 %v6269_v40  ;;  %v931_v40 = vsel %vm222_vm0, %v714_v23, 0.0  ;;  %v929_v60 = vadd.f32 %v928_v46, %v682_v37  ;;  %v6301_v37 = vld [vmem:[%s10084_s3 + $0x9c4] ss:$8 sps:$4 sm:$0xff]   ;;  %v1123_v41 = vadd.f32 %v1122_v29, %v777_v24  ;;  %v1256_v43 = vmul.f32 0.020408163, %v912_v32  ;;  %v809_v46 = vld [vmem:[%s10082_s1 + $0x630] sm:$0xff] }
  0x72   :  { %3314 = vmatprep.subr.bf16.mxu0 %v6277_v48  ;;  %v633_v48 = vld [vmem:[%s10082_s1 + $0xb0] sm:$0xff]  ;;  %3352 = vmatpush1.bf16.msra.mxu1 %v6266_v5  ;;  %v1102_v15 = vrot.slane %v1101_v2, 4  ;;  %v1118_v21 = vadd.f32 %v1117_v9, %v1116_v58  ;;  %v1138_v27 = vadd.f32 %v1137_v16, %v810_v3 }
  0x73   :  { %v913_v56 = vadd.f32 %v633_v48, %v617_v47  ;;  %3353 = vmatprep.subr.bf16.mxu1 %v6274_v12  ;;  %v930_v11 = vadd.f32 %v929_v60, %v698_v51  ;;  %v681_v12 = vld [vmem:[%s10082_s1 + $0x230] sm:$0xff]  ;;  %v6299_v47 = vld [vmem:[%s10084_s3 + $0x9c0] ss:$8 sps:$4 sm:$0xff]   ;;  %v1124_v52 = vadd.f32 %v1123_v41, %v793_v36 }
  0x74   :  { %v1103_v26 = vadd.f32 %v1102_v15, %v1101_v2  ;;  %v1140_v39 = vadd.f32 %v1139_v54, %v1138_v27  ;;  %v825_v50 = vld [vmem:[%s10082_s1 + $0x6b0] sm:$0x1]  ;;  %v1540_v54 = vpack.c.bf16 %v1256_v43, %v1256_v43  ;;  %v6307_v58 = vld [vmem:[%s10084_s3 + $0x9d4] ss:$8 sps:$4 sm:$0xff]   ;;  %v6311_v27 = vld [vmem:[%s10084_s3 + $0x9e0] ss:$8 sps:$4 sm:$0xff]  }
  0x75   :  { %3315 = vmatpush1.bf16.msra.mxu0 %v6275_v0  ;;  %v6278_v0 = vld [vmem:[%s10084_s3 + $0xa80] ss:$8 sps:$4 sm:$0xff]   ;;  %v914_v5 = vadd.f32 %v913_v56, %v649_v49  ;;  %v932_v23 = vadd.f32 %v931_v40, %v930_v11  ;;  %v1125_v62 = vadd.f32 %v1124_v52, %v809_v46  ;;  %v6296_v8 = vld [vmem:[%s10084_s3 + $0xab0] ss:$8 sps:$4 sm:$0xff]  }
  0x76   :  { %3316 = vmatprep.subr.bf16.mxu0 %v6283_v6  ;;  %v918_v6 = vsel %vm222_vm0, %v713_v61, 0.0  ;;  %3354 = vmatpush1.bf16.msra.mxu1 %v6272_v33  ;;  %v1119_v33 = vrot.slane %v1118_v21, 1  ;;  %v1104_v38 = vrot.slane %v1103_v26, 2  ;;  %v1141_v49 = vrot.slane %v1140_v39, 4  ;;  %v6305_v9 = vld [vmem:[%s10084_s3 + $0x9d0] ss:$8 sps:$4 sm:$0xff]  }
  0x77   :  { %v915_v18 = vadd.f32 %v914_v5, %v665_v55  ;;  %3355 = vmatprep.subr.bf16.mxu1 %v6280_v42  ;;  %v933_v35 = vrot.slane %v932_v23, 4  ;;  %v6317_v41 = vld [vmem:[%s10084_s3 + $0x9f0] ss:$8 sps:$4 sm:$0xff]  }
  0x78   :  { %v1120_v42 = vadd.f32 %v1119_v33, %v1118_v21  ;;  %v1105_v48 = vadd.f32 %v1104_v38, %v1103_v26  ;;  %v1142_v60 = vadd.f32 %v1141_v49, %v1140_v39  ;;  %v6302_v26 = vld [vmem:[%s10084_s3 + $0xac0] ss:$8 sps:$4 sm:$0xff]   ;;  %v6308_v38 = vld [vmem:[%s10084_s3 + $0xad0] ss:$8 sps:$4 sm:$0xff]  }
  0x79   :  { %3317 = vmatpush1.bf16.msra.mxu0 %v6281_v25  ;;  %v6284_v25 = vld [vmem:[%s10084_s3 + $0xa90] ss:$8 sps:$4 sm:$0xff]   ;;  %v916_v28 = vadd.f32 %v915_v18, %v681_v12  ;;  %v934_v45 = vadd.f32 %v933_v35, %v932_v23  ;;  %v6304_v18 = vld [vmem:[%s10084_s3 + $0xac4] ss:$8 sps:$4 sm:$0xff]   ;;  %v6310_v35 = vld [vmem:[%s10084_s3 + $0xad4] ss:$8 sps:$4 sm:$0xff]  }
  0x7a   :  { %3318 = vmatprep.subr.bf16.mxu0 %v6289_v34  ;;  %v897_v34 = vadd.f32 %v896_v22, %v895_v10  ;;  %3356 = vmatpush1.bf16.msra.mxu1 %v6278_v0  ;;  %v1272_v53 = vmul.f32 0.020408163, %v1120_v42  ;;  %v1106_v59 = vrot.slane %v1105_v48, 1  ;;  %v1143_v5 = vrot.slane %v1142_v60, 2 }
  0x7b   :  { %v917_v40 = vadd.f32 %v916_v28, %v697_v17  ;;  %3357 = vmatprep.subr.bf16.mxu1 %v6286_v7  ;;  %v935_v56 = vrot.slane %v934_v45, 2  ;;  %v1126_v7 = vsel %vm222_vm0, %v825_v50, 0.0  ;;  %v6314_v50 = vld [vmem:[%s10084_s3 + $0xae0] ss:$8 sps:$4 sm:$0xff]  }
  0x7c   :  { %v898_v44 = vrot.slane %v897_v34, 1  ;;  %v1556_v0 = vpack.c.bf16 %v1272_v53, %v1272_v53  ;;  %v1107_v4 = vadd.f32 %v1106_v59, %v1105_v48  ;;  %v1127_v13 = vadd.f32 %v1126_v7, %v1125_v62  ;;  %v6316_v48 = vld [vmem:[%s10084_s3 + $0xae4] ss:$8 sps:$4 sm:$0xff]   ;;  %v6323_v53 = vld [vmem:[%s10084_s3 + $0xb00] ss:$8 sps:$4 sm:$0xff]  }
  0x7d   :  { %3319 = vmatpush1.bf16.msra.mxu0 %v6287_v1  ;;  %v919_v51 = vadd.f32 %v918_v6, %v917_v40  ;;  %v1860_v1 = vunpack.c.l.b16 %v1540_v54  ;;  %v936_v3 = vadd.f32 %v935_v56, %v934_v45  ;;  %v1144_v16 = vadd.f32 %v1143_v5, %v1142_v60  ;;  %v6335_v5 = vld [vmem:[%s10084_s3 + $0xb20] ss:$8 sps:$4 sm:$0xff]  }
  0x7e   :  { %3320 = vmatprep.subr.bf16.mxu0 %v6295_v14  ;;  %v899_v55 = vadd.f32 %v898_v44, %v897_v34  ;;  %3358 = vmatpush1.bf16.msra.mxu1 %v6284_v25  ;;  %v1876_v10 = vunpack.c.l.b16 %v1556_v0  ;;  %v6313_v14 = vld [vmem:[%s10084_s3 + $0x9e4] ss:$8 sps:$4 sm:$0xff]   ;;  %v1271_v15 = vmul.f32 0.020408163, %v1107_v4  ;;  %v1128_v21 = vrot.slane %v1127_v13, 4 }
  0x7f   :  { %v920_v61 = vrot.slane %v919_v51, 4  ;;  %3359 = vmatprep.subr.bf16.mxu1 %v6292_v30  ;;  %v937_v12 = vrot.slane %v936_v3, 1  ;;  %v1145_v24 = vrot.slane %v1144_v16, 1  ;;  %v6325_v44 = vld [vmem:[%s10084_s3 + $0xb04] ss:$8 sps:$4 sm:$0xff]  }
  0x80   :  { %v1255_v2 = vmul.f32 0.020408163, %v899_v55  ;;  %v1893_v19 = vsel %vm1887_vm1, %v1876_v10, %v1860_v1  ;;  %v1555_v23 = vpack.c.bf16 %v1271_v15, %v1271_v15  ;;  %v1129_v30 = vadd.f32 %v1128_v21, %v1127_v13  ;;  %v6320_v0 = vld [vmem:[%s10084_s3 + $0xaf0] ss:$8 sps:$4 sm:$0xff]   ;;  %v6337_v1 = vld [vmem:[%s10084_s3 + $0xb24] ss:$8 sps:$4 sm:$0xff]  }
  0x81   :  { %3321 = vmatpush1.bf16.msra.mxu0 %v6293_v31  ;;  %v921_v6 = vadd.f32 %v920_v61, %v919_v51  ;;  %v938_v20 = vadd.f32 %v937_v12, %v936_v3  ;;  %v1909_v22 = vpack.c.b16 %v1893_v19, %v1893_v19  ;;  %v6319_v31 = vld [vmem:[%s10084_s3 + $0x9f4] ss:$8 sps:$4 sm:$0xff]   ;;  %v1146_v33 = vadd.f32 %v1145_v24, %v1144_v16  ;;  %v6328_v3 = vld [vmem:[%s10084_s3 + $0xc04] ss:$8 sps:$4 sm:$0xff]   ;;  %v6326_v7 = vld [vmem:[%s10084_s3 + $0xc00] ss:$8 sps:$4 sm:$0xff]  }
  0x82   :  { %3322 = vmatprep.subr.bf16.mxu0 %v6301_v37  ;;  %v1539_v11 = vpack.c.bf16 %v1255_v2, %v1255_v2  ;;  %3360 = vmatpush1.bf16.msra.mxu1 %v6290_v57  ;;  %v1875_v32 = vunpack.c.l.b16 %v1555_v23  ;;  %v1130_v37 = vrot.slane %v1129_v30, 2  ;;  %v6331_v57 = vld [vmem:[%s10084_s3 + $0xb14] ss:$8 sps:$4 sm:$0xff]   ;;  %v6341_v10 = vld [vmem:[%s10084_s3 + $0xb30] ss:$8 sps:$4 sm:$0xff]   ;;  %v636_v21 = vld [vmem:[%s10082_s1 + $0xc8] sm:$0xff] }
  0x83   :  { %v922_v17 = vrot.slane %v921_v6, 2  ;;  %3361 = vmatprep.subr.bf16.mxu1 %v6298_v63  ;;  %v1258_v29 = vmul.f32 0.020408163, %v938_v20  ;;  %3330 = vmatprep.mubr.bf16.mxu0 %v1909_v22  ;;  %v1274_v39 = vmul.f32 0.020408163, %v1146_v33  ;;  %v620_v20 = vld [vmem:[%s10082_s1 + $0x48] sm:$0xff] }
  0x84   :  { %v1859_v28 = vunpack.c.l.b16 %v1539_v11  ;;  %v1131_v43 = vadd.f32 %v1130_v37, %v1129_v30  ;;  %v6329_v63 = vld [vmem:[%s10084_s3 + $0xb10] ss:$8 sps:$4 sm:$0xff]   ;;  %v6349_v12 = vld [vmem:[%s10084_s3 + $0xb44] ss:$8 sps:$4 sm:$0xff]   ;;  %v6338_v15 = vld [vmem:[%s10084_s3 + $0xc20] ss:$8 sps:$4 sm:$0xff]  }
  0x85   :  { %3323 = vmatpush1.bf16.msra.mxu0 %v6299_v47  ;;  %v923_v25 = vadd.f32 %v922_v17, %v921_v6  ;;  %v1542_v36 = vpack.c.bf16 %v1258_v29, %v1258_v29  ;;  %v1558_v45 = vpack.c.bf16 %v1274_v39, %v1274_v39  ;;  %v6332_v11 = vld [vmem:[%s10084_s3 + $0xc10] ss:$8 sps:$4 sm:$0xff]   ;;  %v6340_v13 = vld [vmem:[%s10084_s3 + $0xc24] ss:$8 sps:$4 sm:$0xff]   ;;  %v6355_v16 = vld [vmem:[%s10084_s3 + $0xb54] ss:$8 sps:$4 sm:$0xff]  }
  0x86   :  { %3324 = vmatprep.subr.bf16.mxu0 %v6307_v58  ;;  %3362 = vmatpush1.bf16.msra.mxu1 %v6296_v8  ;;  %v1892_v42 = vsel %vm1887_vm1, %v1875_v32, %v1859_v28  ;;  %v1132_v49 = vrot.slane %v1131_v43, 1  ;;  %v6322_v58 = vld [vmem:[%s10084_s3 + $0xaf4] ss:$8 sps:$4 sm:$0xff]   ;;  %v6353_v19 = vld [vmem:[%s10084_s3 + $0xb50] ss:$8 sps:$4 sm:$0xff]   ;;  %v652_v24 = vld [vmem:[%s10082_s1 + $0x148] sm:$0xff] }
  0x87   :  { %v924_v34 = vrot.slane %v923_v25, 1  ;;  %3363 = vmatprep.subr.bf16.mxu1 %v6304_v18  ;;  %v1862_v46 = vunpack.c.l.b16 %v1542_v36  ;;  %v1908_v51 = vpack.c.b16 %v1892_v42, %v1892_v42  ;;  %v1878_v52 = vunpack.c.l.b16 %v1558_v45  ;;  %v6343_v8 = vld [vmem:[%s10084_s3 + $0xb34] ss:$8 sps:$4 sm:$0xff]   ;;  %v6344_v18 = vld [vmem:[%s10084_s3 + $0xc30] ss:$8 sps:$4 sm:$0xff]   ;;  %v732_v28 = vld [vmem:[%s10082_s1 + $0x3c8] sm:$0xff] }
  0x88   :  { %v1133_v54 = vadd.f32 %v1132_v49, %v1131_v43  ;;  %v6346_v17 = vld [vmem:[%s10084_s3 + $0xc34] ss:$8 sps:$4 sm:$0xff]   ;;  %v6352_v22 = vld [vmem:[%s10084_s3 + $0xc44] ss:$8 sps:$4 sm:$0xff]   ;;  %v6350_v29 = vld [vmem:[%s10084_s3 + $0xc40] ss:$8 sps:$4 sm:$0xff]  }
  0x89   :  { %3325 = vmatpush1.bf16.msra.mxu0 %v6305_v9  ;;  %v925_v40 = vadd.f32 %v924_v34, %v923_v25  ;;  %v1895_v56 = vsel %vm1887_vm1, %v1878_v52, %v1862_v46  ;;  %v6334_v9 = vld [vmem:[%s10084_s3 + $0xc14] ss:$8 sps:$4 sm:$0xff]   ;;  %v6361_v23 = vld [vmem:[%s10084_s3 + $0xb64] ss:$8 sps:$4 sm:$0xff]   ;;  %v952_v25 = vadd.f32 %v636_v21, %v620_v20  ;;  %v716_v36 = vld [vmem:[%s10082_s1 + $0x348] sm:$0x1] }
  0x8a   :  { %3326 = vmatprep.subr.bf16.mxu0 %v6313_v14  ;;  %3364 = vmatpush1.bf16.msra.mxu1 %v6302_v26  ;;  %v1911_v59 = vpack.c.b16 %v1895_v56, %v1895_v56  ;;  %v1273_v60 = vmul.f32 0.020408163, %v1133_v54  ;;  %v6347_v14 = vld [vmem:[%s10084_s3 + $0xb40] ss:$8 sps:$4 sm:$0xff]   ;;  %v6367_v30 = vld [vmem:[%s10084_s3 + $0xb74] ss:$8 sps:$4 sm:$0xff]  }
  0x8b   :  { %v1257_v47 = vmul.f32 0.020408163, %v925_v40  ;;  %3365 = vmatprep.subr.bf16.mxu1 %v6310_v35  ;;  %v6359_v26 = vld [vmem:[%s10084_s3 + $0xb60] ss:$8 sps:$4 sm:$0xff]   ;;  %v953_v33 = vadd.f32 %v952_v25, %v652_v24  ;;  %v6358_v34 = vld [vmem:[%s10084_s3 + $0xc54] ss:$8 sps:$4 sm:$0xff]  }
  0x8c   :  { %3371 = vmatprep.mubr.bf16.mxu1 %v1911_v59  ;;  %v1557_v61 = vpack.c.bf16 %v1273_v60, %v1273_v60  ;;  %v764_v32 = vld [vmem:[%s10082_s1 + $0x4c8] sm:$0xff]  ;;  %v619_v40 = vld [vmem:[%s10082_s1 + $0x40] sm:$0xff]  ;;  %v6365_v43 = vld [vmem:[%s10084_s3 + $0xb70] ss:$8 sps:$4 sm:$0xff]  }
  0x8d   :  { %3327 = vmatpush1.bf16.msra.mxu0 %v6311_v27  ;;  %v1541_v55 = vpack.c.bf16 %v1257_v47, %v1257_v47  ;;  %v668_v27 = vld [vmem:[%s10082_s1 + $0x1c8] sm:$0xff]  ;;  %v651_v42 = vld [vmem:[%s10082_s1 + $0x140] sm:$0xff]  ;;  %v670_v20 = vld [vmem:[%s10082_s1 + $0x1d8] sm:$0xff] }
  0x8e   :  { %3328 = vmatprep.subr.bf16.mxu0 %v6319_v31  ;;  %3366 = vmatpush1.bf16.msra.mxu1 %v6308_v38  ;;  %v1877_v2 = vunpack.c.l.b16 %v1557_v61  ;;  %v748_v31 = vld [vmem:[%s10082_s1 + $0x448] sm:$0xff]  ;;  %v954_v39 = vadd.f32 %v953_v33, %v668_v27  ;;  %v667_v52 = vld [vmem:[%s10082_s1 + $0x1c0] sm:$0xff]  ;;  %v718_v24 = vld [vmem:[%s10082_s1 + $0x358] sm:$0x1] }
  0x8f   :  { %3367 = vmatprep.subr.bf16.mxu1 %v6316_v48  ;;  %v1861_v62 = vunpack.c.l.b16 %v1541_v55  ;;  %v684_v35 = vld [vmem:[%s10082_s1 + $0x248] sm:$0xff]  ;;  %v1160_v38 = vadd.f32 %v748_v31, %v732_v28  ;;  %v6356_v48 = vld [vmem:[%s10084_s3 + $0xc50] ss:$8 sps:$4 sm:$0xff]   ;;  %v747_v54 = vld [vmem:[%s10082_s1 + $0x440] sm:$0xff] }
  0x90   :  { %v780_v37 = vld [vmem:[%s10082_s1 + $0x548] sm:$0xff]  ;;  %v683_v59 = vld [vmem:[%s10082_s1 + $0x240] sm:$0xff]  ;;  %v734_v25 = vld [vmem:[%s10082_s1 + $0x3d8] sm:$0xff] }
  0x91   :  { %3329 = vmatpush1.bf16.msra.mxu0 %v6317_v41  ;;  %v1894_v4 = vsel %vm1887_vm1, %v1877_v2, %v1861_v62  ;;  %v635_v41 = vld [vmem:[%s10082_s1 + $0xc0] sm:$0xff]  ;;  %v796_v45 = vld [vmem:[%s10082_s1 + $0x5c8] sm:$0xff]  ;;  %v1161_v46 = vadd.f32 %v1160_v38, %v764_v32  ;;  %v6370_v27 = vld [vmem:[%s10084_s3 + $0xc74] ss:$8 sps:$4 sm:$0xff]  }
  0x92   :  { %3380 = vmatprep.subr.bf16.mxu0 %v6325_v44  ;;  %3368 = vmatpush1.bf16.msra.mxu1 %v6314_v50  ;;  %v1910_v6 = vpack.c.b16 %v1894_v4, %v1894_v4  ;;  %v700_v44 = vld [vmem:[%s10082_s1 + $0x2c8] sm:$0xff]  ;;  %v939_v47 = vadd.f32 %v635_v41, %v619_v40  ;;  %v763_v60 = vld [vmem:[%s10082_s1 + $0x4c0] sm:$0xff]  ;;  %v6377_v28 = vld [vmem:[%s10084_s3 + $0xb90] ss:$8 sps:$4 sm:$0xff]   ;;  %v983_v40 = vsel %vm222_vm0, %v718_v24, 0.0 }
  0x93   :  { %3369 = vmatprep.subr.bf16.mxu1 %v6322_v58  ;;  %v6373_v49 = vld [vmem:[%s10084_s3 + $0xb84] ss:$8 sps:$4 sm:$0xff]   ;;  %v828_v56 = vld [vmem:[%s10082_s1 + $0x6c8] sm:$0x1]  ;;  %v1162_v58 = vadd.f32 %v1161_v46, %v780_v37  ;;  %v715_v4 = vld [vmem:[%s10082_s1 + $0x340] sm:$0x1] }
  0x94   :  { %3331 = vmatmul.mubr.bf16.vlgmr.msra.gmra.mrb[4].mxu0 %v1908_v51  ;;  %v812_v50 = vld [vmem:[%s10082_s1 + $0x648] sm:$0xff]  ;;  %v955_v51 = vadd.f32 %v954_v39, %v684_v35  ;;  %v940_v61 = vadd.f32 %v939_v47, %v651_v42  ;;  %v766_v32 = vld [vmem:[%s10082_s1 + $0x4d8] sm:$0xff]  ;;  %v621_v42 = vld [vmem:[%s10082_s1 + $0x50] sm:$0xff] }
  0x95   :  { %3381 = vmatpush1.bf16.msra.mxu0 %v6323_v53  ;;  %v731_v53 = vld [vmem:[%s10082_s1 + $0x3c0] sm:$0xff]  ;;  %v686_v38 = vld [vmem:[%s10082_s1 + $0x258] sm:$0xff]  ;;  %v701_v24 = vld [vmem:[%s10082_s1 + $0x2d0] sm:$0xff] }
  0x96   :  { %3382 = vmatprep.subr.bf16.mxu0 %v6331_v57  ;;  %3370 = vmatpush1.bf16.msra.mxu1 %v6320_v0  ;;  %v6364_v55 = vld [vmem:[%s10084_s3 + $0xc64] ss:$8 sps:$4 sm:$0xff]   ;;  %v957_v57 = vsel %vm222_vm0, %v716_v36, 0.0  ;;  %v1147_v62 = vadd.f32 %v747_v54, %v731_v53  ;;  %v6371_v2 = vld [vmem:[%s10084_s3 + $0xb80] ss:$8 sps:$4 sm:$0xff]   ;;  %v782_v47 = vld [vmem:[%s10082_s1 + $0x558] sm:$0xff] }
  0x97   :  { %3421 = vmatprep.subr.bf16.mxu1 %v6328_v3  ;;  %v699_v0 = vld [vmem:[%s10082_s1 + $0x2c0] sm:$0xff]  ;;  %v1163_v3 = vadd.f32 %v1162_v58, %v796_v45  ;;  %v830_v39 = vld [vmem:[%s10082_s1 + $0x6d8] sm:$0x1] }
  0x98   :  { %v6385_v35 = vld [vmem:[%s10084_s3 + $0xba4] ss:$8 sps:$4 sm:$0xff]   ;;  %v798_v53 = vld [vmem:[%s10082_s1 + $0x5d8] sm:$0xff] }
  0x99   :  { %3383 = vmatpush1.bf16.msra.mxu0 %v6329_v63  ;;  %3372 = vmatmul.mubr.bf16.vlgmr.msra.gmra.mrb[4].mxu1 %v1910_v6  ;;  %v956_v63 = vadd.f32 %v955_v51, %v700_v44  ;;  %v941_v6 = vadd.f32 %v940_v61, %v667_v52  ;;  %v702_v52 = vld [vmem:[%s10082_s1 + $0x2d8] sm:$0xff] }
  0x9a   :  { %3384 = vmatprep.subr.bf16.mxu0 %v6337_v1  ;;  %3422 = vmatpush1.bf16.msra.mxu1 %v6326_v7  ;;  %v779_v1 = vld [vmem:[%s10082_s1 + $0x540] sm:$0xff]  ;;  %v1148_v7 = vadd.f32 %v1147_v62, %v763_v60  ;;  %v669_v62 = vld [vmem:[%s10082_s1 + $0x1d0] sm:$0xff] }
  0x9b   :  { %3423 = vmatprep.subr.bf16.mxu1 %v6334_v9  ;;  %v6379_v9 = vld [vmem:[%s10084_s3 + $0xb94] ss:$8 sps:$4 sm:$0xff]  }
  0x9d   :  { %3385 = vmatpush1.bf16.msra.mxu0 %v6335_v5  ;;  %v795_v5 = vld [vmem:[%s10082_s1 + $0x5c0] sm:$0xff] }
  0x9e   :  { %3386 = vmatprep.subr.bf16.mxu0 %v6343_v8  ;;  %3424 = vmatpush1.bf16.msra.mxu1 %v6332_v11  ;;  %v6362_v8 = vld [vmem:[%s10084_s3 + $0xc60] ss:$8 sps:$4 sm:$0xff]   ;;  %v1165_v11 = vsel %vm222_vm0, %v828_v56, 0.0  ;;  %v717_v56 = vld [vmem:[%s10082_s1 + $0x350] sm:$0x1] }
  0x9f   :  { %3425 = vmatprep.subr.bf16.mxu1 %v6340_v13  ;;  %v638_v13 = vld [vmem:[%s10082_s1 + $0xd8] sm:$0xff] }
  0xa1   :  { %3387 = vmatpush1.bf16.msra.mxu0 %v6341_v10  ;;  %v958_v10 = vadd.f32 %v957_v57, %v956_v63  ;;  %v733_v63 = vld [vmem:[%s10082_s1 + $0x3d0] sm:$0xff] }
  0xa2   :  { %3388 = vmatprep.subr.bf16.mxu0 %v6349_v12  ;;  %3426 = vmatpush1.bf16.msra.mxu1 %v6338_v15  ;;  %v622_v12 = vld [vmem:[%s10082_s1 + $0x58] sm:$0xff]  ;;  %v1164_v15 = vadd.f32 %v1163_v3, %v812_v50  ;;  %v653_v50 = vld [vmem:[%s10082_s1 + $0x150] sm:$0xff] }
  0xa3   :  { %3427 = vmatprep.subr.bf16.mxu1 %v6346_v17  ;;  %v827_v17 = vld [vmem:[%s10082_s1 + $0x6c0] sm:$0x1]  ;;  %v978_v21 = vadd.f32 %v638_v13, %v622_v12  ;;  %v765_v13 = vld [vmem:[%s10082_s1 + $0x4d0] sm:$0xff] }
  0xa4   :  { %v1152_v37 = vsel %vm222_vm0, %v827_v17, 0.0 }
  0xa5   :  { %3389 = vmatpush1.bf16.msra.mxu0 %v6347_v14  ;;  %v654_v14 = vld [vmem:[%s10082_s1 + $0x158] sm:$0xff] }
  0xa6   :  { %3390 = vmatprep.subr.bf16.mxu0 %v6355_v16  ;;  %3428 = vmatpush1.bf16.msra.mxu1 %v6344_v18  ;;  %v811_v16 = vld [vmem:[%s10082_s1 + $0x640] sm:$0xff]  ;;  %v942_v18 = vadd.f32 %v941_v6, %v683_v59  ;;  %v979_v33 = vadd.f32 %v978_v21, %v654_v14  ;;  %v685_v6 = vld [vmem:[%s10082_s1 + $0x250] sm:$0xff] }
  0xa7   :  { %3429 = vmatprep.subr.bf16.mxu1 %v6352_v22  ;;  %v959_v22 = vrot.slane %v958_v10, 4  ;;  %v6382_v14 = vld [vmem:[%s10084_s3 + $0xc94] ss:$8 sps:$4 sm:$0xff]  }
  0xa9   :  { %3391 = vmatpush1.bf16.msra.mxu0 %v6353_v19  ;;  %v1149_v19 = vadd.f32 %v1148_v7, %v779_v1  ;;  %v960_v36 = vadd.f32 %v959_v22, %v958_v10  ;;  %v6374_v1 = vld [vmem:[%s10084_s3 + $0xc80] ss:$8 sps:$4 sm:$0xff]  }
  0xaa   :  { %3392 = vmatprep.subr.bf16.mxu0 %v6361_v23  ;;  %3430 = vmatpush1.bf16.msra.mxu1 %v6350_v29  ;;  %v944_v23 = vsel %vm222_vm0, %v715_v4, 0.0  ;;  %v1166_v29 = vadd.f32 %v1165_v11, %v1164_v15  ;;  %v814_v4 = vld [vmem:[%s10082_s1 + $0x658] sm:$0xff] }
  0xab   :  { %3431 = vmatprep.subr.bf16.mxu1 %v6358_v34  ;;  %v1150_v31 = vadd.f32 %v1149_v19, %v795_v5  ;;  %v6368_v34 = vld [vmem:[%s10084_s3 + $0xc70] ss:$8 sps:$4 sm:$0xff]   ;;  %v961_v51 = vrot.slane %v960_v36, 2  ;;  %v6391_v15 = vld [vmem:[%s10084_s3 + $0xbb4] ss:$8 sps:$4 sm:$0xff]  }
  0xac   :  { %v1167_v44 = vrot.slane %v1166_v29, 4 }
  0xad   :  { %3393 = vmatpush1.bf16.msra.mxu0 %v6359_v26  ;;  %v750_v26 = vld [vmem:[%s10082_s1 + $0x458] sm:$0xff]  ;;  %v1151_v46 = vadd.f32 %v1150_v31, %v811_v16  ;;  %v962_v3 = vadd.f32 %v961_v51, %v960_v36  ;;  %v797_v36 = vld [vmem:[%s10082_s1 + $0x5d0] sm:$0xff] }
  0xae   :  { %3394 = vmatprep.subr.bf16.mxu0 %v6367_v30  ;;  %3432 = vmatpush1.bf16.msra.mxu1 %v6356_v48  ;;  %v943_v30 = vadd.f32 %v942_v18, %v699_v0  ;;  %v1186_v41 = vadd.f32 %v750_v26, %v734_v25  ;;  %v980_v48 = vadd.f32 %v979_v33, %v670_v20  ;;  %v749_v0 = vld [vmem:[%s10082_s1 + $0x450] sm:$0xff] }
  0xaf   :  { %3433 = vmatprep.subr.bf16.mxu1 %v6364_v55  ;;  %v1191_v55 = vsel %vm222_vm0, %v830_v39, 0.0  ;;  %v1168_v58 = vadd.f32 %v1167_v44, %v1166_v29  ;;  %v1153_v60 = vadd.f32 %v1152_v37, %v1151_v46  ;;  %v963_v16 = vrot.slane %v962_v3, 1  ;;  %v781_v25 = vld [vmem:[%s10082_s1 + $0x550] sm:$0xff]  ;;  %v6397_v37 = vld [vmem:[%s10084_s3 + $0xbc4] ss:$8 sps:$4 sm:$0xff]  }
  0xb0   :  { %v945_v45 = vadd.f32 %v944_v23, %v943_v30  ;;  %v1187_v54 = vadd.f32 %v1186_v41, %v766_v32  ;;  %v981_v61 = vadd.f32 %v980_v48, %v686_v38  ;;  %v1173_v19 = vadd.f32 %v749_v0, %v733_v63  ;;  %v6380_v26 = vld [vmem:[%s10084_s3 + $0xc90] ss:$8 sps:$4 sm:$0xff]   ;;  %v6386_v48 = vld [vmem:[%s10084_s3 + $0xca0] ss:$8 sps:$4 sm:$0xff]   ;;  %v6394_v0 = vld [vmem:[%s10084_s3 + $0xcb4] ss:$8 sps:$4 sm:$0xff]  }
  0xb1   :  { %3395 = vmatpush1.bf16.msra.mxu0 %v6365_v43  ;;  %v6376_v43 = vld [vmem:[%s10084_s3 + $0xc84] ss:$8 sps:$4 sm:$0xff]   ;;  %v1154_v11 = vrot.slane %v1153_v60, 4 }
  0xb2   :  { %3396 = vmatprep.subr.bf16.mxu0 %v6373_v49  ;;  %v637_v49 = vld [vmem:[%s10082_s1 + $0xd0] sm:$0xff]  ;;  %3434 = vmatpush1.bf16.msra.mxu1 %v6362_v8  ;;  %v946_v59 = vrot.slane %v945_v45, 4  ;;  %v1188_v5 = vadd.f32 %v1187_v54, %v782_v47  ;;  %v970_v8 = vsel %vm222_vm0, %v717_v56, 0.0  ;;  %v982_v12 = vadd.f32 %v981_v61, %v702_v52 }
  0xb3   :  { %v965_v57 = vadd.f32 %v637_v49, %v621_v42  ;;  %3435 = vmatprep.subr.bf16.mxu1 %v6370_v27  ;;  %v1155_v22 = vadd.f32 %v1154_v11, %v1153_v60  ;;  %v6389_v27 = vld [vmem:[%s10084_s3 + $0xbb0] ss:$8 sps:$4 sm:$0xff]   ;;  %v1174_v31 = vadd.f32 %v1173_v19, %v765_v13  ;;  %v6388_v42 = vld [vmem:[%s10084_s3 + $0xca4] ss:$8 sps:$4 sm:$0xff]   ;;  %v6395_v49 = vld [vmem:[%s10084_s3 + $0xbc0] ss:$8 sps:$4 sm:$0xff]  }
  0xb4   :  { %v947_v10 = vadd.f32 %v946_v59, %v945_v45  ;;  %v1189_v17 = vadd.f32 %v1188_v5, %v798_v53  ;;  %v984_v23 = vadd.f32 %v983_v40, %v982_v12  ;;  %v813_v47 = vld [vmem:[%s10082_s1 + $0x650] sm:$0xff] }
  0xb5   :  { %3397 = vmatpush1.bf16.msra.mxu0 %v6371_v2  ;;  %v6383_v2 = vld [vmem:[%s10084_s3 + $0xba0] ss:$8 sps:$4 sm:$0xff]   ;;  %v966_v7 = vadd.f32 %v965_v57, %v653_v50  ;;  %v1175_v41 = vadd.f32 %v1174_v31, %v781_v25  ;;  %v6403_v59 = vld [vmem:[%s10084_s3 + $0xbd4] ss:$8 sps:$4 sm:$0xff]   ;;  %v6392_v13 = vld [vmem:[%s10084_s3 + $0xcb0] ss:$8 sps:$4 sm:$0xff]  }
  0xb6   :  { %3398 = vmatprep.subr.bf16.mxu0 %v6379_v9  ;;  %v1169_v9 = vrot.slane %v1168_v58, 2  ;;  %3436 = vmatpush1.bf16.msra.mxu1 %v6368_v34  ;;  %v948_v21 = vrot.slane %v947_v10, 2  ;;  %v1190_v29 = vadd.f32 %v1189_v17, %v814_v4  ;;  %v1156_v34 = vrot.slane %v1155_v22, 2  ;;  %v6415_v31 = vld [vmem:[%s10084_s3 + $0xbf4] ss:$8 sps:$4 sm:$0xff]  }
  0xb7   :  { %v967_v18 = vadd.f32 %v966_v7, %v669_v62  ;;  %3437 = vmatprep.subr.bf16.mxu1 %v6376_v43  ;;  %v1176_v53 = vadd.f32 %v1175_v41, %v797_v36  ;;  %v6413_v41 = vld [vmem:[%s10084_s3 + $0xbf0] ss:$8 sps:$4 sm:$0xff]  }
  0xb8   :  { %v1170_v20 = vadd.f32 %v1169_v9, %v1168_v58  ;;  %v949_v33 = vadd.f32 %v948_v21, %v947_v10  ;;  %v1192_v39 = vadd.f32 %v1191_v55, %v1190_v29  ;;  %v1157_v45 = vadd.f32 %v1156_v34, %v1155_v22  ;;  %v829_v58 = vld [vmem:[%s10082_s1 + $0x6d0] sm:$0x1] }
  0xb9   :  { %3399 = vmatpush1.bf16.msra.mxu0 %v6377_v28  ;;  %v964_v28 = vadd.f32 %v963_v16, %v962_v3  ;;  %v968_v30 = vadd.f32 %v967_v18, %v685_v6  ;;  %v1177_v63 = vadd.f32 %v1176_v53, %v813_v47  ;;  %v1178_v7 = vsel %vm222_vm0, %v829_v58, 0.0  ;;  %v6400_v18 = vld [vmem:[%s10084_s3 + $0xcc4] ss:$8 sps:$4 sm:$0xff]   ;;  %v6419_v53 = vld [vmem:[%s10084_s3 + $0xd00] ss:$8 sps:$4 sm:$0xff]  }
  0xba   :  { %3400 = vmatprep.subr.bf16.mxu0 %v6385_v35  ;;  %v1171_v32 = vrot.slane %v1170_v20, 1  ;;  %v985_v35 = vrot.slane %v984_v23, 4  ;;  %3438 = vmatpush1.bf16.msra.mxu1 %v6374_v1  ;;  %v950_v44 = vrot.slane %v949_v33, 1  ;;  %v1193_v51 = vrot.slane %v1192_v39, 4  ;;  %v6418_v58 = vld [vmem:[%s10084_s3 + $0xcf4] ss:$8 sps:$4 sm:$0xff]  }
  0xbb   :  { %v1260_v38 = vmul.f32 0.020408163, %v964_v28  ;;  %v969_v40 = vadd.f32 %v968_v30, %v701_v24  ;;  %3439 = vmatprep.subr.bf16.mxu1 %v6382_v14  ;;  %v1158_v56 = vrot.slane %v1157_v45, 1  ;;  %v6409_v14 = vld [vmem:[%s10084_s3 + $0xbe4] ss:$8 sps:$4 sm:$0xff]   ;;  %v1179_v17 = vadd.f32 %v1178_v7, %v1177_v63 }
  0xbc   :  { %v1172_v43 = vadd.f32 %v1171_v32, %v1170_v20  ;;  %v986_v46 = vadd.f32 %v985_v35, %v984_v23  ;;  %v951_v55 = vadd.f32 %v950_v44, %v949_v33  ;;  %v1194_v61 = vadd.f32 %v1193_v51, %v1192_v39  ;;  %v6406_v35 = vld [vmem:[%s10084_s3 + $0xcd4] ss:$8 sps:$4 sm:$0xff]  }
  0xbd   :  { %3401 = vmatpush1.bf16.msra.mxu0 %v6383_v2  ;;  %v1544_v50 = vpack.c.bf16 %v1260_v38, %v1260_v38  ;;  %v971_v52 = vadd.f32 %v970_v8, %v969_v40  ;;  %v1159_v2 = vadd.f32 %v1158_v56, %v1157_v45  ;;  %v6401_v8 = vld [vmem:[%s10084_s3 + $0xbd0] ss:$8 sps:$4 sm:$0xff]   ;;  %v1180_v25 = vrot.slane %v1179_v17, 4  ;;  %v6439_v7 = vld [vmem:[%s10084_s3 + $0xd34] ss:$8 sps:$4 sm:$0xff]  }
  0xbe   :  { %3402 = vmatprep.subr.bf16.mxu0 %v6391_v15  ;;  %v1276_v54 = vmul.f32 0.020408163, %v1172_v43  ;;  %v987_v57 = vrot.slane %v986_v46, 2  ;;  %3440 = vmatpush1.bf16.msra.mxu1 %v6380_v26  ;;  %v1259_v3 = vmul.f32 0.020408163, %v951_v55  ;;  %v1195_v5 = vrot.slane %v1194_v61, 2 }
  0xbf   :  { %v1864_v60 = vunpack.c.l.b16 %v1544_v50  ;;  %v972_v62 = vrot.slane %v971_v52, 4  ;;  %3441 = vmatprep.subr.bf16.mxu1 %v6388_v42  ;;  %v1275_v10 = vmul.f32 0.020408163, %v1159_v2  ;;  %v6398_v26 = vld [vmem:[%s10084_s3 + $0xcc0] ss:$8 sps:$4 sm:$0xff]   ;;  %v1181_v34 = vadd.f32 %v1180_v25, %v1179_v17 }
  0xc0   :  { %v1560_v1 = vpack.c.bf16 %v1276_v54, %v1276_v54  ;;  %v988_v4 = vadd.f32 %v987_v57, %v986_v46  ;;  %v1543_v11 = vpack.c.bf16 %v1259_v3, %v1259_v3  ;;  %v1196_v15 = vadd.f32 %v1195_v5, %v1194_v61  ;;  %v6404_v40 = vld [vmem:[%s10084_s3 + $0xcd0] ss:$8 sps:$4 sm:$0xff]   ;;  %v6421_v43 = vld [vmem:[%s10084_s3 + $0xd04] ss:$8 sps:$4 sm:$0xff]   ;;  %v6427_v57 = vld [vmem:[%s10084_s3 + $0xd14] ss:$8 sps:$4 sm:$0xff]  }
  0xc1   :  { %3403 = vmatpush1.bf16.msra.mxu0 %v6389_v27  ;;  %v973_v6 = vadd.f32 %v972_v62, %v971_v52  ;;  %v1559_v20 = vpack.c.bf16 %v1275_v10, %v1275_v10  ;;  %v6407_v27 = vld [vmem:[%s10084_s3 + $0xbe0] ss:$8 sps:$4 sm:$0xff]   ;;  %v1182_v39 = vrot.slane %v1181_v34, 2  ;;  %v6416_v61 = vld [vmem:[%s10084_s3 + $0xcf0] ss:$8 sps:$4 sm:$0xff]  }
  0xc2   :  { %3404 = vmatprep.subr.bf16.mxu0 %v6397_v37  ;;  %v1880_v9 = vunpack.c.l.b16 %v1560_v1  ;;  %v989_v12 = vrot.slane %v988_v4, 1  ;;  %3442 = vmatpush1.bf16.msra.mxu1 %v6386_v48  ;;  %v1197_v23 = vrot.slane %v1196_v15, 1  ;;  %v1863_v28 = vunpack.c.l.b16 %v1543_v11  ;;  %v6412_v48 = vld [vmem:[%s10084_s3 + $0xce4] ss:$8 sps:$4 sm:$0xff]   ;;  %v6425_v62 = vld [vmem:[%s10084_s3 + $0xd10] ss:$8 sps:$4 sm:$0xff]  }
  0xc3   :  { %v974_v16 = vrot.slane %v973_v6, 2  ;;  %3443 = vmatprep.subr.bf16.mxu1 %v6394_v0  ;;  %v1879_v29 = vunpack.c.l.b16 %v1559_v20  ;;  %v1183_v46 = vadd.f32 %v1182_v39, %v1181_v34  ;;  %v6433_v1 = vld [vmem:[%s10084_s3 + $0xd24] ss:$8 sps:$4 sm:$0xff]   ;;  %v6431_v5 = vld [vmem:[%s10084_s3 + $0xd20] ss:$8 sps:$4 sm:$0xff]  }
  0xc4   :  { %v1897_v19 = vsel %vm1887_vm1, %v1880_v9, %v1864_v60  ;;  %v990_v21 = vadd.f32 %v989_v12, %v988_v4  ;;  %v1198_v32 = vadd.f32 %v1197_v23, %v1196_v15  ;;  %v6424_v2 = vld [vmem:[%s10084_s3 + $0xe04] ss:$8 sps:$4 sm:$0xff]   ;;  %v6422_v4 = vld [vmem:[%s10084_s3 + $0xe00] ss:$8 sps:$4 sm:$0xff]   ;;  %v6430_v9 = vld [vmem:[%s10084_s3 + $0xe14] ss:$8 sps:$4 sm:$0xff]  }
  0xc5   :  { %3405 = vmatpush1.bf16.msra.mxu0 %v6395_v49  ;;  %v1913_v22 = vpack.c.b16 %v1897_v19, %v1897_v19  ;;  %v975_v24 = vadd.f32 %v974_v16, %v973_v6  ;;  %v1896_v42 = vsel %vm1887_vm1, %v1879_v29, %v1863_v28  ;;  %v6410_v49 = vld [vmem:[%s10084_s3 + $0xce0] ss:$8 sps:$4 sm:$0xff]   ;;  %v1184_v52 = vrot.slane %v1183_v46, 1  ;;  %v6428_v10 = vld [vmem:[%s10084_s3 + $0xe10] ss:$8 sps:$4 sm:$0xff]  }
  0xc6   :  { %3406 = vmatprep.subr.bf16.mxu0 %v6403_v59  ;;  %v1262_v30 = vmul.f32 0.020408163, %v990_v21  ;;  %3444 = vmatpush1.bf16.msra.mxu1 %v6392_v13  ;;  %v1278_v37 = vmul.f32 0.020408163, %v1198_v32  ;;  %v1912_v50 = vpack.c.b16 %v1896_v42, %v1896_v42  ;;  %v6437_v11 = vld [vmem:[%s10084_s3 + $0xd30] ss:$8 sps:$4 sm:$0xff]  }
  0xc7   :  { %v976_v33 = vrot.slane %v975_v24, 1  ;;  %3445 = vmatprep.subr.bf16.mxu1 %v6400_v18  ;;  %3412 = vmatprep.mubr.bf16.mxu0 %v1913_v22  ;;  %v1185_v55 = vadd.f32 %v1184_v52, %v1183_v46  ;;  %v6445_v12 = vld [vmem:[%s10084_s3 + $0xd44] ss:$8 sps:$4 sm:$0xff]   ;;  %v6443_v15 = vld [vmem:[%s10084_s3 + $0xd40] ss:$8 sps:$4 sm:$0xff]  }
  0xc8   :  { %v1546_v36 = vpack.c.bf16 %v1262_v30, %v1262_v30  ;;  %v1562_v44 = vpack.c.bf16 %v1278_v37, %v1278_v37  ;;  %v6436_v13 = vld [vmem:[%s10084_s3 + $0xe24] ss:$8 sps:$4 sm:$0xff]   ;;  %v6451_v16 = vld [vmem:[%s10084_s3 + $0xd54] ss:$8 sps:$4 sm:$0xff]   ;;  %v6449_v18 = vld [vmem:[%s10084_s3 + $0xd50] ss:$8 sps:$4 sm:$0xff]  }
  0xc9   :  { %3407 = vmatpush1.bf16.msra.mxu0 %v6401_v8  ;;  %v977_v38 = vadd.f32 %v976_v33, %v975_v24  ;;  %v1277_v60 = vmul.f32 0.020408163, %v1185_v55  ;;  %v6442_v17 = vld [vmem:[%s10084_s3 + $0xe34] ss:$8 sps:$4 sm:$0xff]   ;;  %v624_v19 = vld [vmem:[%s10082_s1 + $0x68] sm:$0xff]  ;;  %v623_v39 = vld [vmem:[%s10082_s1 + $0x60] sm:$0xff] }
  0xca   :  { %3408 = vmatprep.subr.bf16.mxu0 %v6409_v14  ;;  %3446 = vmatpush1.bf16.msra.mxu1 %v6398_v26  ;;  %v1866_v45 = vunpack.c.l.b16 %v1546_v36  ;;  %v1882_v51 = vunpack.c.l.b16 %v1562_v44  ;;  %v6434_v14 = vld [vmem:[%s10084_s3 + $0xe20] ss:$8 sps:$4 sm:$0xff]   ;;  %v6440_v22 = vld [vmem:[%s10084_s3 + $0xe30] ss:$8 sps:$4 sm:$0xff]   ;;  %v6448_v23 = vld [vmem:[%s10084_s3 + $0xe44] ss:$8 sps:$4 sm:$0xff]  }
  0xcb   :  { %v1261_v47 = vmul.f32 0.020408163, %v977_v38  ;;  %3447 = vmatprep.subr.bf16.mxu1 %v6406_v35  ;;  %v1561_v63 = vpack.c.bf16 %v1277_v60, %v1277_v60  ;;  %v640_v20 = vld [vmem:[%s10082_s1 + $0xe8] sm:$0xff]  ;;  %v6454_v36 = vld [vmem:[%s10084_s3 + $0xe54] ss:$8 sps:$4 sm:$0xff]   ;;  %v655_v44 = vld [vmem:[%s10082_s1 + $0x160] sm:$0xff] }
  0xcc   :  { %v1899_v54 = vsel %vm1887_vm1, %v1882_v51, %v1866_v45  ;;  %v656_v21 = vld [vmem:[%s10082_s1 + $0x168] sm:$0xff]  ;;  %v1004_v25 = vadd.f32 %v640_v20, %v624_v19  ;;  %v6461_v45 = vld [vmem:[%s10084_s3 + $0xd70] ss:$8 sps:$4 sm:$0xff]   ;;  %v767_v55 = vld [vmem:[%s10082_s1 + $0x4e0] sm:$0xff] }
  0xcd   :  { %3409 = vmatpush1.bf16.msra.mxu0 %v6407_v27  ;;  %v1545_v56 = vpack.c.bf16 %v1261_v47, %v1261_v47  ;;  %v1915_v59 = vpack.c.b16 %v1899_v54, %v1899_v54  ;;  %v1881_v3 = vunpack.c.l.b16 %v1561_v63  ;;  %v6457_v24 = vld [vmem:[%s10084_s3 + $0xd64] ss:$8 sps:$4 sm:$0xff]   ;;  %v6455_v26 = vld [vmem:[%s10084_s3 + $0xd60] ss:$8 sps:$4 sm:$0xff]   ;;  %v674_v20 = vld [vmem:[%s10082_s1 + $0x1f8] sm:$0xff] }
  0xce   :  { %3410 = vmatprep.subr.bf16.mxu0 %v6415_v31  ;;  %3448 = vmatpush1.bf16.msra.mxu1 %v6404_v40  ;;  %v672_v27 = vld [vmem:[%s10082_s1 + $0x1e8] sm:$0xff]  ;;  %v6463_v31 = vld [vmem:[%s10084_s3 + $0xd74] ss:$8 sps:$4 sm:$0xff]   ;;  %v1005_v34 = vadd.f32 %v1004_v25, %v656_v21  ;;  %v751_v54 = vld [vmem:[%s10082_s1 + $0x460] sm:$0xff] }
  0xcf   :  { %3449 = vmatprep.subr.bf16.mxu1 %v6412_v48  ;;  %3453 = vmatprep.mubr.bf16.mxu1 %v1915_v59  ;;  %v1865_v0 = vunpack.c.l.b16 %v1545_v56  ;;  %v736_v28 = vld [vmem:[%s10082_s1 + $0x3e8] sm:$0xff]  ;;  %v671_v48 = vld [vmem:[%s10082_s1 + $0x1e0] sm:$0xff]  ;;  %v722_v21 = vld [vmem:[%s10082_s1 + $0x378] sm:$0x1] }
  0xd0   :  { %v752_v29 = vld [vmem:[%s10082_s1 + $0x468] sm:$0xff]  ;;  %v687_v60 = vld [vmem:[%s10082_s1 + $0x260] sm:$0xff] }
  0xd1   :  { %3411 = vmatpush1.bf16.msra.mxu0 %v6413_v41  ;;  %v1898_v6 = vsel %vm1887_vm1, %v1881_v3, %v1865_v0  ;;  %v6446_v30 = vld [vmem:[%s10084_s3 + $0xe40] ss:$8 sps:$4 sm:$0xff]   ;;  %v1212_v35 = vadd.f32 %v752_v29, %v736_v28  ;;  %v1006_v41 = vadd.f32 %v1005_v34, %v672_v27  ;;  %v6460_v56 = vld [vmem:[%s10084_s3 + $0xe64] ss:$8 sps:$4 sm:$0xff]   ;;  %v738_v27 = vld [vmem:[%s10082_s1 + $0x3f8] sm:$0xff] }
  0xd2   :  { %3462 = vmatprep.subr.bf16.mxu0 %v6421_v43  ;;  %3450 = vmatpush1.bf16.msra.mxu1 %v6410_v49  ;;  %v1914_v8 = vpack.c.b16 %v1898_v6, %v1898_v6  ;;  %v688_v32 = vld [vmem:[%s10082_s1 + $0x268] sm:$0xff]  ;;  %v639_v43 = vld [vmem:[%s10082_s1 + $0xe0] sm:$0xff]  ;;  %v754_v28 = vld [vmem:[%s10082_s1 + $0x478] sm:$0xff] }
  0xd3   :  { %3451 = vmatprep.subr.bf16.mxu1 %v6418_v58  ;;  %v768_v33 = vld [vmem:[%s10082_s1 + $0x4e8] sm:$0xff]  ;;  %v991_v49 = vadd.f32 %v639_v43, %v623_v39  ;;  %v1007_v51 = vadd.f32 %v1006_v41, %v688_v32  ;;  %v831_v6 = vld [vmem:[%s10082_s1 + $0x6e0] sm:$0x1]  ;;  %v770_v29 = vld [vmem:[%s10082_s1 + $0x4f8] sm:$0xff]  ;;  %v1035_v41 = vsel %vm222_vm0, %v722_v21, 0.0 }
  0xd4   :  { %3413 = vmatmul.mubr.bf16.vlgmr.msra.gmra.mrb[8].mxu0 %v1912_v50  ;;  %v704_v37 = vld [vmem:[%s10082_s1 + $0x2e8] sm:$0xff]  ;;  %v1213_v42 = vadd.f32 %v1212_v35, %v768_v33  ;;  %v6452_v50 = vld [vmem:[%s10084_s3 + $0xe50] ss:$8 sps:$4 sm:$0xff]  }
  0xd5   :  { %3463 = vmatpush1.bf16.msra.mxu0 %v6419_v53  ;;  %v784_v38 = vld [vmem:[%s10082_s1 + $0x568] sm:$0xff]  ;;  %v735_v53 = vld [vmem:[%s10082_s1 + $0x3e0] sm:$0xff]  ;;  %v1008_v63 = vadd.f32 %v1007_v51, %v704_v37  ;;  %v690_v33 = vld [vmem:[%s10082_s1 + $0x278] sm:$0xff] }
  0xd6   :  { %3464 = vmatprep.subr.bf16.mxu0 %v6427_v57  ;;  %3452 = vmatpush1.bf16.msra.mxu1 %v6416_v61  ;;  %v720_v40 = vld [vmem:[%s10082_s1 + $0x368] sm:$0x1]  ;;  %v1214_v52 = vadd.f32 %v1213_v42, %v784_v38  ;;  %v6469_v57 = vld [vmem:[%s10084_s3 + $0xd84] ss:$8 sps:$4 sm:$0xff]   ;;  %v992_v61 = vadd.f32 %v991_v49, %v655_v44  ;;  %v786_v34 = vld [vmem:[%s10082_s1 + $0x578] sm:$0xff] }
  0xd7   :  { %3503 = vmatprep.subr.bf16.mxu1 %v6424_v2  ;;  %v800_v46 = vld [vmem:[%s10082_s1 + $0x5e8] sm:$0xff]  ;;  %v1009_v59 = vsel %vm222_vm0, %v720_v40, 0.0  ;;  %v783_v2 = vld [vmem:[%s10082_s1 + $0x560] sm:$0xff]  ;;  %v6464_v37 = vld [vmem:[%s10084_s3 + $0xe70] ss:$8 sps:$4 sm:$0xff]  }
  0xd8   :  { %v832_v47 = vld [vmem:[%s10082_s1 + $0x6e8] sm:$0x1]  ;;  %v1215_v0 = vadd.f32 %v1214_v52, %v800_v46  ;;  %v834_v40 = vld [vmem:[%s10082_s1 + $0x6f8] sm:$0x1]  ;;  %v625_v42 = vld [vmem:[%s10082_s1 + $0x70] sm:$0xff] }
  0xd9   :  { %3465 = vmatpush1.bf16.msra.mxu0 %v6425_v62  ;;  %3454 = vmatmul.mubr.bf16.vlgmr.msra.gmra.mrb[8].mxu1 %v1914_v8  ;;  %v816_v58 = vld [vmem:[%s10082_s1 + $0x668] sm:$0xff]  ;;  %v1199_v62 = vadd.f32 %v751_v54, %v735_v53  ;;  %v641_v43 = vld [vmem:[%s10082_s1 + $0xf0] sm:$0xff]  ;;  %v706_v54 = vld [vmem:[%s10082_s1 + $0x2f8] sm:$0xff] }
  0xda   :  { %3466 = vmatprep.subr.bf16.mxu0 %v6433_v1  ;;  %3504 = vmatpush1.bf16.msra.mxu1 %v6422_v4  ;;  %v703_v1 = vld [vmem:[%s10082_s1 + $0x2e0] sm:$0xff]  ;;  %v1217_v4 = vsel %vm222_vm0, %v832_v47, 0.0  ;;  %v657_v51 = vld [vmem:[%s10082_s1 + $0x170] sm:$0xff] }
  0xdb   :  { %3505 = vmatprep.subr.bf16.mxu1 %v6430_v9  ;;  %v6467_v3 = vld [vmem:[%s10084_s3 + $0xd80] ss:$8 sps:$4 sm:$0xff]   ;;  %v1200_v8 = vadd.f32 %v1199_v62, %v767_v55  ;;  %v626_v9 = vld [vmem:[%s10082_s1 + $0x78] sm:$0xff]  ;;  %v6472_v44 = vld [vmem:[%s10084_s3 + $0xe84] ss:$8 sps:$4 sm:$0xff]  }
  0xdc   :  { %v6481_v46 = vld [vmem:[%s10084_s3 + $0xda4] ss:$8 sps:$4 sm:$0xff]   ;;  %v802_v55 = vld [vmem:[%s10082_s1 + $0x5f8] sm:$0xff] }
  0xdd   :  { %3467 = vmatpush1.bf16.msra.mxu0 %v6431_v5  ;;  %v719_v5 = vld [vmem:[%s10082_s1 + $0x360] sm:$0x1]  ;;  %v1201_v19 = vadd.f32 %v1200_v8, %v783_v2 }
  0xde   :  { %3468 = vmatprep.subr.bf16.mxu0 %v6439_v7  ;;  %3506 = vmatpush1.bf16.msra.mxu1 %v6428_v10  ;;  %v993_v7 = vadd.f32 %v992_v61, %v671_v48  ;;  %v6458_v10 = vld [vmem:[%s10084_s3 + $0xe60] ss:$8 sps:$4 sm:$0xff]   ;;  %v996_v25 = vsel %vm222_vm0, %v719_v5, 0.0 }
  0xdf   :  { %3507 = vmatprep.subr.bf16.mxu1 %v6436_v13  ;;  %v1216_v13 = vadd.f32 %v1215_v0, %v816_v58  ;;  %v1017_v58 = vadd.f32 %v641_v43, %v625_v42  ;;  %v737_v0 = vld [vmem:[%s10082_s1 + $0x3f0] sm:$0xff]  ;;  %v6470_v2 = vld [vmem:[%s10084_s3 + $0xe80] ss:$8 sps:$4 sm:$0xff]   ;;  %v6484_v43 = vld [vmem:[%s10084_s3 + $0xea4] ss:$8 sps:$4 sm:$0xff]  }
  0xe1   :  { %3469 = vmatpush1.bf16.msra.mxu0 %v6437_v11  ;;  %v6475_v11 = vld [vmem:[%s10084_s3 + $0xd94] ss:$8 sps:$4 sm:$0xff]   ;;  %v1018_v8 = vadd.f32 %v1017_v58, %v657_v51  ;;  %v833_v58 = vld [vmem:[%s10082_s1 + $0x6f0] sm:$0x1] }
  0xe2   :  { %3470 = vmatprep.subr.bf16.mxu0 %v6445_v12  ;;  %3508 = vmatpush1.bf16.msra.mxu1 %v6434_v14  ;;  %v1010_v12 = vadd.f32 %v1009_v59, %v1008_v63  ;;  %v799_v14 = vld [vmem:[%s10082_s1 + $0x5e0] sm:$0xff]  ;;  %v673_v63 = vld [vmem:[%s10082_s1 + $0x1f0] sm:$0xff] }
  0xe3   :  { %3509 = vmatprep.subr.bf16.mxu1 %v6442_v17  ;;  %v815_v17 = vld [vmem:[%s10082_s1 + $0x660] sm:$0xff]  ;;  %v1202_v32 = vadd.f32 %v1201_v19, %v799_v14  ;;  %v1019_v19 = vadd.f32 %v1018_v8, %v673_v63  ;;  %v1230_v8 = vsel %vm222_vm0, %v833_v58, 0.0  ;;  %v6514_v58 = vld [vmem:[%s10084_s3 + $0xef4] ss:$8 sps:$4 sm:$0xff]  }
  0xe5   :  { %3471 = vmatpush1.bf16.msra.mxu0 %v6443_v15  ;;  %v642_v15 = vld [vmem:[%s10082_s1 + $0xf8] sm:$0xff]  ;;  %v1203_v48 = vadd.f32 %v1202_v32, %v815_v17 }
  0xe6   :  { %3472 = vmatprep.subr.bf16.mxu0 %v6451_v16  ;;  %3510 = vmatpush1.bf16.msra.mxu1 %v6440_v22  ;;  %v658_v16 = vld [vmem:[%s10082_s1 + $0x178] sm:$0xff]  ;;  %v1030_v22 = vadd.f32 %v642_v15, %v626_v9  ;;  %v769_v15 = vld [vmem:[%s10082_s1 + $0x4f0] sm:$0xff] }
  0xe7   :  { %3511 = vmatprep.subr.bf16.mxu1 %v6448_v23  ;;  %v1011_v23 = vrot.slane %v1010_v12, 4 }
  0xe8   :  { %v1031_v35 = vadd.f32 %v1030_v22, %v658_v16  ;;  %v6487_v16 = vld [vmem:[%s10084_s3 + $0xdb4] ss:$8 sps:$4 sm:$0xff]  }
  0xe9   :  { %3473 = vmatpush1.bf16.msra.mxu0 %v6449_v18  ;;  %v994_v18 = vadd.f32 %v993_v7, %v687_v60  ;;  %v1012_v38 = vadd.f32 %v1011_v23, %v1010_v12  ;;  %v689_v7 = vld [vmem:[%s10082_s1 + $0x270] sm:$0xff] }
  0xea   :  { %3474 = vmatprep.subr.bf16.mxu0 %v6457_v24  ;;  %3512 = vmatpush1.bf16.msra.mxu1 %v6446_v30  ;;  %v1218_v24 = vadd.f32 %v1217_v4, %v1216_v13  ;;  %v6466_v30 = vld [vmem:[%s10084_s3 + $0xe74] ss:$8 sps:$4 sm:$0xff]   ;;  %v1032_v49 = vadd.f32 %v1031_v35, %v674_v20 }
  0xeb   :  { %3513 = vmatprep.subr.bf16.mxu1 %v6454_v36  ;;  %v1238_v36 = vadd.f32 %v754_v28, %v738_v27  ;;  %v1013_v52 = vrot.slane %v1012_v38, 2  ;;  %v6476_v27 = vld [vmem:[%s10084_s3 + $0xe90] ss:$8 sps:$4 sm:$0xff]  }
  0xec   :  { %v1219_v39 = vrot.slane %v1218_v24, 4  ;;  %v1033_v61 = vadd.f32 %v1032_v49, %v690_v33  ;;  %v6485_v28 = vld [vmem:[%s10084_s3 + $0xdb0] ss:$8 sps:$4 sm:$0xff]   ;;  %v6491_v49 = vld [vmem:[%s10084_s3 + $0xdc0] ss:$8 sps:$4 sm:$0xff]  }
  0xed   :  { %3475 = vmatpush1.bf16.msra.mxu0 %v6455_v26  ;;  %v1204_v26 = vsel %vm222_vm0, %v831_v6, 0.0  ;;  %v1014_v4 = vadd.f32 %v1013_v52, %v1012_v38  ;;  %v818_v6 = vld [vmem:[%s10082_s1 + $0x678] sm:$0xff]  ;;  %v6493_v38 = vld [vmem:[%s10084_s3 + $0xdc4] ss:$8 sps:$4 sm:$0xff]  }
  0xee   :  { %3476 = vmatprep.subr.bf16.mxu0 %v6463_v31  ;;  %3514 = vmatpush1.bf16.msra.mxu1 %v6452_v50  ;;  %v995_v31 = vadd.f32 %v994_v18, %v703_v1  ;;  %v1239_v50 = vadd.f32 %v1238_v36, %v770_v29  ;;  %v1220_v53 = vadd.f32 %v1219_v39, %v1218_v24  ;;  %v753_v1 = vld [vmem:[%s10082_s1 + $0x470] sm:$0xff] }
  0xef   :  { %3515 = vmatprep.subr.bf16.mxu1 %v6460_v56  ;;  %v1243_v56 = vsel %vm222_vm0, %v834_v40, 0.0  ;;  %v1205_v60 = vadd.f32 %v1204_v26, %v1203_v48  ;;  %v1034_v13 = vadd.f32 %v1033_v61, %v706_v54  ;;  %v1015_v17 = vrot.slane %v1014_v4, 1  ;;  %v785_v26 = vld [vmem:[%s10082_s1 + $0x570] sm:$0xff] }
  0xf0   :  { %v997_v47 = vadd.f32 %v996_v25, %v995_v31  ;;  %v1240_v62 = vadd.f32 %v1239_v50, %v786_v34  ;;  %v1221_v5 = vrot.slane %v1220_v53, 2  ;;  %v1225_v20 = vadd.f32 %v753_v1, %v737_v0  ;;  %v705_v25 = vld [vmem:[%s10082_s1 + $0x2f0] sm:$0xff] }
  0xf1   :  { %3477 = vmatpush1.bf16.msra.mxu0 %v6461_v45  ;;  %v6473_v45 = vld [vmem:[%s10084_s3 + $0xd90] ss:$8 sps:$4 sm:$0xff]   ;;  %v1206_v12 = vrot.slane %v1205_v60, 4  ;;  %v1036_v23 = vadd.f32 %v1035_v41, %v1034_v13  ;;  %v1016_v29 = vadd.f32 %v1015_v17, %v1014_v4  ;;  %v1020_v31 = vadd.f32 %v1019_v19, %v689_v7  ;;  %v6490_v1 = vld [vmem:[%s10084_s3 + $0xeb4] ss:$8 sps:$4 sm:$0xff]  }
  0xf2   :  { %3478 = vmatprep.subr.bf16.mxu0 %v6469_v57  ;;  %3516 = vmatpush1.bf16.msra.mxu1 %v6458_v10  ;;  %v721_v57 = vld [vmem:[%s10082_s1 + $0x370] sm:$0x1]  ;;  %v998_v59 = vrot.slane %v997_v47, 4  ;;  %v6478_v10 = vld [vmem:[%s10084_s3 + $0xe94] ss:$8 sps:$4 sm:$0xff]   ;;  %v1241_v14 = vadd.f32 %v1240_v62, %v802_v55  ;;  %v1222_v18 = vadd.f32 %v1221_v5, %v1220_v53  ;;  %v1226_v32 = vadd.f32 %v1225_v20, %v769_v15 }
  0xf3   :  { %3517 = vmatprep.subr.bf16.mxu1 %v6466_v30  ;;  %v1022_v9 = vsel %vm222_vm0, %v721_v57, 0.0  ;;  %v1207_v22 = vadd.f32 %v1206_v12, %v1205_v60  ;;  %v1037_v35 = vrot.slane %v1036_v23, 4  ;;  %v1264_v40 = vmul.f32 0.020408163, %v1016_v29  ;;  %v817_v48 = vld [vmem:[%s10082_s1 + $0x670] sm:$0xff] }
  0xf4   :  { %v1242_v24 = vadd.f32 %v1241_v14, %v818_v6  ;;  %v1223_v30 = vrot.slane %v1222_v18, 1  ;;  %v1021_v41 = vadd.f32 %v1020_v31, %v705_v25  ;;  %v1227_v42 = vadd.f32 %v1226_v32, %v785_v26  ;;  %v6499_v60 = vld [vmem:[%s10084_s3 + $0xdd4] ss:$8 sps:$4 sm:$0xff]   ;;  %v6488_v14 = vld [vmem:[%s10084_s3 + $0xeb0] ss:$8 sps:$4 sm:$0xff]  }
  0xf5   :  { %3479 = vmatpush1.bf16.msra.mxu0 %v6467_v3  ;;  %v6479_v3 = vld [vmem:[%s10084_s3 + $0xda0] ss:$8 sps:$4 sm:$0xff]   ;;  %v1208_v34 = vrot.slane %v1207_v22, 2  ;;  %v1548_v51 = vpack.c.bf16 %v1264_v40, %v1264_v40  ;;  %v6505_v15 = vld [vmem:[%s10084_s3 + $0xde4] ss:$8 sps:$4 sm:$0xff]  }
  0xf6   :  { %3480 = vmatprep.subr.bf16.mxu0 %v6475_v11  ;;  %v999_v11 = vadd.f32 %v998_v59, %v997_v47  ;;  %3518 = vmatpush1.bf16.msra.mxu1 %v6464_v37  ;;  %v1244_v36 = vadd.f32 %v1243_v56, %v1242_v24  ;;  %v801_v37 = vld [vmem:[%s10082_s1 + $0x5f0] sm:$0xff]  ;;  %v1224_v39 = vadd.f32 %v1223_v30, %v1222_v18  ;;  %v6482_v59 = vld [vmem:[%s10084_s3 + $0xea0] ss:$8 sps:$4 sm:$0xff]   ;;  %v6496_v19 = vld [vmem:[%s10084_s3 + $0xec4] ss:$8 sps:$4 sm:$0xff]  }
  0xf7   :  { %3519 = vmatprep.subr.bf16.mxu1 %v6472_v44  ;;  %v1023_v52 = vadd.f32 %v1022_v9, %v1021_v41  ;;  %v1228_v53 = vadd.f32 %v1227_v42, %v801_v37  ;;  %v1868_v62 = vunpack.c.l.b16 %v1548_v51  ;;  %v6497_v9 = vld [vmem:[%s10084_s3 + $0xdd0] ss:$8 sps:$4 sm:$0xff]   ;;  %v6511_v31 = vld [vmem:[%s10084_s3 + $0xdf4] ss:$8 sps:$4 sm:$0xff]  }
  0xf8   :  { %v1000_v21 = vrot.slane %v999_v11, 2  ;;  %v1245_v47 = vrot.slane %v1244_v36, 4  ;;  %v1280_v50 = vmul.f32 0.020408163, %v1224_v39  ;;  %v6509_v40 = vld [vmem:[%s10084_s3 + $0xdf0] ss:$8 sps:$4 sm:$0xff]  }
  0xf9   :  { %3481 = vmatpush1.bf16.msra.mxu0 %v6473_v45  ;;  %v1209_v45 = vadd.f32 %v1208_v34, %v1207_v22  ;;  %v1024_v63 = vrot.slane %v1023_v52, 4  ;;  %v1229_v0 = vadd.f32 %v1228_v53, %v817_v48  ;;  %v6500_v42 = vld [vmem:[%s10084_s3 + $0xed0] ss:$8 sps:$4 sm:$0xff]   ;;  %v6508_v48 = vld [vmem:[%s10084_s3 + $0xee4] ss:$8 sps:$4 sm:$0xff]  }
  0xfa   :  { %3482 = vmatprep.subr.bf16.mxu0 %v6481_v46  ;;  %v1001_v33 = vadd.f32 %v1000_v21, %v999_v11  ;;  %3520 = vmatpush1.bf16.msra.mxu1 %v6470_v2  ;;  %v1038_v46 = vadd.f32 %v1037_v35, %v1036_v23  ;;  %v1246_v57 = vadd.f32 %v1245_v47, %v1244_v36  ;;  %v6494_v23 = vld [vmem:[%s10084_s3 + $0xec0] ss:$8 sps:$4 sm:$0xff]   ;;  %v6502_v35 = vld [vmem:[%s10084_s3 + $0xed4] ss:$8 sps:$4 sm:$0xff]  }
  0xfb   :  { %3521 = vmatprep.subr.bf16.mxu1 %v6478_v10  ;;  %v1210_v55 = vrot.slane %v1209_v45, 1  ;;  %v1564_v61 = vpack.c.bf16 %v1280_v50, %v1280_v50  ;;  %v1025_v7 = vadd.f32 %v1024_v63, %v1023_v52  ;;  %v1231_v18 = vadd.f32 %v1230_v8, %v1229_v0  ;;  %v6515_v52 = vld [vmem:[%s10084_s3] ss:$8 sps:$4 sm:$0xff]  }
  0xfc   :  { %v1002_v44 = vrot.slane %v1001_v33, 1  ;;  %v1039_v56 = vrot.slane %v1038_v46, 2  ;;  %v1247_v5 = vrot.slane %v1246_v57, 2  ;;  %v6506_v53 = vld [vmem:[%s10084_s3 + $0xee0] ss:$8 sps:$4 sm:$0xff]  }
  0xfd   :  { %3483 = vmatpush1.bf16.msra.mxu0 %v6479_v3  ;;  %v1211_v2 = vadd.f32 %v1210_v55, %v1209_v45  ;;  %v1884_v6 = vunpack.c.l.b16 %v1564_v61  ;;  %v1026_v17 = vrot.slane %v1025_v7, 2  ;;  %v1232_v26 = vrot.slane %v1231_v18, 4  ;;  %v6521_v61 = vld [vmem:[%s10084_s3 + $0x10] ss:$8 sps:$4 sm:$0xff]  }
  0xfe   :  { %3484 = vmatprep.subr.bf16.mxu0 %v6487_v16  ;;  %v1003_v54 = vadd.f32 %v1002_v44, %v1001_v33  ;;  %3522 = vmatpush1.bf16.msra.mxu1 %v6476_v27  ;;  %v1040_v4 = vadd.f32 %v1039_v56, %v1038_v46  ;;  %v1248_v13 = vadd.f32 %v1247_v5, %v1246_v57  ;;  %v6503_v27 = vld [vmem:[%s10084_s3 + $0xde0] ss:$8 sps:$4 sm:$0xff]   ;;  %v6523_v57 = vld [vmem:[%s10084_s3 + $0x14] ss:$8 sps:$4 sm:$0xff]  }
  0xff   :  { %3523 = vmatprep.subr.bf16.mxu1 %v6484_v43  ;;  %v1279_v10 = vmul.f32 0.020408163, %v1211_v2  ;;  %v1901_v16 = vsel %vm1887_vm1, %v1884_v6, %v1868_v62  ;;  %v1027_v25 = vadd.f32 %v1026_v17, %v1025_v7  ;;  %v1233_v34 = vadd.f32 %v1232_v26, %v1231_v18  ;;  %v6517_v43 = vld [vmem:[%s10084_s3 + $0x4] ss:$8 sps:$4 sm:$0xff]   ;;  %v6512_v62 = vld [vmem:[%s10084_s3 + $0xef0] ss:$8 sps:$4 sm:$0xff]  }
 0x100   :  { %v1263_v3 = vmul.f32 0.020408163, %v1003_v54  ;;  %v1041_v12 = vrot.slane %v1040_v4, 1  ;;  %v1917_v20 = vpack.c.b16 %v1901_v16, %v1901_v16  ;;  %v1249_v24 = vrot.slane %v1248_v13, 1  ;;  %v6520_v2 = vld [vmem:[%s10084_s3 + $0x104] ss:$8 sps:$4 sm:$0xff]  }
 0x101   :  { %3485 = vmatpush1.bf16.msra.mxu0 %v6485_v28  ;;  %v1563_v21 = vpack.c.bf16 %v1279_v10, %v1279_v10  ;;  %v1028_v33 = vrot.slane %v1027_v25, 1  ;;  %v1234_v39 = vrot.slane %v1233_v34, 2  ;;  %v6518_v6 = vld [vmem:[%s10084_s3 + $0x100] ss:$8 sps:$4 sm:$0xff]   ;;  %v6535_v7 = vld [vmem:[%s10084_s3 + $0x34] ss:$8 sps:$4 sm:$0xff]  }
 0x102   :  { %3486 = vmatprep.subr.bf16.mxu0 %v6493_v38  ;;  %v1547_v11 = vpack.c.bf16 %v1263_v3, %v1263_v3  ;;  %3524 = vmatpush1.bf16.msra.mxu1 %v6482_v59  ;;  %v1042_v22 = vadd.f32 %v1041_v12, %v1040_v4  ;;  %v1250_v32 = vadd.f32 %v1249_v24, %v1248_v13  ;;  %v6527_v4 = vld [vmem:[%s10084_s3 + $0x20] ss:$8 sps:$4 sm:$0xff]   ;;  %v6533_v10 = vld [vmem:[%s10084_s3 + $0x30] ss:$8 sps:$4 sm:$0xff]   ;;  %v6541_v12 = vld [vmem:[%s10084_s3 + $0x44] ss:$8 sps:$4 sm:$0xff]  }
 0x103   :  { %3525 = vmatprep.subr.bf16.mxu1 %v6490_v1  ;;  %3494 = vmatprep.mubr.bf16.mxu0 %v1917_v20  ;;  %v1883_v29 = vunpack.c.l.b16 %v1563_v21  ;;  %v1029_v38 = vadd.f32 %v1028_v33, %v1027_v25  ;;  %v1235_v46 = vadd.f32 %v1234_v39, %v1233_v34  ;;  %v6529_v1 = vld [vmem:[%s10084_s3 + $0x24] ss:$8 sps:$4 sm:$0xff]   ;;  %v6547_v16 = vld [vmem:[%s10084_s3 + $0x54] ss:$8 sps:$4 sm:$0xff]   ;;  %v6536_v18 = vld [vmem:[%s10084_s3 + $0x130] ss:$8 sps:$4 sm:$0xff]  }
 0x104   :  { %v1867_v28 = vunpack.c.l.b16 %v1547_v11  ;;  %v1266_v30 = vmul.f32 0.020408163, %v1042_v22  ;;  %v1282_v37 = vmul.f32 0.020408163, %v1250_v32  ;;  %v6524_v11 = vld [vmem:[%s10084_s3 + $0x110] ss:$8 sps:$4 sm:$0xff]  }
 0x105   :  { %3487 = vmatpush1.bf16.msra.mxu0 %v6491_v49  ;;  %v1265_v47 = vmul.f32 0.020408163, %v1029_v38  ;;  %v1236_v51 = vrot.slane %v1235_v46, 1  ;;  %v6532_v13 = vld [vmem:[%s10084_s3 + $0x124] ss:$8 sps:$4 sm:$0xff]   ;;  %v36_v20 = vld [vmem:[%s10081_s0 + $0x78] sm:$0xff] }
 0x106   :  { %3488 = vmatprep.subr.bf16.mxu0 %v6499_v60  ;;  %3526 = vmatpush1.bf16.msra.mxu1 %v6488_v14  ;;  %v1550_v36 = vpack.c.bf16 %v1266_v30, %v1266_v30  ;;  %v1900_v41 = vsel %vm1887_vm1, %v1883_v29, %v1867_v28  ;;  %v1566_v44 = vpack.c.bf16 %v1282_v37, %v1282_v37  ;;  %v6539_v14 = vld [vmem:[%s10084_s3 + $0x40] ss:$8 sps:$4 sm:$0xff]   ;;  %v6538_v17 = vld [vmem:[%s10084_s3 + $0x134] ss:$8 sps:$4 sm:$0xff]   ;;  %v6544_v21 = vld [vmem:[%s10084_s3 + $0x144] ss:$8 sps:$4 sm:$0xff]  }
 0x107   :  { %3527 = vmatprep.subr.bf16.mxu1 %v6496_v19  ;;  %v1916_v49 = vpack.c.b16 %v1900_v41, %v1900_v41  ;;  %v1237_v55 = vadd.f32 %v1236_v51, %v1235_v46  ;;  %v1549_v56 = vpack.c.bf16 %v1265_v47, %v1265_v47  ;;  %v22_v19 = vld [vmem:[%s10081_s0 + $0x8] sm:$0xff]  ;;  %v6545_v22 = vld [vmem:[%s10084_s3 + $0x50] ss:$8 sps:$4 sm:$0xff]   ;;  %v6559_v46 = vld [vmem:[%s10084_s3 + $0x74] ss:$8 sps:$4 sm:$0xff]  }
 0x108   :  { %v1870_v45 = vunpack.c.l.b16 %v1550_v36  ;;  %v1886_v50 = vunpack.c.l.b16 %v1566_v44  ;;  %v231_v24 = vadd.f32 %v36_v20, %v22_v19  ;;  %v6553_v25 = vld [vmem:[%s10084_s3 + $0x64] ss:$8 sps:$4 sm:$0xff]   ;;  %v64_v26 = vld [vmem:[%s10081_s0 + $0x158] sm:$0xff]  ;;  %v6551_v29 = vld [vmem:[%s10084_s3 + $0x60] ss:$8 sps:$4 sm:$0xff]  }
 0x109   :  { %3489 = vmatpush1.bf16.msra.mxu0 %v6497_v9  ;;  %v1281_v60 = vmul.f32 0.020408163, %v1237_v55  ;;  %v1869_v0 = vunpack.c.l.b16 %v1549_v56  ;;  %v6526_v9 = vld [vmem:[%s10084_s3 + $0x114] ss:$8 sps:$4 sm:$0xff]   ;;  %v134_v30 = vld [vmem:[%s10081_s0 + $0x388] sm:$0xff]  ;;  %v49_v44 = vld [vmem:[%s10081_s0 + $0xe0] sm:$0xff] }
 0x10a   :  { %3490 = vmatprep.subr.bf16.mxu0 %v6505_v15  ;;  %3528 = vmatpush1.bf16.msra.mxu1 %v6494_v23  ;;  %v1903_v54 = vsel %vm1887_vm1, %v1886_v50, %v1870_v45  ;;  %v6530_v15 = vld [vmem:[%s10084_s3 + $0x120] ss:$8 sps:$4 sm:$0xff]   ;;  %v92_v47 = vld [vmem:[%s10081_s0 + $0x238] sm:$0xff]  ;;  %v119_v55 = vld [vmem:[%s10081_s0 + $0x310] sm:$0xff] }
 0x10b   :  { %3529 = vmatprep.subr.bf16.mxu1 %v6502_v35  ;;  %v1919_v59 = vpack.c.b16 %v1903_v54, %v1903_v54  ;;  %v1565_v63 = vpack.c.bf16 %v1281_v60, %v1281_v60  ;;  %v50_v23 = vld [vmem:[%s10081_s0 + $0xe8] sm:$0xff]  ;;  %v6557_v51 = vld [vmem:[%s10084_s3 + $0x70] ss:$8 sps:$4 sm:$0xff]   ;;  %v133_v56 = vld [vmem:[%s10081_s0 + $0x380] sm:$0xff] }
 0x10c   :  { %v232_v32 = vadd.f32 %v231_v24, %v50_v23  ;;  %v6542_v33 = vld [vmem:[%s10084_s3 + $0x140] ss:$8 sps:$4 sm:$0xff]   ;;  %v63_v54 = vld [vmem:[%s10081_s0 + $0x150] sm:$0xff]  ;;  %v52_v24 = vld [vmem:[%s10081_s0 + $0xf8] sm:$0xff] }
 0x10d   :  { %3491 = vmatpush1.bf16.msra.mxu0 %v6503_v27  ;;  %3535 = vmatprep.mubr.bf16.mxu1 %v1919_v59  ;;  %v1885_v3 = vunpack.c.l.b16 %v1565_v63  ;;  %v120_v27 = vld [vmem:[%s10081_s0 + $0x318] sm:$0xff]  ;;  %v78_v35 = vld [vmem:[%s10081_s0 + $0x1c8] sm:$0xff] }
 0x10e   :  { %3492 = vmatprep.subr.bf16.mxu0 %v6511_v31  ;;  %3530 = vmatpush1.bf16.msra.mxu1 %v6500_v42  ;;  %v148_v31 = vld [vmem:[%s10081_s0 + $0x3f8] sm:$0xff]  ;;  %v106_v36 = vld [vmem:[%s10081_s0 + $0x2a8] sm:$0x1]  ;;  %v413_v38 = vadd.f32 %v134_v30, %v120_v27  ;;  %v233_v41 = vadd.f32 %v232_v32, %v64_v26  ;;  %v21_v42 = vld [vmem:[%s10081_s0] sm:$0xff] }
 0x10f   :  { %3531 = vmatprep.subr.bf16.mxu1 %v6508_v48  ;;  %v1902_v5 = vsel %vm1887_vm1, %v1885_v3, %v1869_v0  ;;  %v162_v37 = vld [vmem:[%s10081_s0 + $0x468] sm:$0xff]  ;;  %v176_v48 = vld [vmem:[%s10081_s0 + $0x4d8] sm:$0xff]  ;;  %v236_v59 = vsel %vm222_vm0, %v106_v36, 0.0  ;;  %v400_v0 = vadd.f32 %v133_v56, %v119_v55  ;;  %v77_v3 = vld [vmem:[%s10081_s0 + $0x1c0] sm:$0xff] }
 0x110   :  { %v1918_v8 = vpack.c.b16 %v1902_v5, %v1902_v5  ;;  %v6565_v5 = vld [vmem:[%s10084_s3 + $0x84] ss:$8 sps:$4 sm:$0xff]   ;;  %v6571_v19 = vld [vmem:[%s10084_s3 + $0x94] ss:$8 sps:$4 sm:$0xff]  }
 0x111   :  { %3493 = vmatpush1.bf16.msra.mxu0 %v6509_v40  ;;  %v6550_v40 = vld [vmem:[%s10084_s3 + $0x154] ss:$8 sps:$4 sm:$0xff]   ;;  %v122_v32 = vld [vmem:[%s10081_s0 + $0x328] sm:$0xff]  ;;  %v189_v36 = vld [vmem:[%s10081_s0 + $0x540] sm:$0xff] }
 0x112   :  { %4762 = vmatprep.subr.bf16.mxu0 %v6517_v43  ;;  %3532 = vmatpush1.bf16.msra.mxu1 %v6506_v53  ;;  %v35_v43 = vld [vmem:[%s10081_s0 + $0x70] sm:$0xff]  ;;  %v234_v53 = vadd.f32 %v233_v41, %v78_v35 }
 0x113   :  { %3533 = vmatprep.subr.bf16.mxu1 %v6514_v58  ;;  %v217_v50 = vadd.f32 %v35_v43, %v21_v42  ;;  %v204_v58 = vld [vmem:[%s10081_s0 + $0x5b8] sm:$0x1] }
 0x114   :  { %3495 = vmatmul.mubr.bf16.vlgmr.msra.gmra.mrb[12].mxu0 %v1916_v49  ;;  %v414_v49 = vadd.f32 %v413_v38, %v148_v31  ;;  %v108_v31 = vld [vmem:[%s10081_s0 + $0x2b8] sm:$0x1] }
 0x115   :  { %4763 = vmatpush1.bf16.msra.mxu0 %v6515_v52  ;;  %v190_v52 = vld [vmem:[%s10081_s0 + $0x548] sm:$0xff]  ;;  %v218_v63 = vadd.f32 %v217_v50, %v49_v44  ;;  %v6569_v41 = vld [vmem:[%s10084_s3 + $0x90] ss:$8 sps:$4 sm:$0xff]   ;;  %v262_v55 = vsel %vm222_vm0, %v108_v31, 0.0 }
 0x116   :  { %4764 = vmatprep.subr.bf16.mxu0 %v6523_v57  ;;  %3534 = vmatpush1.bf16.msra.mxu1 %v6512_v62  ;;  %v6548_v57 = vld [vmem:[%s10084_s3 + $0x150] ss:$8 sps:$4 sm:$0xff]   ;;  %v415_v60 = vadd.f32 %v414_v49, %v162_v37  ;;  %v206_v44 = vld [vmem:[%s10081_s0 + $0x5c8] sm:$0x1]  ;;  %v6577_v50 = vld [vmem:[%s10084_s3 + $0xa4] ss:$8 sps:$4 sm:$0xff]  }
 0x117   :  { %4803 = vmatprep.subr.bf16.mxu1 %v6520_v2  ;;  %v147_v62 = vld [vmem:[%s10081_s0 + $0x3f0] sm:$0xff]  ;;  %v235_v2 = vadd.f32 %v234_v53, %v92_v47  ;;  %v80_v53 = vld [vmem:[%s10081_s0 + $0x1d8] sm:$0xff]  ;;  %v8739_v56 = vsel %vm222_vm0, %v206_v44, 0.0 }
 0x118   :  { %v23_v47 = vld [vmem:[%s10081_s0 + $0x10] sm:$0xff] }
 0x119   :  { %4765 = vmatpush1.bf16.msra.mxu0 %v6521_v61  ;;  %3536 = vmatmul.mubr.bf16.vlgmr.msra.gmra.mrb[12].mxu1 %v1918_v8  ;;  %v105_v61 = vld [vmem:[%s10081_s0 + $0x2a0] sm:$0x1]  ;;  %v219_v8 = vadd.f32 %v218_v63, %v63_v54  ;;  %v6560_v49 = vld [vmem:[%s10084_s3 + $0x170] ss:$8 sps:$4 sm:$0xff]  }
 0x11a   :  { %4766 = vmatprep.subr.bf16.mxu0 %v6529_v1  ;;  %4804 = vmatpush1.bf16.msra.mxu1 %v6518_v6  ;;  %v6556_v1 = vld [vmem:[%s10084_s3 + $0x164] ss:$8 sps:$4 sm:$0xff]   ;;  %v416_v6 = vadd.f32 %v415_v60, %v176_v48  ;;  %v164_v54 = vld [vmem:[%s10081_s0 + $0x478] sm:$0xff]  ;;  %v163_v31 = vld [vmem:[%s10081_s0 + $0x470] sm:$0xff] }
 0x11b   :  { %4805 = vmatprep.subr.bf16.mxu1 %v6526_v9  ;;  %v401_v9 = vadd.f32 %v400_v0, %v147_v62  ;;  %v51_v0 = vld [vmem:[%s10081_s0 + $0xf0] sm:$0xff] }
 0x11c   :  { %v417_v20 = vadd.f32 %v416_v6, %v190_v52  ;;  %v135_v6 = vld [vmem:[%s10081_s0 + $0x390] sm:$0xff] }
 0x11d   :  { %4767 = vmatpush1.bf16.msra.mxu0 %v6527_v4  ;;  %v161_v4 = vld [vmem:[%s10081_s0 + $0x460] sm:$0xff] }
 0x11e   :  { %4768 = vmatprep.subr.bf16.mxu0 %v6535_v7  ;;  %4806 = vmatpush1.bf16.msra.mxu1 %v6524_v11  ;;  %v91_v7 = vld [vmem:[%s10081_s0 + $0x230] sm:$0xff]  ;;  %v237_v11 = vadd.f32 %v236_v59, %v235_v2  ;;  %v402_v23 = vadd.f32 %v401_v9, %v161_v4  ;;  %v178_v4 = vld [vmem:[%s10081_s0 + $0x4e8] sm:$0xff] }
 0x11f   :  { %4807 = vmatprep.subr.bf16.mxu1 %v6532_v13  ;;  %v203_v13 = vld [vmem:[%s10081_s0 + $0x5b0] sm:$0x1]  ;;  %v6575_v9 = vld [vmem:[%s10084_s3 + $0xa0] ss:$8 sps:$4 sm:$0xff]  }
 0x120   :  { %v238_v30 = vrot.slane %v237_v11, 4  ;;  %v405_v38 = vsel %vm222_vm0, %v203_v13, 0.0 }
 0x121   :  { %4769 = vmatpush1.bf16.msra.mxu0 %v6533_v10  ;;  %v6563_v10 = vld [vmem:[%s10084_s3 + $0x80] ss:$8 sps:$4 sm:$0xff]  }
 0x122   :  { %4770 = vmatprep.subr.bf16.mxu0 %v6541_v12  ;;  %4808 = vmatpush1.bf16.msra.mxu1 %v6530_v15  ;;  %v418_v12 = vsel %vm222_vm0, %v204_v58, 0.0  ;;  %v24_v15 = vld [vmem:[%s10081_s0 + $0x18] sm:$0xff]  ;;  %v239_v42 = vadd.f32 %v238_v30, %v237_v11  ;;  %v6568_v58 = vld [vmem:[%s10084_s3 + $0x184] ss:$8 sps:$4 sm:$0xff]   ;;  %v79_v30 = vld [vmem:[%s10081_s0 + $0x1d0] sm:$0xff] }
 0x123   :  { %4809 = vmatprep.subr.bf16.mxu1 %v6538_v17  ;;  %v419_v35 = vadd.f32 %v418_v12, %v417_v20 }
 0x124   :  { %v240_v59 = vrot.slane %v239_v42, 2 }
 0x125   :  { %4771 = vmatpush1.bf16.msra.mxu0 %v6539_v14  ;;  %v223_v14 = vsel %vm222_vm0, %v105_v61, 0.0  ;;  %v94_v61 = vld [vmem:[%s10081_s0 + $0x248] sm:$0xff] }
 0x126   :  { %4772 = vmatprep.subr.bf16.mxu0 %v6547_v16  ;;  %4810 = vmatpush1.bf16.msra.mxu1 %v6536_v18  ;;  %v38_v16 = vld [vmem:[%s10081_s0 + $0x88] sm:$0xff] }
 0x127   :  { %v8573_v28 = vpop.f32.mrb[0].mxu0  ;;  %4811 = vmatprep.subr.bf16.mxu1 %v6544_v21  ;;  %v6554_v18 = vld [vmem:[%s10084_s3 + $0x160] ss:$8 sps:$4 sm:$0xff]   ;;  %v175_v21 = vld [vmem:[%s10081_s0 + $0x4d0] sm:$0xff] }
 0x128   :  { %v8587_v34 = vpop.f32.mrb[1].mxu0  ;;  %v403_v43 = vadd.f32 %v402_v23, %v175_v21  ;;  %v6583_v23 = vld [vmem:[%s10084_s3 + $0xb4] ss:$8 sps:$4 sm:$0xff]  }
 0x129   :  { %v3254_v39 = vpop.f32.mrb[2].mxu0  ;;  %4773 = vmatpush1.bf16.msra.mxu0 %v6545_v22  ;;  %v220_v22 = vadd.f32 %v219_v8, %v77_v3 }
 0x12a   :  { %v3255_v45 = vpop.f32.mrb[3].mxu0  ;;  %4774 = vmatprep.subr.bf16.mxu0 %v6553_v25  ;;  %4812 = vmatpush1.bf16.msra.mxu1 %v6542_v33  ;;  %v257_v25 = vadd.f32 %v38_v16, %v24_v15  ;;  %v66_v39 = vld [vmem:[%s10081_s0 + $0x168] sm:$0xff]  ;;  %v404_v60 = vadd.f32 %v403_v43, %v189_v36  ;;  %v149_v15 = vld [vmem:[%s10081_s0 + $0x400] sm:$0xff] }
 0x12b   :  { %4813 = vmatprep.subr.bf16.mxu1 %v6550_v40  ;;  %v221_v37 = vadd.f32 %v220_v22, %v91_v7  ;;  %v150_v40 = vld [vmem:[%s10081_s0 + $0x408] sm:$0xff]  ;;  %v6574_v22 = vld [vmem:[%s10084_s3 + $0x194] ss:$8 sps:$4 sm:$0xff]  }
 0x12c   :  { %v3291_v17 = vpop.f32.mrb[0].mxu1  ;;  %v258_v45 = vadd.f32 %v257_v25, %v52_v24  ;;  %v406_v11 = vadd.f32 %v405_v38, %v404_v60  ;;  %v6566_v16 = vld [vmem:[%s10084_s3 + $0x180] ss:$8 sps:$4 sm:$0xff]  }
 0x12d   :  { %4775 = vmatpush1.bf16.msra.mxu0 %v6551_v29  ;;  %v8689_v26 = vadd.f32 %v3291_v17, %v8573_v28  ;;  %v3293_v27 = vpop.f32.mrb[1].mxu1  ;;  %v6562_v29 = vld [vmem:[%s10084_s3 + $0x174] ss:$8 sps:$4 sm:$0xff]   ;;  %v224_v52 = vadd.f32 %v223_v14, %v221_v37  ;;  %v65_v14 = vld [vmem:[%s10081_s0 + $0x160] sm:$0xff] }
 0x12e   :  { %4776 = vmatprep.subr.bf16.mxu0 %v6559_v46  ;;  %v136_v28 = vld [vmem:[%s10081_s0 + $0x398] sm:$0xff]  ;;  %v8704_v33 = vadd.f32 %v3293_v27, %v8587_v34  ;;  %4814 = vmatpush1.bf16.msra.mxu1 %v6548_v57  ;;  %v3295_v34 = vpop.f32.mrb[2].mxu1  ;;  %v37_v57 = vld [vmem:[%s10081_s0 + $0x80] sm:$0xff]  ;;  %v259_v62 = vadd.f32 %v258_v45, %v66_v39  ;;  %v407_v25 = vrot.slane %v406_v11, 4  ;;  %v191_v45 = vld [vmem:[%s10081_s0 + $0x550] sm:$0xff] }
 0x12f   :  { %4815 = vmatprep.subr.bf16.mxu1 %v6556_v1  ;;  %v439_v46 = vadd.f32 %v136_v28, %v122_v32  ;;  %v3296_v48 = vpop.f32.mrb[3].mxu1  ;;  %v107_v1 = vld [vmem:[%s10081_s0 + $0x2b0] sm:$0x1]  ;;  %v225_v3 = vrot.slane %v224_v52, 4  ;;  %v244_v7 = vadd.f32 %v37_v57, %v23_v47 }
 0x130   :  { %v8766_v8 = vsel %vm222_vm0, %v107_v1, 0.0  ;;  %v260_v12 = vadd.f32 %v259_v62, %v80_v53  ;;  %v408_v39 = vadd.f32 %v407_v25, %v406_v11  ;;  %v6589_v53 = vld [vmem:[%s10084_s3 + $0xc4] ss:$8 sps:$4 sm:$0xff]   ;;  %v6595_v11 = vld [vmem:[%s10084_s3 + $0xd4] ss:$8 sps:$4 sm:$0xff]  }
 0x131   :  { %4777 = vmatpush1.bf16.msra.mxu0 %v6557_v51  ;;  %v420_v51 = vrot.slane %v419_v35, 4  ;;  %v440_v63 = vadd.f32 %v439_v46, %v150_v40  ;;  %v245_v20 = vadd.f32 %v244_v7, %v51_v0  ;;  %v6578_v0 = vld [vmem:[%s10084_s3 + $0x1a0] ss:$8 sps:$4 sm:$0xff]  }
 0x132   :  { %4778 = vmatprep.subr.bf16.mxu0 %v6565_v5  ;;  %4816 = vmatpush1.bf16.msra.mxu1 %v6554_v18  ;;  %v121_v5 = vld [vmem:[%s10081_s0 + $0x320] sm:$0xff]  ;;  %v226_v18 = vadd.f32 %v225_v3, %v224_v52  ;;  %v261_v27 = vadd.f32 %v260_v12, %v94_v61  ;;  %v6572_v52 = vld [vmem:[%s10084_s3 + $0x190] ss:$8 sps:$4 sm:$0xff]  }
 0x133   :  { %v421_v2 = vadd.f32 %v420_v51, %v419_v35  ;;  %4817 = vmatprep.subr.bf16.mxu1 %v6562_v29  ;;  %v441_v13 = vadd.f32 %v440_v63, %v164_v54  ;;  %v426_v21 = vadd.f32 %v135_v6, %v121_v5  ;;  %v93_v35 = vld [vmem:[%s10081_s0 + $0x240] sm:$0xff]  ;;  %v246_v36 = vadd.f32 %v245_v20, %v65_v14  ;;  %v6584_v20 = vld [vmem:[%s10084_s3 + $0x1b0] ss:$8 sps:$4 sm:$0xff]  }
 0x134   :  { %v227_v28 = vrot.slane %v226_v18, 2  ;;  %v263_v40 = vadd.f32 %v262_v55, %v261_v27  ;;  %v205_v63 = vld [vmem:[%s10081_s0 + $0x5c0] sm:$0x1] }
 0x135   :  { %4779 = vmatpush1.bf16.msra.mxu0 %v6563_v10  ;;  %v241_v10 = vadd.f32 %v240_v59, %v239_v42  ;;  %v422_v17 = vrot.slane %v421_v2, 2  ;;  %v442_v29 = vadd.f32 %v441_v13, %v178_v4  ;;  %v427_v37 = vadd.f32 %v426_v21, %v149_v15  ;;  %v6581_v42 = vld [vmem:[%s10084_s3 + $0xb0] ss:$8 sps:$4 sm:$0xff]   ;;  %v6580_v59 = vld [vmem:[%s10084_s3 + $0x1a4] ss:$8 sps:$4 sm:$0xff]  }
 0x136   :  { %4780 = vmatprep.subr.bf16.mxu0 %v6571_v19  ;;  %v192_v19 = vld [vmem:[%s10081_s0 + $0x558] sm:$0xff]  ;;  %4818 = vmatpush1.bf16.msra.mxu1 %v6560_v49  ;;  %v228_v44 = vadd.f32 %v227_v28, %v226_v18  ;;  %v247_v46 = vadd.f32 %v246_v36, %v79_v30  ;;  %v409_v49 = vrot.slane %v408_v39, 2  ;;  %v6587_v5 = vld [vmem:[%s10084_s3 + $0xc0] ss:$8 sps:$4 sm:$0xff]  }
 0x137   :  { %v242_v24 = vrot.slane %v241_v10, 1  ;;  %v423_v32 = vadd.f32 %v422_v17, %v421_v2  ;;  %4819 = vmatprep.subr.bf16.mxu1 %v6568_v58  ;;  %v443_v34 = vadd.f32 %v442_v29, %v192_v19  ;;  %v428_v47 = vadd.f32 %v427_v37, %v163_v31  ;;  %v6586_v15 = vld [vmem:[%s10084_s3 + $0x1b4] ss:$8 sps:$4 sm:$0xff]   ;;  %v6601_v31 = vld [vmem:[%s10084_s3 + $0xe4] ss:$8 sps:$4 sm:$0xff]  }
 0x138   :  { %v229_v55 = vrot.slane %v228_v44, 1  ;;  %v248_v57 = vadd.f32 %v247_v46, %v93_v35  ;;  %v410_v60 = vadd.f32 %v409_v49, %v408_v39  ;;  %v6592_v35 = vld [vmem:[%s10084_s3 + $0x1c4] ss:$8 sps:$4 sm:$0xff]  }
 0x139   :  { %4781 = vmatpush1.bf16.msra.mxu0 %v6569_v41  ;;  %v243_v38 = vadd.f32 %v242_v24, %v241_v10  ;;  %v177_v41 = vld [vmem:[%s10081_s0 + $0x4e0] sm:$0xff]  ;;  %v424_v43 = vrot.slane %v423_v32, 1  ;;  %v445_v51 = vadd.f32 %v8739_v56, %v443_v34  ;;  %v6593_v24 = vld [vmem:[%s10084_s3 + $0xd0] ss:$8 sps:$4 sm:$0xff]  }
 0x13a   :  { %4782 = vmatprep.subr.bf16.mxu0 %v6577_v50  ;;  %v264_v50 = vrot.slane %v263_v40, 4  ;;  %4820 = vmatpush1.bf16.msra.mxu1 %v6566_v16  ;;  %v429_v58 = vadd.f32 %v428_v47, %v177_v41  ;;  %v230_v2 = vadd.f32 %v229_v55, %v228_v44  ;;  %v250_v3 = vadd.f32 %v8766_v8, %v248_v57  ;;  %v6607_v47 = vld [vmem:[%s10084_s3 + $0xf4] ss:$8 sps:$4 sm:$0xff]   ;;  %v6605_v57 = vld [vmem:[%s10084_s3 + $0xf0] ss:$8 sps:$4 sm:$0xff]  }
 0x13b   :  { %v584_v48 = vmul.f32 0.020408163, %v243_v38  ;;  %v425_v54 = vadd.f32 %v424_v43, %v423_v32  ;;  %4821 = vmatprep.subr.bf16.mxu1 %v6574_v22  ;;  %v446_v62 = vrot.slane %v445_v51, 4  ;;  %v411_v7 = vrot.slane %v410_v60, 1 }
 0x13c   :  { %v265_v61 = vadd.f32 %v264_v50, %v263_v40  ;;  %v430_v4 = vadd.f32 %v429_v58, %v191_v45  ;;  %v583_v13 = vmul.f32 0.020408163, %v230_v2  ;;  %v251_v14 = vrot.slane %v250_v3, 4  ;;  %v6590_v40 = vld [vmem:[%s10084_s3 + $0x1c0] ss:$8 sps:$4 sm:$0xff]  }
 0x13d   :  { %4783 = vmatpush1.bf16.msra.mxu0 %v6575_v9  ;;  %v1284_v56 = vpack.c.bf16 %v584_v48, %v584_v48  ;;  %v598_v1 = vmul.f32 0.020408163, %v425_v54  ;;  %v447_v10 = vadd.f32 %v446_v62, %v445_v51  ;;  %v431_v8 = vsel %vm222_vm0, %v205_v63, 0.0  ;;  %v6598_v50 = vld [vmem:[%s10084_s3 + $0x1d4] ss:$8 sps:$4 sm:$0xff]  }
 0x13e   :  { %4784 = vmatprep.subr.bf16.mxu0 %v6583_v23  ;;  %v266_v9 = vrot.slane %v265_v61, 2  ;;  %4822 = vmatpush1.bf16.msra.mxu1 %v6572_v52  ;;  %v412_v16 = vadd.f32 %v411_v7, %v410_v60  ;;  %v432_v19 = vadd.f32 %v431_v8, %v430_v4  ;;  %v1283_v22 = vpack.c.bf16 %v583_v13, %v583_v13  ;;  %v6613_v60 = vld [vmem:[%s10084_s3 + $0x204] ss:$8 sps:$4 sm:$0xff]   ;;  %v6602_v4 = vld [vmem:[%s10084_s3 + $0x1e0] ss:$8 sps:$4 sm:$0xff]  }
 0x13f   :  { %v3573_v6 = vunpack.c.l.b16 %v1284_v56  ;;  %v1298_v12 = vpack.c.bf16 %v598_v1, %v598_v1  ;;  %4823 = vmatprep.subr.bf16.mxu1 %v6580_v59  ;;  %v448_v18 = vrot.slane %v447_v10, 2  ;;  %v252_v23 = vadd.f32 %v251_v14, %v250_v3  ;;  %v6604_v63 = vld [vmem:[%s10084_s3 + $0x1e4] ss:$8 sps:$4 sm:$0xff]   ;;  %v6617_v14 = vld [vmem:[%s10084_s3 + $0x210] ss:$8 sps:$4 sm:$0xff]  }
 0x140   :  { %v267_v17 = vadd.f32 %v266_v9, %v265_v61  ;;  %v597_v25 = vmul.f32 0.020408163, %v412_v16  ;;  %v433_v30 = vrot.slane %v432_v19, 4  ;;  %v3572_v43 = vunpack.c.l.b16 %v1283_v22  ;;  %v6608_v8 = vld [vmem:[%s10084_s3 + $0x1f0] ss:$8 sps:$4 sm:$0xff]  }
 0x141   :  { %4785 = vmatpush1.bf16.msra.mxu0 %v6581_v42  ;;  %v3587_v21 = vunpack.c.l.b16 %v1298_v12  ;;  %v449_v29 = vadd.f32 %v448_v18, %v447_v10  ;;  %v253_v28 = vrot.slane %v252_v23, 2  ;;  %v6599_v42 = vld [vmem:[%s10084_s3 + $0xe0] ss:$8 sps:$4 sm:$0xff]   ;;  %v6619_v10 = vld [vmem:[%s10084_s3 + $0x214] ss:$8 sps:$4 sm:$0xff]  }
 0x142   :  { %4786 = vmatprep.subr.bf16.mxu0 %v6589_v53  ;;  %v268_v27 = vrot.slane %v267_v17, 1  ;;  %4824 = vmatpush1.bf16.msra.mxu1 %v6578_v0  ;;  %v1297_v37 = vpack.c.bf16 %v597_v25, %v597_v25  ;;  %v434_v41 = vadd.f32 %v433_v30, %v432_v19  ;;  %v6596_v53 = vld [vmem:[%s10084_s3 + $0x1d0] ss:$8 sps:$4 sm:$0xff]   ;;  %v6625_v16 = vld [vmem:[%s10084_s3 + $0x224] ss:$8 sps:$4 sm:$0xff]  }
 0x143   :  { %v3601_v32 = vsel %vm1887_vm1, %v3587_v21, %v3573_v6  ;;  %4825 = vmatprep.subr.bf16.mxu1 %v6586_v15  ;;  %v450_v39 = vrot.slane %v449_v29, 1  ;;  %v254_v34 = vadd.f32 %v253_v28, %v252_v23  ;;  %v6614_v21 = vld [vmem:[%s10084_s3 + $0x300] ss:$8 sps:$4 sm:$0xff]   ;;  %v6631_v22 = vld [vmem:[%s10084_s3 + $0x234] ss:$8 sps:$4 sm:$0xff]  }
 0x144   :  { %v3615_v36 = vpack.c.b16 %v3601_v32, %v3601_v32  ;;  %v269_v38 = vadd.f32 %v268_v27, %v267_v17  ;;  %v3586_v44 = vunpack.c.l.b16 %v1297_v37  ;;  %v435_v49 = vrot.slane %v434_v41, 2  ;;  %v6616_v17 = vld [vmem:[%s10084_s3 + $0x304] ss:$8 sps:$4 sm:$0xff]   ;;  %v6622_v23 = vld [vmem:[%s10084_s3 + $0x314] ss:$8 sps:$4 sm:$0xff]  }
 0x145   :  { %4787 = vmatpush1.bf16.msra.mxu0 %v6587_v5  ;;  %v451_v45 = vadd.f32 %v450_v39, %v449_v29  ;;  %v255_v48 = vrot.slane %v254_v34, 1  ;;  %v6611_v5 = vld [vmem:[%s10084_s3 + $0x200] ss:$8 sps:$4 sm:$0xff]   ;;  %v6620_v25 = vld [vmem:[%s10084_s3 + $0x310] ss:$8 sps:$4 sm:$0xff]  }
 0x146   :  { %4788 = vmatprep.subr.bf16.mxu0 %v6595_v11  ;;  %4794 = vmatprep.mubr.bf16.mxu0 %v3615_v36  ;;  %v586_v46 = vmul.f32 0.020408163, %v269_v38  ;;  %v436_v55 = vadd.f32 %v435_v49, %v434_v41  ;;  %v3600_v58 = vsel %vm1887_vm1, %v3586_v44, %v3572_v43  ;;  %v6610_v11 = vld [vmem:[%s10084_s3 + $0x1f4] ss:$8 sps:$4 sm:$0xff]   ;;  %v6637_v27 = vld [vmem:[%s10084_s3 + $0x244] ss:$8 sps:$4 sm:$0xff]  }
 0x147   :  { %4826 = vmatpush1.bf16.msra.mxu1 %v6584_v20  ;;  %v600_v51 = vmul.f32 0.020408163, %v451_v45  ;;  %v256_v54 = vadd.f32 %v255_v48, %v254_v34  ;;  %v3614_v1 = vpack.c.b16 %v3600_v58, %v3600_v58  ;;  %v6623_v20 = vld [vmem:[%s10084_s3 + $0x220] ss:$8 sps:$4 sm:$0xff]   ;;  %v6628_v29 = vld [vmem:[%s10084_s3 + $0x324] ss:$8 sps:$4 sm:$0xff]  }
 0x148   :  { %4827 = vmatprep.subr.bf16.mxu1 %v6592_v35  ;;  %v1286_v52 = vpack.c.bf16 %v586_v46, %v586_v46  ;;  %v437_v61 = vrot.slane %v436_v55, 1  ;;  %v6635_v30 = vld [vmem:[%s10084_s3 + $0x240] ss:$8 sps:$4 sm:$0xff]   ;;  %v6643_v32 = vld [vmem:[%s10084_s3 + $0x254] ss:$8 sps:$4 sm:$0xff]  }
 0x149   :  { %4789 = vmatpush1.bf16.msra.mxu0 %v6593_v24  ;;  %v1300_v59 = vpack.c.bf16 %v600_v51, %v600_v51  ;;  %v585_v62 = vmul.f32 0.020408163, %v256_v54  ;;  %v6629_v24 = vld [vmem:[%s10084_s3 + $0x230] ss:$8 sps:$4 sm:$0xff]   ;;  %v6634_v28 = vld [vmem:[%s10084_s3 + $0x334] ss:$8 sps:$4 sm:$0xff]  }
 0x14a   :  { %4790 = vmatprep.subr.bf16.mxu0 %v6601_v31  ;;  %v3575_v56 = vunpack.c.l.b16 %v1286_v52  ;;  %v438_v2 = vadd.f32 %v437_v61, %v436_v55  ;;  %v6626_v31 = vld [vmem:[%s10084_s3 + $0x320] ss:$8 sps:$4 sm:$0xff]   ;;  %v6632_v35 = vld [vmem:[%s10084_s3 + $0x330] ss:$8 sps:$4 sm:$0xff]   ;;  %v6640_v38 = vld [vmem:[%s10084_s3 + $0x344] ss:$8 sps:$4 sm:$0xff]  }
 0x14b   :  { %4828 = vmatpush1.bf16.msra.mxu1 %v6590_v40  ;;  %v3589_v0 = vunpack.c.l.b16 %v1300_v59  ;;  %v1285_v3 = vpack.c.bf16 %v585_v62, %v585_v62  ;;  %v26_v36 = vld [vmem:[%s10081_s0 + $0x28] sm:$0xff]  ;;  %v40_v37 = vld [vmem:[%s10081_s0 + $0x98] sm:$0xff] }
 0x14c   :  { %4829 = vmatprep.subr.bf16.mxu1 %v6598_v50  ;;  %v599_v9 = vmul.f32 0.020408163, %v438_v2  ;;  %v6641_v39 = vld [vmem:[%s10084_s3 + $0x250] ss:$8 sps:$4 sm:$0xff]   ;;  %v54_v40 = vld [vmem:[%s10081_s0 + $0x108] sm:$0xff]  ;;  %v283_v34 = vadd.f32 %v40_v37, %v26_v36 }
 0x14d   :  { %4791 = vmatpush1.bf16.msra.mxu0 %v6599_v42  ;;  %v3603_v6 = vsel %vm1887_vm1, %v3589_v0, %v3575_v56  ;;  %v3574_v13 = vunpack.c.l.b16 %v1285_v3  ;;  %v6649_v41 = vld [vmem:[%s10084_s3 + $0x264] ss:$8 sps:$4 sm:$0xff]   ;;  %v68_v42 = vld [vmem:[%s10081_s0 + $0x178] sm:$0xff]  ;;  %v6647_v45 = vld [vmem:[%s10084_s3 + $0x260] ss:$8 sps:$4 sm:$0xff]  }
 0x14e   :  { %4792 = vmatprep.subr.bf16.mxu0 %v6607_v47  ;;  %v3617_v7 = vpack.c.b16 %v3603_v6, %v3603_v6  ;;  %v1299_v12 = vpack.c.bf16 %v599_v9, %v599_v9  ;;  %v124_v43 = vld [vmem:[%s10081_s0 + $0x338] sm:$0xff]  ;;  %v138_v46 = vld [vmem:[%s10081_s0 + $0x3a8] sm:$0xff]  ;;  %v284_v48 = vadd.f32 %v283_v34, %v54_v40  ;;  %v25_v56 = vld [vmem:[%s10081_s0 + $0x20] sm:$0xff] }
 0x14f   :  { %4830 = vmatpush1.bf16.msra.mxu1 %v6596_v53  ;;  %v152_v47 = vld [vmem:[%s10081_s0 + $0x418] sm:$0xff]  ;;  %v6638_v49 = vld [vmem:[%s10084_s3 + $0x340] ss:$8 sps:$4 sm:$0xff]   ;;  %v465_v55 = vadd.f32 %v138_v46, %v124_v43  ;;  %v67_v6 = vld [vmem:[%s10081_s0 + $0x170] sm:$0xff] }
 0x150   :  { %4831 = vmatprep.subr.bf16.mxu1 %v6604_v63  ;;  %4835 = vmatprep.mubr.bf16.mxu1 %v3617_v7  ;;  %v3588_v15 = vunpack.c.l.b16 %v1299_v12  ;;  %v82_v52 = vld [vmem:[%s10081_s0 + $0x1e8] sm:$0xff]  ;;  %v285_v59 = vadd.f32 %v284_v48, %v68_v42  ;;  %v6655_v62 = vld [vmem:[%s10084_s3 + $0x274] ss:$8 sps:$4 sm:$0xff]   ;;  %v6653_v3 = vld [vmem:[%s10084_s3 + $0x270] ss:$8 sps:$4 sm:$0xff]  }
 0x151   :  { %4793 = vmatpush1.bf16.msra.mxu0 %v6605_v57  ;;  %v110_v53 = vld [vmem:[%s10081_s0 + $0x2c8] sm:$0x1]  ;;  %v96_v63 = vld [vmem:[%s10081_s0 + $0x258] sm:$0xff]  ;;  %v123_v7 = vld [vmem:[%s10081_s0 + $0x330] sm:$0xff] }
 0x152   :  { %4844 = vmatprep.subr.bf16.mxu0 %v6613_v60  ;;  %v3602_v18 = vsel %vm1887_vm1, %v3588_v15, %v3574_v13  ;;  %v166_v54 = vld [vmem:[%s10081_s0 + $0x488] sm:$0xff]  ;;  %v39_v60 = vld [vmem:[%s10081_s0 + $0x90] sm:$0xff]  ;;  %v180_v0 = vld [vmem:[%s10081_s0 + $0x4f8] sm:$0xff]  ;;  %v288_v12 = vsel %vm222_vm0, %v110_v53, 0.0 }
 0x153   :  { %4832 = vmatpush1.bf16.msra.mxu1 %v6602_v4  ;;  %v3616_v19 = vpack.c.b16 %v3602_v18, %v3602_v18  ;;  %v270_v2 = vadd.f32 %v39_v60, %v25_v56  ;;  %v194_v4 = vld [vmem:[%s10081_s0 + $0x568] sm:$0xff]  ;;  %v137_v9 = vld [vmem:[%s10081_s0 + $0x3a0] sm:$0xff]  ;;  %v179_v40 = vld [vmem:[%s10081_s0 + $0x4f0] sm:$0xff] }
 0x154   :  { %4795 = vmatmul.mubr.bf16.vlgmr.msra.gmra.mrb[16].mxu0 %v3614_v1  ;;  %4833 = vmatprep.subr.bf16.mxu1 %v6610_v11  ;;  %v466_v1 = vadd.f32 %v465_v55, %v152_v47  ;;  %v208_v11 = vld [vmem:[%s10081_s0 + $0x5d8] sm:$0x1]  ;;  %v6650_v37 = vld [vmem:[%s10084_s3 + $0x360] ss:$8 sps:$4 sm:$0xff]   ;;  %v6658_v46 = vld [vmem:[%s10084_s3 + $0x374] ss:$8 sps:$4 sm:$0xff]  }
 0x155   :  { %4845 = vmatpush1.bf16.msra.mxu0 %v6611_v5  ;;  %v286_v5 = vadd.f32 %v285_v59, %v82_v52  ;;  %v56_v42 = vld [vmem:[%s10081_s0 + $0x118] sm:$0xff]  ;;  %v193_v53 = vld [vmem:[%s10081_s0 + $0x560] sm:$0xff] }
 0x156   :  { %4846 = vmatprep.subr.bf16.mxu0 %v6619_v10  ;;  %v6644_v10 = vld [vmem:[%s10084_s3 + $0x350] ss:$8 sps:$4 sm:$0xff]   ;;  %v467_v13 = vadd.f32 %v466_v1, %v166_v54 }
 0x157   :  { %4834 = vmatpush1.bf16.msra.mxu1 %v6608_v8  ;;  %v151_v8 = vld [vmem:[%s10081_s0 + $0x410] sm:$0xff]  ;;  %v287_v18 = vadd.f32 %v286_v5, %v96_v63  ;;  %v112_v48 = vld [vmem:[%s10081_s0 + $0x2d8] sm:$0x1] }
 0x158   :  { %4885 = vmatprep.subr.bf16.mxu1 %v6616_v17  ;;  %v6652_v17 = vld [vmem:[%s10084_s3 + $0x364] ss:$8 sps:$4 sm:$0xff]   ;;  %v6665_v59 = vld [vmem:[%s10084_s3 + $0x290] ss:$8 sps:$4 sm:$0xff]  }
 0x159   :  { %4847 = vmatpush1.bf16.msra.mxu0 %v6617_v14  ;;  %v109_v14 = vld [vmem:[%s10081_s0 + $0x2c0] sm:$0x1]  ;;  %v27_v63 = vld [vmem:[%s10081_s0 + $0x30] sm:$0xff]  ;;  %v84_v5 = vld [vmem:[%s10081_s0 + $0x1f8] sm:$0xff] }
 0x15a   :  { %4848 = vmatprep.subr.bf16.mxu0 %v6625_v16  ;;  %4836 = vmatmul.mubr.bf16.vlgmr.msra.gmra.mrb[16].mxu1 %v3616_v19  ;;  %v452_v16 = vadd.f32 %v137_v9, %v123_v7  ;;  %v81_v19 = vld [vmem:[%s10081_s0 + $0x1e0] sm:$0xff]  ;;  %v6656_v1 = vld [vmem:[%s10084_s3 + $0x370] ss:$8 sps:$4 sm:$0xff]   ;;  %v314_v7 = vsel %vm222_vm0, %v112_v48, 0.0 }
 0x15b   :  { %4886 = vmatpush1.bf16.msra.mxu1 %v6614_v21  ;;  %v6661_v21 = vld [vmem:[%s10084_s3 + $0x284] ss:$8 sps:$4 sm:$0xff]   ;;  %v167_v48 = vld [vmem:[%s10081_s0 + $0x490] sm:$0xff] }
 0x15c   :  { %4887 = vmatprep.subr.bf16.mxu1 %v6622_v23  ;;  %v95_v23 = vld [vmem:[%s10081_s0 + $0x250] sm:$0xff] }
 0x15d   :  { %4849 = vmatpush1.bf16.msra.mxu0 %v6623_v20  ;;  %v165_v20 = vld [vmem:[%s10081_s0 + $0x480] sm:$0xff] }
 0x15e   :  { %4850 = vmatprep.subr.bf16.mxu0 %v6631_v22  ;;  %v468_v22 = vadd.f32 %v467_v13, %v180_v0 }
 0x15f   :  { %4888 = vmatpush1.bf16.msra.mxu1 %v6620_v25  ;;  %v453_v25 = vadd.f32 %v452_v16, %v151_v8  ;;  %v55_v16 = vld [vmem:[%s10081_s0 + $0x110] sm:$0xff] }
 0x160   :  { %4889 = vmatprep.subr.bf16.mxu1 %v6628_v29  ;;  %v289_v29 = vadd.f32 %v288_v12, %v287_v18 }
 0x161   :  { %4851 = vmatpush1.bf16.msra.mxu0 %v6629_v24 }
 0x162   :  { %4852 = vmatprep.subr.bf16.mxu0 %v6637_v27  ;;  %v6659_v27 = vld [vmem:[%s10084_s3 + $0x280] ss:$8 sps:$4 sm:$0xff]   ;;  %v290_v47 = vrot.slane %v289_v29, 4 }
 0x163   :  { %4890 = vmatpush1.bf16.msra.mxu1 %v6626_v31  ;;  %v207_v31 = vld [vmem:[%s10081_s0 + $0x5d0] sm:$0x1] }
 0x164   :  { %4891 = vmatprep.subr.bf16.mxu1 %v6634_v28  ;;  %v28_v28 = vld [vmem:[%s10081_s0 + $0x38] sm:$0xff]  ;;  %v457_v55 = vsel %vm222_vm0, %v207_v31, 0.0  ;;  %v291_v56 = vadd.f32 %v290_v47, %v289_v29  ;;  %v83_v47 = vld [vmem:[%s10081_s0 + $0x1f0] sm:$0xff] }
 0x165   :  { %4853 = vmatpush1.bf16.msra.mxu0 %v6635_v30  ;;  %v470_v30 = vsel %vm222_vm0, %v208_v11, 0.0  ;;  %v6664_v11 = vld [vmem:[%s10084_s3 + $0x384] ss:$8 sps:$4 sm:$0xff]  }
 0x166   :  { %4854 = vmatprep.subr.bf16.mxu0 %v6643_v32  ;;  %v275_v32 = vsel %vm222_vm0, %v109_v14, 0.0  ;;  %v292_v12 = vrot.slane %v291_v56, 2  ;;  %v98_v14 = vld [vmem:[%s10081_s0 + $0x268] sm:$0xff] }
 0x167   :  { %v3332_v44 = vpop.f32.mrb[4].mxu0  ;;  %4892 = vmatpush1.bf16.msra.mxu1 %v6632_v35  ;;  %v42_v35 = vld [vmem:[%s10081_s0 + $0xa8] sm:$0xff] }
 0x168   :  { %v8974_v50 = vadd.f32 %v3332_v44, %v8689_v26  ;;  %v3334_v51 = vpop.f32.mrb[5].mxu0  ;;  %v6646_v26 = vld [vmem:[%s10084_s3 + $0x354] ss:$8 sps:$4 sm:$0xff]   ;;  %4893 = vmatprep.subr.bf16.mxu1 %v6640_v38  ;;  %v309_v43 = vadd.f32 %v42_v35, %v28_v28  ;;  %v153_v28 = vld [vmem:[%s10081_s0 + $0x420] sm:$0xff] }
 0x169   :  { %v8986_v57 = vadd.f32 %v3334_v51, %v8704_v33  ;;  %v3336_v58 = vpop.f32.mrb[6].mxu0  ;;  %4855 = vmatpush1.bf16.msra.mxu0 %v6641_v39  ;;  %v53_v33 = vld [vmem:[%s10081_s0 + $0x100] sm:$0xff]  ;;  %v6667_v38 = vld [vmem:[%s10084_s3 + $0x294] ss:$8 sps:$4 sm:$0xff]   ;;  %v469_v39 = vadd.f32 %v468_v22, %v194_v4 }
 0x16a   :  { %v3337_v61 = vpop.f32.mrb[7].mxu0  ;;  %4856 = vmatprep.subr.bf16.mxu0 %v6649_v41  ;;  %v271_v15 = vadd.f32 %v270_v2, %v53_v33  ;;  %v454_v41 = vadd.f32 %v453_v25, %v165_v20  ;;  %v70_v58 = vld [vmem:[%s10081_s0 + $0x188] sm:$0xff]  ;;  %v139_v22 = vld [vmem:[%s10081_s0 + $0x3b0] sm:$0xff] }
 0x16b   :  { %4894 = vmatpush1.bf16.msra.mxu1 %v6638_v49  ;;  %v126_v49 = vld [vmem:[%s10081_s0 + $0x348] sm:$0xff]  ;;  %v471_v52 = vadd.f32 %v470_v30, %v469_v39  ;;  %v310_v61 = vadd.f32 %v309_v43, %v56_v42 }
 0x16c   :  { %v272_v24 = vadd.f32 %v271_v15, %v67_v6  ;;  %4895 = vmatprep.subr.bf16.mxu1 %v6646_v26  ;;  %v3373_v36 = vpop.f32.mrb[4].mxu1  ;;  %v154_v26 = vld [vmem:[%s10081_s0 + $0x428] sm:$0xff]  ;;  %v455_v60 = vadd.f32 %v454_v41, %v179_v40  ;;  %v168_v6 = vld [vmem:[%s10081_s0 + $0x498] sm:$0xff] }
 0x16d   :  { %4857 = vmatpush1.bf16.msra.mxu0 %v6647_v45  ;;  %v9079_v44 = vadd.f32 %v3373_v36, %v8974_v50  ;;  %v3375_v45 = vpop.f32.mrb[5].mxu1  ;;  %v140_v50 = vld [vmem:[%s10081_s0 + $0x3b8] sm:$0xff]  ;;  %v210_v33 = vld [vmem:[%s10081_s0 + $0x5e8] sm:$0x1]  ;;  %v6673_v2 = vld [vmem:[%s10084_s3 + $0x2a4] ss:$8 sps:$4 sm:$0xff]   ;;  %v311_v8 = vadd.f32 %v310_v61, %v70_v58 }
 0x16e   :  { %4858 = vmatprep.subr.bf16.mxu0 %v6655_v62  ;;  %v273_v34 = vadd.f32 %v272_v24, %v81_v19  ;;  %v9094_v51 = vadd.f32 %v3375_v45, %v8986_v57  ;;  %v3377_v57 = vpop.f32.mrb[6].mxu1  ;;  %v491_v62 = vadd.f32 %v140_v50, %v126_v49  ;;  %v9129_v9 = vsel %vm222_vm0, %v210_v33, 0.0  ;;  %v182_v20 = vld [vmem:[%s10081_s0 + $0x508] sm:$0xff]  ;;  %v6679_v41 = vld [vmem:[%s10084_s3 + $0x2b4] ss:$8 sps:$4 sm:$0xff]  }
 0x16f   :  { %4896 = vmatpush1.bf16.msra.mxu1 %v6644_v10  ;;  %v3378_v0 = vpop.f32.mrb[7].mxu1  ;;  %v41_v10 = vld [vmem:[%s10081_s0 + $0xa0] sm:$0xff]  ;;  %v456_v13 = vadd.f32 %v455_v60, %v193_v53  ;;  %v312_v30 = vadd.f32 %v311_v8, %v84_v5  ;;  %v195_v61 = vld [vmem:[%s10081_s0 + $0x570] sm:$0xff] }
 0x170   :  { %v274_v54 = vadd.f32 %v273_v34, %v95_v23  ;;  %4897 = vmatprep.subr.bf16.mxu1 %v6652_v17  ;;  %v492_v15 = vadd.f32 %v491_v62, %v154_v26  ;;  %v111_v17 = vld [vmem:[%s10081_s0 + $0x2d0] sm:$0x1]  ;;  %v296_v23 = vadd.f32 %v41_v10, %v27_v63  ;;  %v6671_v25 = vld [vmem:[%s10084_s3 + $0x2a0] ss:$8 sps:$4 sm:$0xff]   ;;  %v6670_v34 = vld [vmem:[%s10084_s3 + $0x394] ss:$8 sps:$4 sm:$0xff]  }
 0x171   :  { %4859 = vmatpush1.bf16.msra.mxu0 %v6653_v3  ;;  %v472_v3 = vrot.slane %v471_v52, 4  ;;  %v9156_v24 = vsel %vm222_vm0, %v111_v17, 0.0  ;;  %v458_v29 = vadd.f32 %v457_v55, %v456_v13  ;;  %v6662_v35 = vld [vmem:[%s10084_s3 + $0x380] ss:$8 sps:$4 sm:$0xff]   ;;  %v313_v45 = vadd.f32 %v312_v30, %v98_v14  ;;  %v6685_v5 = vld [vmem:[%s10084_s3 + $0x2c4] ss:$8 sps:$4 sm:$0xff]  }
 0x172   :  { %4860 = vmatprep.subr.bf16.mxu0 %v6661_v21  ;;  %v276_v4 = vadd.f32 %v275_v32, %v274_v54  ;;  %v125_v21 = vld [vmem:[%s10081_s0 + $0x340] sm:$0xff]  ;;  %v493_v31 = vadd.f32 %v492_v15, %v168_v6  ;;  %v297_v39 = vadd.f32 %v296_v23, %v55_v16 }
 0x173   :  { %4898 = vmatpush1.bf16.msra.mxu1 %v6650_v37  ;;  %v473_v18 = vadd.f32 %v472_v3, %v471_v52  ;;  %v69_v32 = vld [vmem:[%s10081_s0 + $0x180] sm:$0xff]  ;;  %v478_v40 = vadd.f32 %v139_v22, %v125_v21  ;;  %v459_v43 = vrot.slane %v458_v29, 4  ;;  %v315_v26 = vadd.f32 %v314_v7, %v313_v45 }
 0x174   :  { %v277_v19 = vrot.slane %v276_v4, 4  ;;  %4899 = vmatprep.subr.bf16.mxu1 %v6658_v46  ;;  %v494_v46 = vadd.f32 %v493_v31, %v182_v20  ;;  %v97_v52 = vld [vmem:[%s10081_s0 + $0x260] sm:$0xff]  ;;  %v298_v53 = vadd.f32 %v297_v39, %v69_v32  ;;  %v6680_v39 = vld [vmem:[%s10084_s3 + $0x3b0] ss:$8 sps:$4 sm:$0xff]  }
 0x175   :  { %4861 = vmatpush1.bf16.msra.mxu0 %v6659_v27  ;;  %v293_v27 = vadd.f32 %v292_v12, %v291_v56  ;;  %v474_v36 = vrot.slane %v473_v18, 2  ;;  %v479_v54 = vadd.f32 %v478_v40, %v153_v28  ;;  %v460_v58 = vadd.f32 %v459_v43, %v458_v29  ;;  %v6677_v56 = vld [vmem:[%s10084_s3 + $0x2b0] ss:$8 sps:$4 sm:$0xff]   ;;  %v6676_v12 = vld [vmem:[%s10084_s3 + $0x3a4] ss:$8 sps:$4 sm:$0xff]  }
 0x176   :  { %4862 = vmatprep.subr.bf16.mxu0 %v6667_v38  ;;  %v278_v37 = vadd.f32 %v277_v19, %v276_v4  ;;  %v196_v38 = vld [vmem:[%s10081_s0 + $0x578] sm:$0xff]  ;;  %v299_v62 = vadd.f32 %v298_v53, %v83_v47  ;;  %v209_v15 = vld [vmem:[%s10081_s0 + $0x5e0] sm:$0x1] }
 0x177   :  { %v294_v42 = vrot.slane %v293_v27, 1  ;;  %4900 = vmatpush1.bf16.msra.mxu1 %v6656_v1  ;;  %v475_v49 = vadd.f32 %v474_v36, %v473_v18  ;;  %v495_v57 = vadd.f32 %v494_v46, %v196_v38  ;;  %v480_v63 = vadd.f32 %v479_v54, %v167_v48  ;;  %v6668_v4 = vld [vmem:[%s10084_s3 + $0x390] ss:$8 sps:$4 sm:$0xff]   ;;  %v6674_v16 = vld [vmem:[%s10084_s3 + $0x3a0] ss:$8 sps:$4 sm:$0xff]  }
 0x178   :  { %v279_v50 = vrot.slane %v278_v37, 2  ;;  %4901 = vmatprep.subr.bf16.mxu1 %v6664_v11  ;;  %v461_v1 = vrot.slane %v460_v58, 2  ;;  %v300_v10 = vadd.f32 %v299_v62, %v97_v52  ;;  %v6683_v21 = vld [vmem:[%s10084_s3 + $0x2c0] ss:$8 sps:$4 sm:$0xff]   ;;  %v6691_v29 = vld [vmem:[%s10084_s3 + $0x2d4] ss:$8 sps:$4 sm:$0xff]  }
 0x179   :  { %4863 = vmatpush1.bf16.msra.mxu0 %v6665_v59  ;;  %v295_v55 = vadd.f32 %v294_v42, %v293_v27  ;;  %v181_v59 = vld [vmem:[%s10081_s0 + $0x500] sm:$0xff]  ;;  %v476_v60 = vrot.slane %v475_v49, 1  ;;  %v497_v3 = vadd.f32 %v9129_v9, %v495_v57  ;;  %v6682_v28 = vld [vmem:[%s10084_s3 + $0x3b4] ss:$8 sps:$4 sm:$0xff]   ;;  %v6689_v42 = vld [vmem:[%s10084_s3 + $0x2d0] ss:$8 sps:$4 sm:$0xff]  }
 0x17a   :  { %4864 = vmatprep.subr.bf16.mxu0 %v6673_v2  ;;  %v280_v33 = vadd.f32 %v279_v50, %v278_v37  ;;  %v316_v2 = vrot.slane %v315_v26, 4  ;;  %v481_v11 = vadd.f32 %v480_v63, %v181_v59  ;;  %v462_v13 = vadd.f32 %v461_v1, %v460_v58  ;;  %v6697_v48 = vld [vmem:[%s10084_s3 + $0x2e4] ss:$8 sps:$4 sm:$0xff]   ;;  %v6703_v63 = vld [vmem:[%s10084_s3 + $0x2f4] ss:$8 sps:$4 sm:$0xff]  }
 0x17b   :  { %v588_v0 = vmul.f32 0.020408163, %v295_v55  ;;  %4902 = vmatpush1.bf16.msra.mxu1 %v6662_v35  ;;  %v477_v6 = vadd.f32 %v476_v60, %v475_v49  ;;  %v498_v8 = vrot.slane %v497_v3, 4  ;;  %v302_v19 = vadd.f32 %v9156_v24, %v300_v10  ;;  %v6688_v52 = vld [vmem:[%s10084_s3 + $0x3c4] ss:$8 sps:$4 sm:$0xff]  }
 0x17c   :  { %v281_v7 = vrot.slane %v280_v33, 1  ;;  %4903 = vmatprep.subr.bf16.mxu1 %v6670_v34  ;;  %v317_v14 = vadd.f32 %v316_v2, %v315_v26  ;;  %v482_v20 = vadd.f32 %v481_v11, %v195_v61  ;;  %v463_v23 = vrot.slane %v462_v13, 1  ;;  %v6686_v26 = vld [vmem:[%s10084_s3 + $0x3c0] ss:$8 sps:$4 sm:$0xff]   ;;  %v6694_v2 = vld [vmem:[%s10084_s3 + $0x3d4] ss:$8 sps:$4 sm:$0xff]  }
 0x17d   :  { %4865 = vmatpush1.bf16.msra.mxu0 %v6671_v25  ;;  %v1288_v9 = vpack.c.bf16 %v588_v0, %v588_v0  ;;  %v602_v17 = vmul.f32 0.020408163, %v477_v6  ;;  %v499_v27 = vadd.f32 %v498_v8, %v497_v3  ;;  %v303_v32 = vrot.slane %v302_v19, 4  ;;  %v6701_v10 = vld [vmem:[%s10084_s3 + $0x2f0] ss:$8 sps:$4 sm:$0xff]  }
 0x17e   :  { %4866 = vmatprep.subr.bf16.mxu0 %v6679_v41  ;;  %v282_v18 = vadd.f32 %v281_v7, %v280_v33  ;;  %v318_v25 = vrot.slane %v317_v14, 2  ;;  %v483_v24 = vsel %vm222_vm0, %v209_v15, 0.0  ;;  %v464_v35 = vadd.f32 %v463_v23, %v462_v13  ;;  %v6709_v13 = vld [vmem:[%s10084_s3 + $0x404] ss:$8 sps:$4 sm:$0xff]  }
 0x17f   :  { %v3577_v22 = vunpack.c.l.b16 %v1288_v9  ;;  %4904 = vmatpush1.bf16.msra.mxu1 %v6668_v4  ;;  %v1302_v30 = vpack.c.bf16 %v602_v17, %v602_v17  ;;  %v500_v37 = vrot.slane %v499_v27, 2  ;;  %v484_v38 = vadd.f32 %v483_v24, %v482_v20  ;;  %v6700_v15 = vld [vmem:[%s10084_s3 + $0x3e4] ss:$8 sps:$4 sm:$0xff]   ;;  %v6698_v20 = vld [vmem:[%s10084_s3 + $0x3e0] ss:$8 sps:$4 sm:$0xff]  }
 0x180   :  { %v587_v31 = vmul.f32 0.020408163, %v282_v18  ;;  %4905 = vmatprep.subr.bf16.mxu1 %v6676_v12  ;;  %v319_v36 = vadd.f32 %v318_v25, %v317_v14  ;;  %v304_v41 = vadd.f32 %v303_v32, %v302_v19  ;;  %v601_v43 = vmul.f32 0.020408163, %v464_v35  ;;  %v6713_v32 = vld [vmem:[%s10084_s3 + $0x410] ss:$8 sps:$4 sm:$0xff]  }
 0x181   :  { %4867 = vmatpush1.bf16.msra.mxu0 %v6677_v56  ;;  %v3591_v40 = vunpack.c.l.b16 %v1302_v30  ;;  %v501_v46 = vadd.f32 %v500_v37, %v499_v27  ;;  %v485_v47 = vrot.slane %v484_v38, 4  ;;  %v6695_v56 = vld [vmem:[%s10084_s3 + $0x2e0] ss:$8 sps:$4 sm:$0xff]   ;;  %v6715_v27 = vld [vmem:[%s10084_s3 + $0x414] ss:$8 sps:$4 sm:$0xff]  }
 0x182   :  { %4868 = vmatprep.subr.bf16.mxu0 %v6685_v5  ;;  %v1287_v34 = vpack.c.bf16 %v587_v31, %v587_v31  ;;  %v320_v45 = vrot.slane %v319_v36, 1  ;;  %v305_v50 = vrot.slane %v304_v41, 2  ;;  %v1301_v54 = vpack.c.bf16 %v601_v43, %v601_v43  ;;  %v6692_v5 = vld [vmem:[%s10084_s3 + $0x3d0] ss:$8 sps:$4 sm:$0xff]   ;;  %v6721_v35 = vld [vmem:[%s10084_s3 + $0x424] ss:$8 sps:$4 sm:$0xff]  }
 0x183   :  { %4906 = vmatpush1.bf16.msra.mxu1 %v6674_v16  ;;  %v3605_v49 = vsel %vm1887_vm1, %v3591_v40, %v3577_v22  ;;  %v502_v58 = vrot.slane %v501_v46, 1  ;;  %v486_v59 = vadd.f32 %v485_v47, %v484_v38  ;;  %v6704_v24 = vld [vmem:[%s10084_s3 + $0x3f0] ss:$8 sps:$4 sm:$0xff]   ;;  %v6710_v40 = vld [vmem:[%s10084_s3 + $0x500] ss:$8 sps:$4 sm:$0xff]  }
 0x184   :  { %4907 = vmatprep.subr.bf16.mxu1 %v6682_v28  ;;  %v3619_v53 = vpack.c.b16 %v3605_v49, %v3605_v49  ;;  %v321_v55 = vadd.f32 %v320_v45, %v319_v36  ;;  %v306_v57 = vadd.f32 %v305_v50, %v304_v41  ;;  %v3576_v60 = vunpack.c.l.b16 %v1287_v34  ;;  %v6712_v36 = vld [vmem:[%s10084_s3 + $0x504] ss:$8 sps:$4 sm:$0xff]   ;;  %v6727_v34 = vld [vmem:[%s10084_s3 + $0x434] ss:$8 sps:$4 sm:$0xff]   ;;  %v6716_v43 = vld [vmem:[%s10084_s3 + $0x510] ss:$8 sps:$4 sm:$0xff]  }
 0x185   :  { %4869 = vmatpush1.bf16.msra.mxu0 %v6683_v21  ;;  %v3590_v33 = vunpack.c.l.b16 %v1301_v54  ;;  %v503_v61 = vadd.f32 %v502_v58, %v501_v46  ;;  %v487_v1 = vrot.slane %v486_v59, 2  ;;  %v6707_v21 = vld [vmem:[%s10084_s3 + $0x400] ss:$8 sps:$4 sm:$0xff]   ;;  %v6718_v41 = vld [vmem:[%s10084_s3 + $0x514] ss:$8 sps:$4 sm:$0xff]  }
 0x186   :  { %4870 = vmatprep.subr.bf16.mxu0 %v6691_v29  ;;  %4876 = vmatprep.mubr.bf16.mxu0 %v3619_v53  ;;  %v590_v62 = vmul.f32 0.020408163, %v321_v55  ;;  %v307_v0 = vrot.slane %v306_v57, 1  ;;  %v6706_v29 = vld [vmem:[%s10084_s3 + $0x3f4] ss:$8 sps:$4 sm:$0xff]   ;;  %v30_v53 = vld [vmem:[%s10081_s0 + $0x48] sm:$0xff] }
 0x187   :  { %4908 = vmatpush1.bf16.msra.mxu1 %v6680_v39  ;;  %v604_v3 = vmul.f32 0.020408163, %v503_v61  ;;  %v488_v7 = vadd.f32 %v487_v1, %v486_v59  ;;  %v3604_v11 = vsel %vm1887_vm1, %v3590_v33, %v3576_v60  ;;  %v6719_v39 = vld [vmem:[%s10084_s3 + $0x420] ss:$8 sps:$4 sm:$0xff]   ;;  %v6733_v45 = vld [vmem:[%s10084_s3 + $0x444] ss:$8 sps:$4 sm:$0xff]  }
 0x188   :  { %4909 = vmatprep.subr.bf16.mxu1 %v6688_v52  ;;  %v1290_v4 = vpack.c.bf16 %v590_v62, %v590_v62  ;;  %v308_v6 = vadd.f32 %v307_v0, %v306_v57  ;;  %v3618_v17 = vpack.c.b16 %v3604_v11, %v3604_v11  ;;  %v6724_v46 = vld [vmem:[%s10084_s3 + $0x524] ss:$8 sps:$4 sm:$0xff]   ;;  %v6731_v47 = vld [vmem:[%s10084_s3 + $0x440] ss:$8 sps:$4 sm:$0xff]   ;;  %v6739_v49 = vld [vmem:[%s10084_s3 + $0x454] ss:$8 sps:$4 sm:$0xff]  }
 0x189   :  { %4871 = vmatpush1.bf16.msra.mxu0 %v6689_v42  ;;  %v1304_v12 = vpack.c.bf16 %v604_v3, %v604_v3  ;;  %v489_v14 = vrot.slane %v488_v7, 1  ;;  %v6725_v42 = vld [vmem:[%s10084_s3 + $0x430] ss:$8 sps:$4 sm:$0xff]   ;;  %v6730_v50 = vld [vmem:[%s10084_s3 + $0x534] ss:$8 sps:$4 sm:$0xff]   ;;  %v142_v62 = vld [vmem:[%s10081_s0 + $0x3c8] sm:$0xff] }
 0x18a   :  { %4872 = vmatprep.subr.bf16.mxu0 %v6697_v48  ;;  %v3579_v9 = vunpack.c.l.b16 %v1290_v4  ;;  %v589_v8 = vmul.f32 0.020408163, %v308_v6  ;;  %v6722_v48 = vld [vmem:[%s10084_s3 + $0x520] ss:$8 sps:$4 sm:$0xff]   ;;  %v6728_v52 = vld [vmem:[%s10084_s3 + $0x530] ss:$8 sps:$4 sm:$0xff]  }
 0x18b   :  { %4910 = vmatpush1.bf16.msra.mxu1 %v6686_v26  ;;  %v3593_v16 = vunpack.c.l.b16 %v1304_v12  ;;  %v490_v18 = vadd.f32 %v489_v14, %v488_v7  ;;  %v44_v54 = vld [vmem:[%s10081_s0 + $0xb8] sm:$0xff]  ;;  %v6736_v55 = vld [vmem:[%s10084_s3 + $0x544] ss:$8 sps:$4 sm:$0xff]   ;;  %v6743_v61 = vld [vmem:[%s10084_s3 + $0x460] ss:$8 sps:$4 sm:$0xff]  }
 0x18c   :  { %4911 = vmatprep.subr.bf16.mxu1 %v6694_v2  ;;  %v1289_v19 = vpack.c.bf16 %v589_v8, %v589_v8  ;;  %v6737_v58 = vld [vmem:[%s10084_s3 + $0x450] ss:$8 sps:$4 sm:$0xff]   ;;  %v58_v26 = vld [vmem:[%s10081_s0 + $0x128] sm:$0xff]  ;;  %v335_v57 = vadd.f32 %v44_v54, %v30_v53  ;;  %v6751_v8 = vld [vmem:[%s10084_s3 + $0x474] ss:$8 sps:$4 sm:$0xff]  }
 0x18d   :  { %4873 = vmatpush1.bf16.msra.mxu0 %v6695_v56  ;;  %v3607_v22 = vsel %vm1887_vm1, %v3593_v16, %v3579_v9  ;;  %v603_v25 = vmul.f32 0.020408163, %v490_v18  ;;  %v6745_v59 = vld [vmem:[%s10084_s3 + $0x464] ss:$8 sps:$4 sm:$0xff]   ;;  %v72_v56 = vld [vmem:[%s10081_s0 + $0x198] sm:$0xff] }
 0x18e   :  { %4874 = vmatprep.subr.bf16.mxu0 %v6703_v63  ;;  %v3621_v23 = vpack.c.b16 %v3607_v22, %v3607_v22  ;;  %v3578_v31 = vunpack.c.l.b16 %v1289_v19  ;;  %v128_v60 = vld [vmem:[%s10081_s0 + $0x358] sm:$0xff]  ;;  %v336_v0 = vadd.f32 %v335_v57, %v58_v26  ;;  %v6734_v1 = vld [vmem:[%s10084_s3 + $0x540] ss:$8 sps:$4 sm:$0xff]   ;;  %v71_v22 = vld [vmem:[%s10081_s0 + $0x190] sm:$0xff] }
 0x18f   :  { %4912 = vmatpush1.bf16.msra.mxu1 %v6692_v5  ;;  %v1303_v30 = vpack.c.bf16 %v603_v25, %v603_v25  ;;  %v156_v63 = vld [vmem:[%s10081_s0 + $0x438] sm:$0xff]  ;;  %v86_v4 = vld [vmem:[%s10081_s0 + $0x208] sm:$0xff]  ;;  %v517_v7 = vadd.f32 %v142_v62, %v128_v60  ;;  %v29_v9 = vld [vmem:[%s10081_s0 + $0x40] sm:$0xff] }
 0x190   :  { %4913 = vmatprep.subr.bf16.mxu1 %v6700_v15  ;;  %4917 = vmatprep.mubr.bf16.mxu1 %v3621_v23  ;;  %v114_v5 = vld [vmem:[%s10081_s0 + $0x2e8] sm:$0x1]  ;;  %v337_v12 = vadd.f32 %v336_v0, %v72_v56  ;;  %v100_v15 = vld [vmem:[%s10081_s0 + $0x278] sm:$0xff]  ;;  %v127_v23 = vld [vmem:[%s10081_s0 + $0x350] sm:$0xff] }
 0x191   :  { %4875 = vmatpush1.bf16.msra.mxu0 %v6701_v10  ;;  %v3592_v28 = vunpack.c.l.b16 %v1303_v30  ;;  %v170_v6 = vld [vmem:[%s10081_s0 + $0x4a8] sm:$0xff]  ;;  %v184_v16 = vld [vmem:[%s10081_s0 + $0x518] sm:$0xff]  ;;  %v141_v25 = vld [vmem:[%s10081_s0 + $0x3c0] sm:$0xff]  ;;  %v340_v30 = vsel %vm222_vm0, %v114_v5, 0.0 }
 0x192   :  { %4926 = vmatprep.subr.bf16.mxu0 %v6709_v13  ;;  %v43_v13 = vld [vmem:[%s10081_s0 + $0xb0] sm:$0xff]  ;;  %v6746_v54 = vld [vmem:[%s10084_s3 + $0x560] ss:$8 sps:$4 sm:$0xff]   ;;  %v60_v56 = vld [vmem:[%s10081_s0 + $0x138] sm:$0xff] }
 0x193   :  { %4914 = vmatpush1.bf16.msra.mxu1 %v6698_v20  ;;  %v3606_v37 = vsel %vm1887_vm1, %v3592_v28, %v3578_v31  ;;  %v322_v18 = vadd.f32 %v43_v13, %v29_v9  ;;  %v6749_v19 = vld [vmem:[%s10084_s3 + $0x470] ss:$8 sps:$4 sm:$0xff]   ;;  %v198_v20 = vld [vmem:[%s10081_s0 + $0x588] sm:$0xff]  ;;  %v6754_v62 = vld [vmem:[%s10084_s3 + $0x574] ss:$8 sps:$4 sm:$0xff]  }
 0x194   :  { %4877 = vmatmul.mubr.bf16.vlgmr.msra.gmra.mrb[20].mxu0 %v3618_v17  ;;  %4915 = vmatprep.subr.bf16.mxu1 %v6706_v29  ;;  %v3620_v38 = vpack.c.b16 %v3606_v37, %v3606_v37  ;;  %v518_v17 = vadd.f32 %v517_v7, %v156_v63  ;;  %v212_v29 = vld [vmem:[%s10081_s0 + $0x5f8] sm:$0x1]  ;;  %v183_v26 = vld [vmem:[%s10081_s0 + $0x510] sm:$0xff]  ;;  %v197_v5 = vld [vmem:[%s10081_s0 + $0x580] sm:$0xff] }
 0x195   :  { %4927 = vmatpush1.bf16.msra.mxu0 %v6707_v21  ;;  %v338_v21 = vadd.f32 %v337_v12, %v86_v4  ;;  %v116_v0 = vld [vmem:[%s10081_s0 + $0x2f8] sm:$0x1] }
 0x196   :  { %4928 = vmatprep.subr.bf16.mxu0 %v6715_v27  ;;  %v6740_v27 = vld [vmem:[%s10084_s3 + $0x550] ss:$8 sps:$4 sm:$0xff]   ;;  %v519_v31 = vadd.f32 %v518_v17, %v170_v6 }
 0x197   :  { %4916 = vmatpush1.bf16.msra.mxu1 %v6704_v24  ;;  %v155_v24 = vld [vmem:[%s10081_s0 + $0x430] sm:$0xff]  ;;  %v339_v37 = vadd.f32 %v338_v21, %v100_v15  ;;  %v88_v21 = vld [vmem:[%s10081_s0 + $0x218] sm:$0xff] }
 0x198   :  { %4967 = vmatprep.subr.bf16.mxu1 %v6712_v36  ;;  %v6748_v36 = vld [vmem:[%s10084_s3 + $0x564] ss:$8 sps:$4 sm:$0xff]   ;;  %v6761_v12 = vld [vmem:[%s10084_s3 + $0x490] ss:$8 sps:$4 sm:$0xff]  }
 0x199   :  { %4929 = vmatpush1.bf16.msra.mxu0 %v6713_v32  ;;  %v113_v32 = vld [vmem:[%s10081_s0 + $0x2e0] sm:$0x1]  ;;  %v31_v15 = vld [vmem:[%s10081_s0 + $0x50] sm:$0xff] }
 0x19a   :  { %4930 = vmatprep.subr.bf16.mxu0 %v6721_v35  ;;  %4918 = vmatmul.mubr.bf16.vlgmr.msra.gmra.mrb[20].mxu1 %v3620_v38  ;;  %v504_v35 = vadd.f32 %v141_v25, %v127_v23  ;;  %v85_v38 = vld [vmem:[%s10081_s0 + $0x200] sm:$0xff]  ;;  %v6752_v17 = vld [vmem:[%s10084_s3 + $0x570] ss:$8 sps:$4 sm:$0xff]   ;;  %v366_v23 = vsel %vm222_vm0, %v116_v0, 0.0 }
 0x19b   :  { %4968 = vmatpush1.bf16.msra.mxu1 %v6710_v40  ;;  %v6757_v40 = vld [vmem:[%s10084_s3 + $0x484] ss:$8 sps:$4 sm:$0xff]   ;;  %v171_v0 = vld [vmem:[%s10081_s0 + $0x4b0] sm:$0xff] }
 0x19c   :  { %4969 = vmatprep.subr.bf16.mxu1 %v6718_v41  ;;  %v99_v41 = vld [vmem:[%s10081_s0 + $0x270] sm:$0xff] }
 0x19d   :  { %4931 = vmatpush1.bf16.msra.mxu0 %v6719_v39  ;;  %v169_v39 = vld [vmem:[%s10081_s0 + $0x4a0] sm:$0xff] }
 0x19e   :  { %4932 = vmatprep.subr.bf16.mxu0 %v6727_v34  ;;  %v520_v34 = vadd.f32 %v519_v31, %v184_v16 }
 0x19f   :  { %4970 = vmatpush1.bf16.msra.mxu1 %v6716_v43  ;;  %v505_v43 = vadd.f32 %v504_v35, %v155_v24  ;;  %v59_v35 = vld [vmem:[%s10081_s0 + $0x130] sm:$0xff] }
 0x1a0   :  { %4971 = vmatprep.subr.bf16.mxu1 %v6724_v46  ;;  %v341_v46 = vadd.f32 %v340_v30, %v339_v37 }
 0x1a1   :  { %4933 = vmatpush1.bf16.msra.mxu0 %v6725_v42 }
 0x1a2   :  { %4934 = vmatprep.subr.bf16.mxu0 %v6733_v45  ;;  %v6755_v45 = vld [vmem:[%s10084_s3 + $0x480] ss:$8 sps:$4 sm:$0xff]   ;;  %v342_v63 = vrot.slane %v341_v46, 4 }
 0x1a3   :  { %4972 = vmatpush1.bf16.msra.mxu1 %v6722_v48  ;;  %v211_v48 = vld [vmem:[%s10081_s0 + $0x5f0] sm:$0x1] }
 0x1a4   :  { %4973 = vmatprep.subr.bf16.mxu1 %v6730_v50  ;;  %v32_v50 = vld [vmem:[%s10081_s0 + $0x58] sm:$0xff]  ;;  %v509_v7 = vsel %vm222_vm0, %v211_v48, 0.0  ;;  %v343_v9 = vadd.f32 %v342_v63, %v341_v46  ;;  %v87_v63 = vld [vmem:[%s10081_s0 + $0x210] sm:$0xff] }
 0x1a5   :  { %4935 = vmatpush1.bf16.msra.mxu0 %v6731_v47  ;;  %v522_v47 = vsel %vm222_vm0, %v212_v29, 0.0  ;;  %v6760_v29 = vld [vmem:[%s10084_s3 + $0x584] ss:$8 sps:$4 sm:$0xff]  }
 0x1a6   :  { %4936 = vmatprep.subr.bf16.mxu0 %v6739_v49  ;;  %v327_v49 = vsel %vm222_vm0, %v113_v32, 0.0  ;;  %v344_v30 = vrot.slane %v343_v9, 2  ;;  %v102_v32 = vld [vmem:[%s10081_s0 + $0x288] sm:$0xff] }
 0x1a7   :  { %v3414_v33 = vpop.f32.mrb[8].mxu0  ;;  %4974 = vmatpush1.bf16.msra.mxu1 %v6728_v52  ;;  %v46_v52 = vld [vmem:[%s10081_s0 + $0xc8] sm:$0xff] }
 0x1a8   :  { %v9364_v2 = vadd.f32 %v3414_v33, %v9079_v44  ;;  %v3416_v3 = vpop.f32.mrb[9].mxu0  ;;  %v6742_v44 = vld [vmem:[%s10084_s3 + $0x554] ss:$8 sps:$4 sm:$0xff]   ;;  %4975 = vmatprep.subr.bf16.mxu1 %v6736_v55  ;;  %v361_v60 = vadd.f32 %v46_v52, %v32_v50  ;;  %v157_v50 = vld [vmem:[%s10081_s0 + $0x440] sm:$0xff] }
 0x1a9   :  { %v9376_v10 = vadd.f32 %v3416_v3, %v9094_v51  ;;  %v3418_v11 = vpop.f32.mrb[10].mxu0  ;;  %4937 = vmatpush1.bf16.msra.mxu0 %v6737_v58  ;;  %v57_v51 = vld [vmem:[%s10081_s0 + $0x120] sm:$0xff]  ;;  %v6763_v55 = vld [vmem:[%s10084_s3 + $0x494] ss:$8 sps:$4 sm:$0xff]   ;;  %v521_v58 = vadd.f32 %v520_v34, %v198_v20 }
 0x1aa   :  { %v3419_v14 = vpop.f32.mrb[11].mxu0  ;;  %4938 = vmatprep.subr.bf16.mxu0 %v6745_v59  ;;  %v323_v28 = vadd.f32 %v322_v18, %v57_v51  ;;  %v506_v59 = vadd.f32 %v505_v43, %v169_v39  ;;  %v74_v11 = vld [vmem:[%s10081_s0 + $0x1a8] sm:$0xff]  ;;  %v143_v34 = vld [vmem:[%s10081_s0 + $0x3d0] sm:$0xff] }
 0x1ab   :  { %4976 = vmatpush1.bf16.msra.mxu1 %v6734_v1  ;;  %v130_v1 = vld [vmem:[%s10081_s0 + $0x368] sm:$0xff]  ;;  %v523_v4 = vadd.f32 %v522_v47, %v521_v58  ;;  %v362_v14 = vadd.f32 %v361_v60, %v60_v56 }
 0x1ac   :  { %v324_v42 = vadd.f32 %v323_v28, %v71_v22  ;;  %4977 = vmatprep.subr.bf16.mxu1 %v6742_v44  ;;  %v3455_v53 = vpop.f32.mrb[8].mxu1  ;;  %v158_v44 = vld [vmem:[%s10081_s0 + $0x448] sm:$0xff]  ;;  %v507_v13 = vadd.f32 %v506_v59, %v183_v26  ;;  %v172_v22 = vld [vmem:[%s10081_s0 + $0x4b8] sm:$0xff] }
 0x1ad   :  { %4939 = vmatpush1.bf16.msra.mxu0 %v6743_v61  ;;  %v9469_v33 = vadd.f32 %v3455_v53, %v9364_v2  ;;  %v3457_v61 = vpop.f32.mrb[9].mxu1  ;;  %v144_v2 = vld [vmem:[%s10081_s0 + $0x3d8] sm:$0xff]  ;;  %v214_v51 = vld [vmem:[%s10081_s0 + $0x608] sm:$0x1]  ;;  %v6769_v18 = vld [vmem:[%s10084_s3 + $0x4a4] ss:$8 sps:$4 sm:$0xff]   ;;  %v363_v24 = vadd.f32 %v362_v14, %v74_v11 }
 0x1ae   :  { %4940 = vmatprep.subr.bf16.mxu0 %v6751_v8  ;;  %v325_v57 = vadd.f32 %v324_v42, %v85_v38  ;;  %v9484_v3 = vadd.f32 %v3457_v61, %v9376_v10  ;;  %v3459_v10 = vpop.f32.mrb[10].mxu1  ;;  %v543_v8 = vadd.f32 %v144_v2, %v130_v1  ;;  %v9519_v25 = vsel %vm222_vm0, %v214_v51, 0.0  ;;  %v186_v39 = vld [vmem:[%s10081_s0 + $0x528] sm:$0xff]  ;;  %v6775_v59 = vld [vmem:[%s10084_s3 + $0x4b4] ss:$8 sps:$4 sm:$0xff]  }
 0x1af   :  { %4978 = vmatpush1.bf16.msra.mxu1 %v6740_v27  ;;  %v3460_v16 = vpop.f32.mrb[11].mxu1  ;;  %v45_v27 = vld [vmem:[%s10081_s0 + $0xc0] sm:$0xff]  ;;  %v508_v31 = vadd.f32 %v507_v13, %v197_v5  ;;  %v364_v47 = vadd.f32 %v363_v24, %v88_v21  ;;  %v199_v14 = vld [vmem:[%s10081_s0 + $0x590] sm:$0xff] }
 0x1b0   :  { %v326_v6 = vadd.f32 %v325_v57, %v99_v41  ;;  %4979 = vmatprep.subr.bf16.mxu1 %v6748_v36  ;;  %v544_v28 = vadd.f32 %v543_v8, %v158_v44  ;;  %v115_v36 = vld [vmem:[%s10081_s0 + $0x2f0] sm:$0x1]  ;;  %v348_v41 = vadd.f32 %v45_v27, %v31_v15  ;;  %v6767_v43 = vld [vmem:[%s10084_s3 + $0x4a0] ss:$8 sps:$4 sm:$0xff]   ;;  %v6766_v57 = vld [vmem:[%s10084_s3 + $0x594] ss:$8 sps:$4 sm:$0xff]  }
 0x1b1   :  { %4941 = vmatpush1.bf16.msra.mxu0 %v6749_v19  ;;  %v524_v19 = vrot.slane %v523_v4, 4  ;;  %v9546_v42 = vsel %vm222_vm0, %v115_v36, 0.0  ;;  %v510_v46 = vadd.f32 %v509_v7, %v508_v31  ;;  %v6758_v52 = vld [vmem:[%s10084_s3 + $0x580] ss:$8 sps:$4 sm:$0xff]   ;;  %v365_v61 = vadd.f32 %v364_v47, %v102_v32  ;;  %v6781_v21 = vld [vmem:[%s10084_s3 + $0x4c4] ss:$8 sps:$4 sm:$0xff]  }
 0x1b2   :  { %4942 = vmatprep.subr.bf16.mxu0 %v6757_v40  ;;  %v328_v20 = vadd.f32 %v327_v49, %v326_v6  ;;  %v129_v40 = vld [vmem:[%s10081_s0 + $0x360] sm:$0xff]  ;;  %v545_v48 = vadd.f32 %v544_v28, %v172_v22  ;;  %v349_v58 = vadd.f32 %v348_v41, %v59_v35 }
 0x1b3   :  { %4980 = vmatpush1.bf16.msra.mxu1 %v6746_v54  ;;  %v525_v37 = vadd.f32 %v524_v19, %v523_v4  ;;  %v73_v49 = vld [vmem:[%s10081_s0 + $0x1a0] sm:$0xff]  ;;  %v530_v26 = vadd.f32 %v143_v34, %v129_v40  ;;  %v511_v60 = vrot.slane %v510_v46, 4  ;;  %v367_v44 = vadd.f32 %v366_v23, %v365_v61 }
 0x1b4   :  { %v329_v38 = vrot.slane %v328_v20, 4  ;;  %4981 = vmatprep.subr.bf16.mxu1 %v6754_v62  ;;  %v546_v62 = vadd.f32 %v545_v48, %v186_v39  ;;  %v101_v4 = vld [vmem:[%s10081_s0 + $0x280] sm:$0xff]  ;;  %v350_v5 = vadd.f32 %v349_v58, %v73_v49  ;;  %v6776_v58 = vld [vmem:[%s10084_s3 + $0x5b0] ss:$8 sps:$4 sm:$0xff]  }
 0x1b5   :  { %4943 = vmatpush1.bf16.msra.mxu0 %v6755_v45  ;;  %v345_v45 = vadd.f32 %v344_v30, %v343_v9  ;;  %v526_v53 = vrot.slane %v525_v37, 2  ;;  %v531_v6 = vadd.f32 %v530_v26, %v157_v50  ;;  %v512_v11 = vadd.f32 %v511_v60, %v510_v46  ;;  %v6773_v9 = vld [vmem:[%s10084_s3 + $0x4b0] ss:$8 sps:$4 sm:$0xff]   ;;  %v6772_v30 = vld [vmem:[%s10084_s3 + $0x5a4] ss:$8 sps:$4 sm:$0xff]  }
 0x1b6   :  { %4944 = vmatprep.subr.bf16.mxu0 %v6763_v55  ;;  %v330_v54 = vadd.f32 %v329_v38, %v328_v20  ;;  %v200_v55 = vld [vmem:[%s10081_s0 + $0x598] sm:$0xff]  ;;  %v351_v8 = vadd.f32 %v350_v5, %v87_v63  ;;  %v213_v28 = vld [vmem:[%s10081_s0 + $0x600] sm:$0x1] }
 0x1b7   :  { %v346_v56 = vrot.slane %v345_v45, 1  ;;  %4982 = vmatpush1.bf16.msra.mxu1 %v6752_v17  ;;  %v527_v1 = vadd.f32 %v526_v53, %v525_v37  ;;  %v547_v10 = vadd.f32 %v546_v62, %v200_v55  ;;  %v532_v15 = vadd.f32 %v531_v6, %v171_v0  ;;  %v6764_v20 = vld [vmem:[%s10084_s3 + $0x590] ss:$8 sps:$4 sm:$0xff]   ;;  %v6770_v35 = vld [vmem:[%s10084_s3 + $0x5a0] ss:$8 sps:$4 sm:$0xff]  }
 0x1b8   :  { %v331_v2 = vrot.slane %v330_v54, 2  ;;  %4983 = vmatprep.subr.bf16.mxu1 %v6760_v29  ;;  %v513_v17 = vrot.slane %v512_v11, 2  ;;  %v352_v27 = vadd.f32 %v351_v8, %v101_v4  ;;  %v6779_v40 = vld [vmem:[%s10084_s3 + $0x4c0] ss:$8 sps:$4 sm:$0xff]   ;;  %v6787_v46 = vld [vmem:[%s10084_s3 + $0x4d4] ss:$8 sps:$4 sm:$0xff]  }
 0x1b9   :  { %4945 = vmatpush1.bf16.msra.mxu0 %v6761_v12  ;;  %v347_v7 = vadd.f32 %v346_v56, %v345_v45  ;;  %v185_v12 = vld [vmem:[%s10081_s0 + $0x520] sm:$0xff]  ;;  %v528_v13 = vrot.slane %v527_v1, 1  ;;  %v549_v19 = vadd.f32 %v9519_v25, %v547_v10  ;;  %v6778_v50 = vld [vmem:[%s10084_s3 + $0x5b4] ss:$8 sps:$4 sm:$0xff]   ;;  %v6785_v56 = vld [vmem:[%s10084_s3 + $0x4d0] ss:$8 sps:$4 sm:$0xff]  }
 0x1ba   :  { %4946 = vmatprep.subr.bf16.mxu0 %v6769_v18  ;;  %v332_v51 = vadd.f32 %v331_v2, %v330_v54  ;;  %v368_v18 = vrot.slane %v367_v44, 4  ;;  %v533_v29 = vadd.f32 %v532_v15, %v185_v12  ;;  %v514_v31 = vadd.f32 %v513_v17, %v512_v11  ;;  %v6793_v0 = vld [vmem:[%s10084_s3 + $0x4e4] ss:$8 sps:$4 sm:$0xff]   ;;  %v6799_v15 = vld [vmem:[%s10084_s3 + $0x4f4] ss:$8 sps:$4 sm:$0xff]  }
 0x1bb   :  { %v592_v16 = vmul.f32 0.020408163, %v347_v7  ;;  %4984 = vmatpush1.bf16.msra.mxu1 %v6758_v52  ;;  %v529_v22 = vadd.f32 %v528_v13, %v527_v1  ;;  %v550_v24 = vrot.slane %v549_v19, 4  ;;  %v354_v38 = vadd.f32 %v9546_v42, %v352_v27  ;;  %v6784_v4 = vld [vmem:[%s10084_s3 + $0x5c4] ss:$8 sps:$4 sm:$0xff]  }
 0x1bc   :  { %v333_v23 = vrot.slane %v332_v51, 1  ;;  %4985 = vmatprep.subr.bf16.mxu1 %v6766_v57  ;;  %v369_v32 = vadd.f32 %v368_v18, %v367_v44  ;;  %v534_v39 = vadd.f32 %v533_v29, %v199_v14  ;;  %v515_v41 = vrot.slane %v514_v31, 1  ;;  %v6782_v44 = vld [vmem:[%s10084_s3 + $0x5c0] ss:$8 sps:$4 sm:$0xff]   ;;  %v6790_v18 = vld [vmem:[%s10084_s3 + $0x5d4] ss:$8 sps:$4 sm:$0xff]  }
 0x1bd   :  { %4947 = vmatpush1.bf16.msra.mxu0 %v6767_v43  ;;  %v1292_v25 = vpack.c.bf16 %v592_v16, %v592_v16  ;;  %v606_v36 = vmul.f32 0.020408163, %v529_v22  ;;  %v551_v45 = vadd.f32 %v550_v24, %v549_v19  ;;  %v355_v49 = vrot.slane %v354_v38, 4  ;;  %v6797_v27 = vld [vmem:[%s10084_s3 + $0x4f0] ss:$8 sps:$4 sm:$0xff]  }
 0x1be   :  { %4948 = vmatprep.subr.bf16.mxu0 %v6775_v59  ;;  %v334_v37 = vadd.f32 %v333_v23, %v332_v51  ;;  %v370_v43 = vrot.slane %v369_v32, 2  ;;  %v535_v42 = vsel %vm222_vm0, %v213_v28, 0.0  ;;  %v516_v52 = vadd.f32 %v515_v41, %v514_v31  ;;  %v6805_v31 = vld [vmem:[%s10084_s3 + $0x604] ss:$8 sps:$4 sm:$0xff]   ;;  %v6802_v41 = vld [vmem:[%s10084_s3 + $0x5f4] ss:$8 sps:$4 sm:$0xff]  }
 0x1bf   :  { %v3581_v34 = vunpack.c.l.b16 %v1292_v25  ;;  %4986 = vmatpush1.bf16.msra.mxu1 %v6764_v20  ;;  %v1306_v47 = vpack.c.bf16 %v606_v36, %v606_v36  ;;  %v552_v54 = vrot.slane %v551_v45, 2  ;;  %v536_v55 = vadd.f32 %v535_v42, %v534_v39  ;;  %v6796_v28 = vld [vmem:[%s10084_s3 + $0x5e4] ss:$8 sps:$4 sm:$0xff]   ;;  %v6794_v36 = vld [vmem:[%s10084_s3 + $0x5e0] ss:$8 sps:$4 sm:$0xff]  }
 0x1c0   :  { %v591_v48 = vmul.f32 0.020408163, %v334_v37  ;;  %4987 = vmatprep.subr.bf16.mxu1 %v6772_v30  ;;  %v371_v53 = vadd.f32 %v370_v43, %v369_v32  ;;  %v356_v59 = vadd.f32 %v355_v49, %v354_v38  ;;  %v605_v60 = vmul.f32 0.020408163, %v516_v52  ;;  %v6803_v43 = vld [vmem:[%s10084_s3 + $0x600] ss:$8 sps:$4 sm:$0xff]  }
 0x1c1   :  { %4949 = vmatpush1.bf16.msra.mxu0 %v6773_v9  ;;  %v3595_v26 = vunpack.c.l.b16 %v1306_v47  ;;  %v553_v62 = vadd.f32 %v552_v54, %v551_v45  ;;  %v537_v63 = vrot.slane %v536_v55, 4  ;;  %v6791_v9 = vld [vmem:[%s10084_s3 + $0x4e0] ss:$8 sps:$4 sm:$0xff]   ;;  %v6808_v42 = vld [vmem:[%s10084_s3 + $0x614] ss:$8 sps:$4 sm:$0xff]  }
 0x1c2   :  { %4950 = vmatprep.subr.bf16.mxu0 %v6781_v21  ;;  %v1291_v57 = vpack.c.bf16 %v591_v48, %v591_v48  ;;  %v372_v61 = vrot.slane %v371_v53, 1  ;;  %v357_v2 = vrot.slane %v356_v59, 2  ;;  %v1305_v6 = vpack.c.bf16 %v605_v60, %v605_v60  ;;  %v6788_v21 = vld [vmem:[%s10084_s3 + $0x5d0] ss:$8 sps:$4 sm:$0xff]   ;;  %v146_v54 = vld [vmem:[%s10081_s0 + $0x3e8] sm:$0xff] }
 0x1c3   :  { %4988 = vmatpush1.bf16.msra.mxu1 %v6770_v35  ;;  %v3609_v1 = vsel %vm1887_vm1, %v3595_v26, %v3581_v34  ;;  %v554_v11 = vrot.slane %v553_v62, 1  ;;  %v538_v12 = vadd.f32 %v537_v63, %v536_v55  ;;  %v48_v34 = vld [vmem:[%s10081_s0 + $0xd8] sm:$0xff]  ;;  %v90_v60 = vld [vmem:[%s10081_s0 + $0x228] sm:$0xff] }
 0x1c4   :  { %4989 = vmatprep.subr.bf16.mxu1 %v6778_v50  ;;  %v3623_v5 = vpack.c.b16 %v3609_v1, %v3609_v1  ;;  %v373_v7 = vadd.f32 %v372_v61, %v371_v53  ;;  %v358_v10 = vadd.f32 %v357_v2, %v356_v59  ;;  %v3580_v13 = vunpack.c.l.b16 %v1291_v57  ;;  %v76_v50 = vld [vmem:[%s10081_s0 + $0x1b8] sm:$0xff]  ;;  %v118_v61 = vld [vmem:[%s10081_s0 + $0x308] sm:$0x1]  ;;  %v33_v1 = vld [vmem:[%s10081_s0 + $0x60] sm:$0xff] }
 0x1c5   :  { %4951 = vmatpush1.bf16.msra.mxu0 %v6779_v40  ;;  %v3594_v51 = vunpack.c.l.b16 %v1305_v6  ;;  %v555_v14 = vadd.f32 %v554_v11, %v553_v62  ;;  %v539_v17 = vrot.slane %v538_v12, 2  ;;  %v34_v40 = vld [vmem:[%s10081_s0 + $0x68] sm:$0xff]  ;;  %v132_v52 = vld [vmem:[%s10081_s0 + $0x378] sm:$0xff]  ;;  %v47_v2 = vld [vmem:[%s10081_s0 + $0xd0] sm:$0xff] }
 0x1c6   :  { %4952 = vmatprep.subr.bf16.mxu0 %v6787_v46  ;;  %4958 = vmatprep.mubr.bf16.mxu0 %v3623_v5  ;;  %v594_v8 = vmul.f32 0.020408163, %v373_v7  ;;  %v359_v16 = vrot.slane %v358_v10, 1  ;;  %v62_v46 = vld [vmem:[%s10081_s0 + $0x148] sm:$0xff]  ;;  %v387_v47 = vadd.f32 %v48_v34, %v34_v40  ;;  %v6806_v53 = vld [vmem:[%s10084_s3 + $0x610] ss:$8 sps:$4 sm:$0xff]   ;;  %v569_v63 = vadd.f32 %v146_v54, %v132_v52 }
 0x1c7   :  { %4990 = vmatpush1.bf16.msra.mxu1 %v6776_v58  ;;  %v608_v19 = vmul.f32 0.020408163, %v555_v14  ;;  %v540_v23 = vadd.f32 %v539_v17, %v538_v12  ;;  %v3608_v29 = vsel %vm1887_vm1, %v3594_v51, %v3580_v13  ;;  %v160_v55 = vld [vmem:[%s10081_s0 + $0x458] sm:$0xff]  ;;  %v174_v62 = vld [vmem:[%s10081_s0 + $0x4c8] sm:$0xff]  ;;  %v75_v13 = vld [vmem:[%s10081_s0 + $0x1b0] sm:$0xff]  ;;  %v392_v17 = vsel %vm222_vm0, %v118_v61, 0.0 }
 0x1c8   :  { %4991 = vmatprep.subr.bf16.mxu1 %v6784_v4  ;;  %v1294_v20 = vpack.c.bf16 %v594_v8, %v594_v8  ;;  %v360_v22 = vadd.f32 %v359_v16, %v358_v10  ;;  %v3622_v37 = vpack.c.b16 %v3608_v29, %v3608_v29  ;;  %v388_v58 = vadd.f32 %v387_v47, %v62_v46  ;;  %v6800_v26 = vld [vmem:[%s10084_s3 + $0x5f0] ss:$8 sps:$4 sm:$0xff]   ;;  %v61_v4 = vld [vmem:[%s10081_s0 + $0x140] sm:$0xff] }
 0x1c9   :  { %4953 = vmatpush1.bf16.msra.mxu0 %v6785_v56  ;;  %v1308_v30 = vpack.c.bf16 %v608_v19, %v608_v19  ;;  %v541_v32 = vrot.slane %v540_v23, 1  ;;  %v6811_v56 = vld [vmem:[%s10084_s3 + $0x624] ss:$8 sps:$4 sm:$0xff]   ;;  %v104_v7 = vld [vmem:[%s10081_s0 + $0x298] sm:$0xff]  ;;  %v374_v10 = vadd.f32 %v47_v2, %v33_v1  ;;  %v6809_v12 = vld [vmem:[%s10084_s3 + $0x620] ss:$8 sps:$4 sm:$0xff]  }
 0x1ca   :  { %4954 = vmatprep.subr.bf16.mxu0 %v6793_v0  ;;  %v3583_v25 = vunpack.c.l.b16 %v1294_v20  ;;  %v593_v24 = vmul.f32 0.020408163, %v360_v22  ;;  %v389_v0 = vadd.f32 %v388_v58, %v76_v50  ;;  %v6853_v6 = vld [vmem:[%s10084_s3 + $0xf04] ss:$8 sps:$4 sm:$0xff]   ;;  %v188_v11 = vld [vmem:[%s10081_s0 + $0x538] sm:$0xff]  ;;  %v131_v51 = vld [vmem:[%s10081_s0 + $0x370] sm:$0xff] }
 0x1cb   :  { %4992 = vmatpush1.bf16.msra.mxu1 %v6782_v44  ;;  %v3597_v35 = vunpack.c.l.b16 %v1308_v30  ;;  %v542_v38 = vadd.f32 %v541_v32, %v540_v23  ;;  %v570_v44 = vadd.f32 %v569_v63, %v160_v55  ;;  %v145_v14 = vld [vmem:[%s10081_s0 + $0x3e0] sm:$0xff]  ;;  %v216_v16 = vld [vmem:[%s10081_s0 + $0x618] sm:$0x1]  ;;  %v159_v19 = vld [vmem:[%s10081_s0 + $0x450] sm:$0xff]  ;;  %v375_v20 = vadd.f32 %v374_v10, %v61_v4 }
 0x1cc   :  { %4993 = vmatprep.subr.bf16.mxu1 %v6790_v18  ;;  %v1293_v39 = vpack.c.bf16 %v593_v24, %v593_v24  ;;  %v202_v22 = vld [vmem:[%s10081_s0 + $0x5a8] sm:$0xff]  ;;  %v556_v29 = vadd.f32 %v145_v14, %v131_v51  ;;  %v6812_v24 = vld [vmem:[%s10084_s3 + $0x630] ss:$8 sps:$4 sm:$0xff]   ;;  %v201_v46 = vld [vmem:[%s10081_s0 + $0x5a0] sm:$0xff] }
 0x1cd   :  { %4955 = vmatpush1.bf16.msra.mxu0 %v6791_v9  ;;  %v3611_v45 = vsel %vm1887_vm1, %v3597_v35, %v3583_v25  ;;  %v607_v49 = vmul.f32 0.020408163, %v542_v38  ;;  %v390_v9 = vadd.f32 %v389_v0, %v90_v60  ;;  %v571_v18 = vadd.f32 %v570_v44, %v174_v62  ;;  %v6851_v30 = vld [vmem:[%s10084_s3 + $0xf00] ss:$8 sps:$4 sm:$0xff]   ;;  %v6871_v0 = vld [vmem:[%s10084_s3 + $0xf34] ss:$8 sps:$4 sm:$0xff]  }
 0x1ce   :  { %4956 = vmatprep.subr.bf16.mxu0 %v6799_v15  ;;  %v3625_v48 = vpack.c.b16 %v3611_v45, %v3611_v45  ;;  %v3582_v59 = vunpack.c.l.b16 %v1293_v39  ;;  %v6814_v15 = vld [vmem:[%s10084_s3 + $0x634] ss:$8 sps:$4 sm:$0xff]   ;;  %v376_v32 = vadd.f32 %v375_v20, %v75_v13  ;;  %v574_v35 = vsel %vm222_vm0, %v216_v16, 0.0  ;;  %v6817_v39 = vld [vmem:[%s10084_s3 + $0x644] ss:$8 sps:$4 sm:$0xff]  }
 0x1cf   :  { %4994 = vmatpush1.bf16.msra.mxu1 %v6788_v21  ;;  %v1307_v57 = vpack.c.bf16 %v607_v49, %v607_v49  ;;  %v391_v23 = vadd.f32 %v390_v9, %v104_v7  ;;  %v572_v25 = vadd.f32 %v571_v18, %v188_v11  ;;  %v557_v38 = vadd.f32 %v556_v29, %v159_v19  ;;  %v117_v45 = vld [vmem:[%s10081_s0 + $0x300] sm:$0x1]  ;;  %v215_v49 = vld [vmem:[%s10081_s0 + $0x610] sm:$0x1]  ;;  %v6877_v9 = vld [vmem:[%s10084_s3 + $0xf44] ss:$8 sps:$4 sm:$0xff]  }
 0x1d0   :  { %4995 = vmatprep.subr.bf16.mxu1 %v6796_v28  ;;  %4999 = vmatprep.mubr.bf16.mxu1 %v3625_v48  ;;  %v6815_v58 = vld [vmem:[%s10084_s3 + $0x640] ss:$8 sps:$4 sm:$0xff]   ;;  %v561_v61 = vsel %vm222_vm0, %v215_v49, 0.0  ;;  %v6818_v4 = vld [vmem:[%s10084_s3 + $0x650] ss:$8 sps:$4 sm:$0xff]  }
 0x1d1   :  { %4957 = vmatpush1.bf16.msra.mxu0 %v6797_v27  ;;  %v3596_v5 = vunpack.c.l.b16 %v1307_v57  ;;  %v89_v27 = vld [vmem:[%s10081_s0 + $0x220] sm:$0xff]  ;;  %v393_v28 = vadd.f32 %v392_v17, %v391_v23  ;;  %v573_v40 = vadd.f32 %v572_v25, %v202_v22  ;;  %v379_v57 = vsel %vm222_vm0, %v117_v45, 0.0  ;;  %v6869_v44 = vld [vmem:[%s10084_s3 + $0xf30] ss:$8 sps:$4 sm:$0xff]   ;;  %v6832_v45 = vld [vmem:[%s10084_s3 + $0x694] ss:$8 sps:$4 sm:$0xff]  }
 0x1d2   :  { %5008 = vmatprep.subr.bf16.mxu0 %v6805_v31  ;;  %v173_v31 = vld [vmem:[%s10081_s0 + $0x4c0] sm:$0xff]  ;;  %v377_v34 = vadd.f32 %v376_v32, %v89_v27  ;;  %v6824_v29 = vld [vmem:[%s10084_s3 + $0x670] ss:$8 sps:$4 sm:$0xff]  }
 0x1d3   :  { %4996 = vmatpush1.bf16.msra.mxu1 %v6794_v36  ;;  %v3610_v8 = vsel %vm1887_vm1, %v3596_v5, %v3582_v59  ;;  %v103_v36 = vld [vmem:[%s10081_s0 + $0x290] sm:$0xff]  ;;  %v558_v47 = vadd.f32 %v557_v38, %v173_v31  ;;  %v575_v48 = vadd.f32 %v574_v35, %v573_v40  ;;  %v6863_v62 = vld [vmem:[%s10084_s3 + $0xf20] ss:$8 sps:$4 sm:$0xff]   ;;  %v6823_v5 = vld [vmem:[%s10084_s3 + $0x664] ss:$8 sps:$4 sm:$0xff]  }
 0x1d4   :  { %4959 = vmatmul.mubr.bf16.vlgmr.msra.gmra.mrb[24].mxu0 %v3622_v37  ;;  %4997 = vmatprep.subr.bf16.mxu1 %v6802_v41  ;;  %v3624_v21 = vpack.c.b16 %v3610_v8, %v3610_v8  ;;  %v187_v37 = vld [vmem:[%s10081_s0 + $0x530] sm:$0xff]  ;;  %v378_v55 = vadd.f32 %v377_v34, %v103_v36  ;;  %v6821_v14 = vld [vmem:[%s10084_s3 + $0x660] ss:$8 sps:$4 sm:$0xff]   ;;  %v6889_v35 = vld [vmem:[%s10084_s3 + $0xf64] ss:$8 sps:$4 sm:$0xff]  }
 0x1d5   :  { %5009 = vmatpush1.bf16.msra.mxu0 %v6803_v43  ;;  %v6859_v41 = vld [vmem:[%s10084_s3 + $0xf14] ss:$8 sps:$4 sm:$0xff]   ;;  %v394_v43 = vrot.slane %v393_v28, 4  ;;  %v559_v52 = vadd.f32 %v558_v47, %v187_v37  ;;  %v576_v54 = vrot.slane %v575_v48, 4  ;;  %v6875_v22 = vld [vmem:[%s10084_s3 + $0xf40] ss:$8 sps:$4 sm:$0xff]  }
 0x1d6   :  { %5010 = vmatprep.subr.bf16.mxu0 %v6808_v42  ;;  %v6857_v42 = vld [vmem:[%s10084_s3 + $0xf10] ss:$8 sps:$4 sm:$0xff]   ;;  %v380_v2 = vadd.f32 %v379_v57, %v378_v55  ;;  %v6827_v40 = vld [vmem:[%s10084_s3 + $0x680] ss:$8 sps:$4 sm:$0xff]  }
 0x1d7   :  { %4998 = vmatpush1.bf16.msra.mxu1 %v6800_v26  ;;  %v395_v50 = vadd.f32 %v394_v43, %v393_v28  ;;  %v560_v59 = vadd.f32 %v559_v52, %v201_v46  ;;  %v577_v60 = vadd.f32 %v576_v54, %v575_v48  ;;  %v6881_v28 = vld [vmem:[%s10084_s3 + $0xf50] ss:$8 sps:$4 sm:$0xff]   ;;  %v6887_v48 = vld [vmem:[%s10084_s3 + $0xf60] ss:$8 sps:$4 sm:$0xff]  }
 0x1d8   :  { %5460 = vmatprep.subr.bf16.mxu1 %v6853_v6  ;;  %v6830_v52 = vld [vmem:[%s10084_s3 + $0x690] ss:$8 sps:$4 sm:$0xff]   ;;  %v6833_v57 = vld [vmem:[%s10084_s3 + $0x6a0] ss:$8 sps:$4 sm:$0xff]  }
 0x1d9   :  { %5011 = vmatpush1.bf16.msra.mxu0 %v6806_v53  ;;  %v6865_v53 = vld [vmem:[%s10084_s3 + $0xf24] ss:$8 sps:$4 sm:$0xff]   ;;  %v396_v26 = vrot.slane %v395_v50, 2  ;;  %v578_v1 = vrot.slane %v577_v60, 2  ;;  %v562_v7 = vadd.f32 %v561_v61, %v560_v59  ;;  %v6972_v59 = vmov 1983009808  }
 0x1da   :  { %5012 = vmatprep.subr.bf16.mxu0 %v6811_v56  ;;  %5000 = vmatmul.mubr.bf16.vlgmr.msra.gmra.mrb[24].mxu1 %v3624_v21  ;;  %v6820_v56 = vld [vmem:[%s10084_s3 + $0x654] ss:$8 sps:$4 sm:$0xff]  }
 0x1db   :  { %5461 = vmatpush1.bf16.msra.mxu1 %v6851_v30  ;;  %v397_v63 = vadd.f32 %v396_v26, %v395_v50  ;;  %v579_v11 = vadd.f32 %v578_v1, %v577_v60  ;;  %v563_v19 = vrot.slane %v562_v7, 4  ;;  %v6826_v21 = vld [vmem:[%s10084_s3 + $0x674] ss:$8 sps:$4 sm:$0xff]   ;;  %v6829_v30 = vld [vmem:[%s10084_s3 + $0x684] ss:$8 sps:$4 sm:$0xff]   ;;  %v5055_v60 = vlaneseq }
 0x1dc   :  { %5462 = vmatprep.subr.bf16.mxu1 %v6859_v41  ;;  %v6895_v50 = vld [vmem:[%s10084_s3 + $0xf74] ss:$8 sps:$4 sm:$0xff]   ;;  %v6901_v26 = vld [vmem:[%s10084_s3 + $0xf84] ss:$8 sps:$4 sm:$0xff]  }
 0x1dd   :  { %5013 = vmatpush1.bf16.msra.mxu0 %v6809_v12  ;;  %v398_v6 = vrot.slane %v397_v63, 1  ;;  %v580_v8 = vrot.slane %v579_v11, 1  ;;  %v564_v31 = vadd.f32 %v563_v19, %v562_v7  ;;  %v6838_v61 = vld [vmem:[%s10084_s3 + $0x6b4] ss:$8 sps:$4 sm:$0xff]  }
 0x1de   :  { %5014 = vmatprep.subr.bf16.mxu0 %v6814_v15  ;;  %v381_v15 = vrot.slane %v380_v2, 4  ;;  %v6907_v1 = vld [vmem:[%s10084_s3 + $0xf94] ss:$8 sps:$4 sm:$0xff]  }
 0x1df   :  { %5463 = vmatpush1.bf16.msra.mxu1 %v6857_v42  ;;  %v399_v12 = vadd.f32 %v398_v6, %v397_v63  ;;  %v565_v41 = vrot.slane %v564_v31, 2  ;;  %v6841_v6 = vld [vmem:[%s10084_s3 + $0x6c4] ss:$8 sps:$4 sm:$0xff]  }
 0x1e0   :  { %5464 = vmatprep.subr.bf16.mxu1 %v6865_v53  ;;  %v382_v25 = vadd.f32 %v381_v15, %v380_v2  ;;  %v6835_v53 = vld [vmem:[%s10084_s3 + $0x6a4] ss:$8 sps:$4 sm:$0xff]   ;;  %v6919_v15 = vld [vmem:[%s10084_s3 + $0xfb4] ss:$8 sps:$4 sm:$0xff]  }
 0x1e1   :  { %5015 = vmatpush1.bf16.msra.mxu0 %v6812_v24  ;;  %v596_v18 = vmul.f32 0.020408163, %v399_v12  ;;  %v566_v55 = vadd.f32 %v565_v41, %v564_v31  ;;  %v6839_v12 = vld [vmem:[%s10084_s3 + $0x6c0] ss:$8 sps:$4 sm:$0xff]  }
 0x1e2   :  { %5016 = vmatprep.subr.bf16.mxu0 %v6817_v39  ;;  %v383_v34 = vrot.slane %v382_v25, 2 }
 0x1e3   :  { %5465 = vmatpush1.bf16.msra.mxu1 %v6863_v62  ;;  %v1296_v23 = vpack.c.bf16 %v596_v18, %v596_v18  ;;  %v567_v63 = vrot.slane %v566_v55, 1  ;;  %v6842_v18 = vld [vmem:[%s10084_s3 + $0x6d0] ss:$8 sps:$4 sm:$0xff]  }
 0x1e4   :  { %5466 = vmatprep.subr.bf16.mxu1 %v6871_v0  ;;  %v384_v54 = vadd.f32 %v383_v34, %v382_v25  ;;  %v6899_v0 = vld [vmem:[%s10084_s3 + $0xf80] ss:$8 sps:$4 sm:$0xff]  }
 0x1e5   :  { %5017 = vmatpush1.bf16.msra.mxu0 %v6815_v58  ;;  %v3585_v24 = vunpack.c.l.b16 %v1296_v23  ;;  %v6893_v58 = vld [vmem:[%s10084_s3 + $0xf70] ss:$8 sps:$4 sm:$0xff]  }
 0x1e6   :  { %5018 = vmatprep.subr.bf16.mxu0 %v6820_v56  ;;  %v5053_v56 = vunpack.c.l.s4 %v6972_v59  ;;  %v385_v62 = vrot.slane %v384_v54, 1 }
 0x1e7   :  { %v3496_v10 = vpop.f32.mrb[12].mxu0  ;;  %5467 = vmatpush1.bf16.msra.mxu1 %v6869_v44  ;;  %v6905_v44 = vld [vmem:[%s10084_s3 + $0xf90] ss:$8 sps:$4 sm:$0xff]  }
 0x1e8   :  { %v3497_v13 = vadd.f32 %v3496_v10, %v9469_v33  ;;  %v3498_v51 = vpop.f32.mrb[13].mxu0  ;;  %v581_v33 = vadd.f32 %v580_v8, %v579_v11  ;;  %5468 = vmatprep.subr.bf16.mxu1 %v6877_v9  ;;  %v5054_v2 = vunpack.c.0.s8 %v5053_v56  ;;  %v386_v7 = vadd.f32 %v385_v62, %v384_v54  ;;  %v6913_v10 = vld [vmem:[%s10084_s3 + $0xfa4] ss:$8 sps:$4 sm:$0xff]   ;;  %v6844_v9 = vld [vmem:[%s10084_s3 + $0x6d4] ss:$8 sps:$4 sm:$0xff]  }
 0x1e9   :  { %v3499_v16 = vadd.f32 %v3498_v51, %v9484_v3  ;;  %v3500_v17 = vpop.f32.mrb[14].mxu0  ;;  %5019 = vmatpush1.bf16.msra.mxu0 %v6818_v4  ;;  %v6883_v3 = vld [vmem:[%s10084_s3 + $0xf54] ss:$8 sps:$4 sm:$0xff]   ;;  %v9881_v4 = vshrl.u32 %v5055_v60, 7  ;;  %v568_v11 = vadd.f32 %v567_v63, %v566_v55  ;;  %v6911_v8 = vld [vmem:[%s10084_s3 + $0xfa0] ss:$8 sps:$4 sm:$0xff]  }
 0x1ea   :  { %v3501_v20 = vpop.f32.mrb[15].mxu0  ;;  %5020 = vmatprep.subr.bf16.mxu0 %v6823_v5  ;;  %v610_v27 = vmul.f32 0.020408163, %v581_v33  ;;  %v6836_v5 = vld [vmem:[%s10084_s3 + $0x6b0] ss:$8 sps:$4 sm:$0xff]  }
 0x1eb   :  { %5469 = vmatpush1.bf16.msra.mxu1 %v6875_v22  ;;  %v595_v51 = vmul.f32 0.020408163, %v386_v7 }
 0x1ec   :  { %v1310_v32 = vpack.c.bf16 %v610_v27, %v610_v27  ;;  %5470 = vmatprep.subr.bf16.mxu1 %v6883_v3  ;;  %v3537_v36 = vpop.f32.mrb[12].mxu1 }
 0x1ed   :  { %5021 = vmatpush1.bf16.msra.mxu0 %v6821_v14  ;;  %v9840_v38 = vadd.f32 %v3537_v36, %v3497_v13  ;;  %v3539_v39 = vpop.f32.mrb[13].mxu1  ;;  %v5057_v13 = vsub.s32 %v5054_v2, %v9881_v4  ;;  %v609_v14 = vmul.f32 0.020408163, %v568_v11  ;;  %v1295_v19 = vpack.c.bf16 %v595_v51, %v595_v51 }
 0x1ee   :  { %5022 = vmatprep.subr.bf16.mxu0 %v6826_v21  ;;  %v3599_v37 = vunpack.c.l.b16 %v1310_v32  ;;  %v9845_v43 = vadd.f32 %v3539_v39, %v3499_v16  ;;  %v3541_v47 = vpop.f32.mrb[14].mxu1  ;;  %v5049_v16 = vld [vmem:[%s10083_s2] sm:$0xff] }
 0x1ef   :  { %5471 = vmatpush1.bf16.msra.mxu1 %v6881_v28  ;;  %v3542_v42 = vpop.f32.mrb[15].mxu1  ;;  %v9911_v17 = vrot.slane %v5049_v16, %v5057_v13  ;;  %v1309_v20 = vpack.c.bf16 %v609_v14, %v609_v14  ;;  %v5051_v21 = vcombine.high %v5049_v16, %v5049_v16 }
 0x1f0   :  { %v3613_v46 = vsel %vm1887_vm1, %v3599_v37, %v3585_v24  ;;  %5472 = vmatprep.subr.bf16.mxu1 %v6889_v35 }
 0x1f1   :  { %5023 = vmatpush1.bf16.msra.mxu0 %v6824_v29  ;;  %v3627_v49 = vpack.c.b16 %v3613_v46, %v3613_v46 }
 0x1f2   :  { %5024 = vmatprep.subr.bf16.mxu0 %v6829_v30 }
 0x1f3   :  { %5040 = vmatprep.mubr.bf16.mxu0 %v3627_v49  ;;  %5473 = vmatpush1.bf16.msra.mxu1 %v6887_v48 }
 0x1f4   :  { %5474 = vmatprep.subr.bf16.mxu1 %v6895_v50 }
 0x1f5   :  { %5025 = vmatpush1.bf16.msra.mxu0 %v6827_v40 }
 0x1f6   :  { %5026 = vmatprep.subr.bf16.mxu0 %v6832_v45 }
 0x1f7   :  { %5475 = vmatpush1.bf16.msra.mxu1 %v6893_v58 }
 0x1f8   :  { %5476 = vmatprep.subr.bf16.mxu1 %v6901_v26 }
 0x1f9   :  { %5027 = vmatpush1.bf16.msra.mxu0 %v6830_v52 }
 0x1fa   :  { %5028 = vmatprep.subr.bf16.mxu0 %v6835_v53 }
 0x1fb   :  { %5477 = vmatpush1.bf16.msra.mxu1 %v6899_v0 }
 0x1fc   :  { %5478 = vmatprep.subr.bf16.mxu1 %v6907_v1 }
 0x1fd   :  { %5029 = vmatpush1.bf16.msra.mxu0 %v6833_v57 }
 0x1fe   :  { %5030 = vmatprep.subr.bf16.mxu0 %v6838_v61 }
 0x1ff   :  { %5479 = vmatpush1.bf16.msra.mxu1 %v6905_v44 }
 0x200   :  { %5480 = vmatprep.subr.bf16.mxu1 %v6913_v10 }
 0x201   :  { %5031 = vmatpush1.bf16.msra.mxu0 %v6836_v5 }
 0x202   :  { %5032 = vmatprep.subr.bf16.mxu0 %v6841_v6 }
 0x205   :  { %5033 = vmatpush1.bf16.msra.mxu0 %v6839_v12 }
 0x206   :  { %10 = vsyncpa [#allocation3], 0  ;;  %5034 = vmatprep.subr.bf16.mxu0 %v6844_v9  ;;  %v6847_v33 = vld [vmem:[%s10084_s3 + $0x6e4] ss:$8 sps:$4 sm:$0xff]   ;;  %5481 = vmatpush1.bf16.msra.mxu1 %v6911_v8  ;;  %v6917_v22 = vld [vmem:[%s10084_s3 + $0xfb0] ss:$8 sps:$4 sm:$0xff]   ;;  %v5066_v23 = vcombine.high %v9911_v17, %v9911_v17  ;;  %v3584_v30 = vunpack.c.l.b16 %v1295_v19  ;;  %v3598_v25 = vunpack.c.l.b16 %v1309_v20  ;;  %v9930_v31 = vrot.slane %v5051_v21, %v5057_v13 }
 0x207   :  { %5482 = vmatprep.subr.bf16.mxu1 %v6919_v15  ;;  %v6925_v3 = vld [vmem:[%s10084_s3 + $0xfc4] ss:$8 sps:$4 sm:$0xff]   ;;  %v6845_v29 = vld [vmem:[%s10084_s3 + $0x6e0] ss:$8 sps:$4 sm:$0xff]   ;;  %v6850_v32 = vld [vmem:[%s10084_s3 + $0x6f4] ss:$8 sps:$4 sm:$0xff]   ;;  %v5072_v54 = vpack.c.bf16 %v9911_v17, %v9911_v17 }
 0x208   :  { %v5073_v27 = vpack.c.bf16 %v5066_v23, %v5066_v23  ;;  %v6923_v24 = vld [vmem:[%s10084_s3 + $0xfc0] ss:$8 sps:$4 sm:$0xff]   ;;  %v6931_v28 = vld [vmem:[%s10084_s3 + $0xfd4] ss:$8 sps:$4 sm:$0xff]   ;;  %v6848_v35 = vld [vmem:[%s10084_s3 + $0x6f0] ss:$8 sps:$4 sm:$0xff]   ;;  %v3612_v36 = vsel %vm1887_vm1, %v3598_v25, %v3584_v30  ;;  %v5067_v37 = vcombine.high %v9930_v31, %v9930_v31 }
 0x209   :  { %5035 = vmatpush1.bf16.msra.mxu0 %v6842_v18  ;;  %v6856_v39 = vld [vmem:[%s10084_s3 + $0x1004] ss:$8 sps:$4 sm:$0xff]   ;;  %v6929_v40 = vld [vmem:[%s10084_s3 + $0xfd0] ss:$8 sps:$4 sm:$0xff]   ;;  %v3626_v41 = vpack.c.b16 %v3612_v36, %v3612_v36  ;;  %v6854_v45 = vld [vmem:[%s10084_s3 + $0x1000] ss:$8 sps:$4 sm:$0xff]  }
 0x20a   :  { %5036 = vmatprep.subr.bf16.mxu0 %v6847_v33  ;;  %5483 = vmatpush1.bf16.msra.mxu1 %v6917_v22  ;;  %v6937_v34 = vld [vmem:[%s10084_s3 + $0xfe4] ss:$8 sps:$4 sm:$0xff]   ;;  %v5075_v46 = vpack.c.bf16 %v5067_v37, %v5067_v37  ;;  %v6862_v47 = vld [vmem:[%s10084_s3 + $0x1014] ss:$8 sps:$4 sm:$0xff]   ;;  %v6935_v48 = vld [vmem:[%s10084_s3 + $0xfe0] ss:$8 sps:$4 sm:$0xff]  }
 0x20b   :  { %5484 = vmatprep.subr.bf16.mxu1 %v6925_v3  ;;  %5492 = vmatprep.mubr.bf16.mxu1 %v5073_v27  ;;  %v6943_v49 = vld [vmem:[%s10084_s3 + $0xff4] ss:$8 sps:$4 sm:$0xff]   ;;  %v6860_v42 = vld [vmem:[%s10084_s3 + $0x1010] ss:$8 sps:$4 sm:$0xff]   ;;  %v6868_v50 = vld [vmem:[%s10084_s3 + $0x1024] ss:$8 sps:$4 sm:$0xff]   ;;  %v5074_v27 = vpack.c.bf16 %v9930_v31, %v9930_v31 }
 0x20c   :  { %v6941_v52 = vld [vmem:[%s10084_s3 + $0xff0] ss:$8 sps:$4 sm:$0xff]   ;;  %v6866_v53 = vld [vmem:[%s10084_s3 + $0x1020] ss:$8 sps:$4 sm:$0xff]   ;;  %v6874_v55 = vld [vmem:[%s10084_s3 + $0x1034] ss:$8 sps:$4 sm:$0xff]  }
 0x20d   :  { %5037 = vmatpush1.bf16.msra.mxu0 %v6845_v29  ;;  %v6872_v58 = vld [vmem:[%s10084_s3 + $0x1030] ss:$8 sps:$4 sm:$0xff]   ;;  %v6880_v26 = vld [vmem:[%s10084_s3 + $0x1044] ss:$8 sps:$4 sm:$0xff]   ;;  %v6878_v57 = vld [vmem:[%s10084_s3 + $0x1040] ss:$8 sps:$4 sm:$0xff]  }
 0x20e   :  { %5038 = vmatprep.subr.bf16.mxu0 %v6850_v32  ;;  %5485 = vmatpush1.bf16.msra.mxu1 %v6923_v24  ;;  %v6886_v59 = vld [vmem:[%s10084_s3 + $0x1054] ss:$8 sps:$4 sm:$0xff]   ;;  %v6884_v56 = vld [vmem:[%s10084_s3 + $0x1050] ss:$8 sps:$4 sm:$0xff]   ;;  %v6892_v60 = vld [vmem:[%s10084_s3 + $0x1064] ss:$8 sps:$4 sm:$0xff]  }
 0x20f   :  { %5486 = vmatprep.subr.bf16.mxu1 %v6931_v28  ;;  %v6890_v2 = vld [vmem:[%s10084_s3 + $0x1060] ss:$8 sps:$4 sm:$0xff]   ;;  %v6898_v6 = vld [vmem:[%s10084_s3 + $0x1074] ss:$8 sps:$4 sm:$0xff]   ;;  %v6908_v14 = vld [vmem:[%s10084_s3 + $0x1090] ss:$8 sps:$4 sm:$0xff]  }
 0x210   :  { %v6902_v10 = vld [vmem:[%s10084_s3 + $0x1080] ss:$8 sps:$4 sm:$0xff]   ;;  %v6910_v9 = vld [vmem:[%s10084_s3 + $0x1094] ss:$8 sps:$4 sm:$0xff]   ;;  %v6916_v8 = vld [vmem:[%s10084_s3 + $0x10a4] ss:$8 sps:$4 sm:$0xff]  }
 0x211   :  { %5039 = vmatpush1.bf16.msra.mxu0 %v6848_v35  ;;  %v6914_v15 = vld [vmem:[%s10084_s3 + $0x10a0] ss:$8 sps:$4 sm:$0xff]   ;;  %v6922_v16 = vld [vmem:[%s10084_s3 + $0x10b4] ss:$8 sps:$4 sm:$0xff]   ;;  %v6920_v17 = vld [vmem:[%s10084_s3 + $0x10b0] ss:$8 sps:$4 sm:$0xff]  }
 0x212   :  { %5501 = vmatprep.subr.bf16.mxu0 %v6856_v39  ;;  %5487 = vmatpush1.bf16.msra.mxu1 %v6929_v40  ;;  %v6928_v18 = vld [vmem:[%s10084_s3 + $0x10c4] ss:$8 sps:$4 sm:$0xff]   ;;  %v6926_v19 = vld [vmem:[%s10084_s3 + $0x10c0] ss:$8 sps:$4 sm:$0xff]   ;;  %v6934_v20 = vld [vmem:[%s10084_s3 + $0x10d4] ss:$8 sps:$4 sm:$0xff]  }
 0x213   :  { %5488 = vmatprep.subr.bf16.mxu1 %v6937_v34  ;;  %v6932_v21 = vld [vmem:[%s10084_s3 + $0x10d0] ss:$8 sps:$4 sm:$0xff]   ;;  %v6940_v33 = vld [vmem:[%s10084_s3 + $0x10e4] ss:$8 sps:$4 sm:$0xff]   ;;  %v6938_v22 = vld [vmem:[%s10084_s3 + $0x10e0] ss:$8 sps:$4 sm:$0xff]  }
 0x214   :  { %5041 = vmatmul.mubr.bf16.vlgmr.msra.gmra.mrb[28].mxu0 %v3626_v41  ;;  %v6946_v23 = vld [vmem:[%s10084_s3 + $0x10f4] ss:$8 sps:$4 sm:$0xff]   ;;  %v6944_v3 = vld [vmem:[%s10084_s3 + $0x10f0] ss:$8 sps:$4 sm:$0xff]   ;;  %s6973_s25 = smov [#allocation2]  }
 0x215   :  { %5502 = vmatpush1.bf16.msra.mxu0 %v6854_v45  ;;  %5533 = vmatprep.mubr.bf16.mxu0 %v5075_v46  ;;  %s5576_s0 = sshll.u32 %s6973_s25, 4  ;;  %s5577_s0 = int_to_ptr.vmem [resolvable:$true] %s5576_s0 }
 0x216   :  { %5503 = vmatprep.subr.bf16.mxu0 %v6862_v47  ;;  %5489 = vmatpush1.bf16.msra.mxu1 %v6935_v48  ;;  %p6953_p1 = scmp.lt.s32.totalorder %s5577_s0, %s5577_s0 }
 0x217   :  { %5490 = vmatprep.subr.bf16.mxu1 %v6943_v49 }
 0x219   :  { %5504 = vmatpush1.bf16.msra.mxu0 %v6860_v42 }
 0x21a   :  { %5505 = vmatprep.subr.bf16.mxu0 %v6868_v50  ;;  %5491 = vmatpush1.bf16.msra.mxu1 %v6941_v52 }
 0x21d   :  { %5506 = vmatpush1.bf16.msra.mxu0 %v6866_v53  ;;  %5493 = vmatmul.mubr.bf16.vlgmr.msra.gmra.mrb[28].mxu1 %v5072_v54 }
 0x21e   :  { %5507 = vmatprep.subr.bf16.mxu0 %v6874_v55 }
 0x221   :  { %5508 = vmatpush1.bf16.msra.mxu0 %v6872_v58 }
 0x222   :  { %5509 = vmatprep.subr.bf16.mxu0 %v6880_v26 }
 0x225   :  { %5510 = vmatpush1.bf16.msra.mxu0 %v6878_v57 }
 0x226   :  { %5511 = vmatprep.subr.bf16.mxu0 %v6886_v59 }
 0x227   :  { %v4796_v61 = vpop.f32.mrb[16].mxu0 }
 0x228   :  { %v4797_v62 = vadd.f32 %v4796_v61, %v9840_v38  ;;  %v4798_v63 = vpop.f32.mrb[17].mxu0  ;;  %v6896_v38 = vld [vmem:[%s10084_s3 + $0x1070] ss:$8 sps:$4 sm:$0xff]  }
 0x229   :  { %v4799_v0 = vadd.f32 %v4798_v63, %v9845_v43  ;;  %v4800_v1 = vpop.f32.mrb[18].mxu0  ;;  %5512 = vmatpush1.bf16.msra.mxu0 %v6884_v56  ;;  %v6904_v43 = vld [vmem:[%s10084_s3 + $0x1084] ss:$8 sps:$4 sm:$0xff]  }
 0x22a   :  { %v4801_v5 = vpop.f32.mrb[19].mxu0  ;;  %5513 = vmatprep.subr.bf16.mxu0 %v6892_v60  ;;  %v5544_v1 = vld [vmem:[%s10085_s4] sm:$0x3]  ;;  %s6948_s4 = scalar_lea.vmem %s5577_s0, 64 }
 0x22b   :  { %p6949_p0 = scmp.ne.s32.totalorder %s5577_s0, %s6948_s4  ;;  %p6954_p2 = scmp.lt.s32.totalorder %s6948_s4, %s6948_s4 }
 0x22d   :  { %5514 = vmatpush1.bf16.msra.mxu0 %v6890_v2  ;;  %v4837_v7 = vpop.f32.mrb[16].mxu1  ;;  %v5552_v2 = vsub.s32 1, %v9881_v4  ;;  %p6955_p3 = por %p6954_p2, %p6953_p1 }
 0x22e   :  { %5515 = vmatprep.subr.bf16.mxu0 %v6898_v6  ;;  %v4838_v11 = vadd.f32 %v4837_v7, %v4797_v62  ;;  %v4839_v44 = vpop.f32.mrb[17].mxu1 }
 0x22f   :  { %v4840_v12 = vadd.f32 %v4839_v44, %v4799_v0  ;;  %v4841_v13 = vpop.f32.mrb[18].mxu1  ;;  %v5548_v0 = vsub.s32 0, %v9881_v4  ;;  %v5553_v44 = vrot.slane %v5544_v1, %v5552_v2  ;;  %p6956_p4 = pnand %p6955_p3, %p6949_p0 }
 0x230   :  { %v4842_v51 = vpop.f32.mrb[19].mxu1 }
 0x231   :  { %5516 = vmatpush1.bf16.msra.mxu0 %v6896_v38 }
 0x232   :  { %5517 = vmatprep.subr.bf16.mxu0 %v6904_v43  ;;  %v5549_v43 = vrot.slane %v5544_v1, %v5548_v0 }
 0x235   :  { %5518 = vmatpush1.bf16.msra.mxu0 %v6902_v10 }
 0x236   :  { %5519 = vmatprep.subr.bf16.mxu0 %v6910_v9 }
 0x239   :  { %5520 = vmatpush1.bf16.msra.mxu0 %v6908_v14 }
 0x23a   :  { %5521 = vmatprep.subr.bf16.mxu0 %v6916_v8 }
 0x23d   :  { %5522 = vmatpush1.bf16.msra.mxu0 %v6914_v15 }
 0x23e   :  { %5523 = vmatprep.subr.bf16.mxu0 %v6922_v16 }
 0x241   :  { %5524 = vmatpush1.bf16.msra.mxu0 %v6920_v17 }
 0x242   :  { %5525 = vmatprep.subr.bf16.mxu0 %v6928_v18 }
 0x245   :  { %5526 = vmatpush1.bf16.msra.mxu0 %v6926_v19 }
 0x246   :  { %5527 = vmatprep.subr.bf16.mxu0 %v6934_v20 }
 0x249   :  { %5528 = vmatpush1.bf16.msra.mxu0 %v6932_v21 }
 0x24a   :  { %5529 = vmatprep.subr.bf16.mxu0 %v6940_v33 }
 0x24d   :  { %5530 = vmatpush1.bf16.msra.mxu0 %v6938_v22 }
 0x24e   :  { %5531 = vmatprep.subr.bf16.mxu0 %v6946_v23 }
 0x251   :  { %5532 = vmatpush1.bf16.msra.mxu0 %v6944_v3 }
 0x254   :  { %5534 = vmatmul.mubr.bf16.vlgmr.msra.gmra.mrb[32].mxu0 %v5074_v27 }
 0x267   :  { %v4878_v29 = vpop.f32.mrb[20].mxu0 }
 0x268   :  { %v4879_v30 = vadd.f32 %v4878_v29, %v4838_v11  ;;  %v4880_v25 = vpop.f32.mrb[21].mxu0 }
 0x269   :  { %v4881_v32 = vadd.f32 %v4880_v25, %v4840_v12  ;;  %v4882_v24 = vpop.f32.mrb[22].mxu0 }
 0x26a   :  { %v4883_v28 = vpop.f32.mrb[23].mxu0 }
 0x26d   :  { %v4919_v35 = vpop.f32.mrb[20].mxu1 }
 0x26e   :  { %v4920_v36 = vadd.f32 %v4919_v35, %v4879_v30  ;;  %v4921_v37 = vpop.f32.mrb[21].mxu1 }
 0x26f   :  { %v4922_v39 = vadd.f32 %v4921_v37, %v4881_v32  ;;  %v4923_v40 = vpop.f32.mrb[22].mxu1 }
 0x270   :  { %v4924_v34 = vpop.f32.mrb[23].mxu1 }
 0x2a7   :  { %v4960_v41 = vpop.f32.mrb[24].mxu0 }
 0x2a8   :  { %v4961_v45 = vadd.f32 %v4960_v41, %v4920_v36  ;;  %v4962_v46 = vpop.f32.mrb[25].mxu0 }
 0x2a9   :  { %v4963_v47 = vadd.f32 %v4962_v46, %v4922_v39  ;;  %v4964_v48 = vpop.f32.mrb[26].mxu0 }
 0x2aa   :  { %v4965_v31 = vpop.f32.mrb[27].mxu0 }
 0x2ad   :  { %v5001_v49 = vpop.f32.mrb[24].mxu1 }
 0x2ae   :  { %v5002_v42 = vadd.f32 %v5001_v49, %v4961_v45  ;;  %v5003_v50 = vpop.f32.mrb[25].mxu1 }
 0x2af   :  { %v5004_v52 = vadd.f32 %v5003_v50, %v4963_v47  ;;  %v5005_v53 = vpop.f32.mrb[26].mxu1 }
 0x2b0   :  { %v5006_v54 = vpop.f32.mrb[27].mxu1 }
 0x2e7   :  { %v5042_v55 = vpop.f32.mrb[28].mxu0 }
 0x2e8   :  { %v5043_v58 = vadd.f32 %v5042_v55, %v5002_v42  ;;  %v5044_v26 = vpop.f32.mrb[29].mxu0 }
 0x2e9   :  { %v5045_v57 = vadd.f32 %v5044_v26, %v5004_v52  ;;  %v5046_v59 = vpop.f32.mrb[30].mxu0 }
 0x2ea   :  { %v5047_v56 = vpop.f32.mrb[31].mxu0 }
 0x2f0   :  { %v5494_v60 = vpop.f32.mrb[28].mxu1 }
 0x2f1   :  { %v5496_v61 = vpop.f32.mrb[29].mxu1 }
 0x2f2   :  { %v5498_v62 = vpop.f32.mrb[30].mxu1 }
 0x2f3   :  { %v5499_v63 = vpop.f32.mrb[31].mxu1 }
 0x327   :  { %v5535_v5 = vpop.f32.mrb[32].mxu0 }
 0x328   :  { %v5536_v6 = vadd.f32 %v5535_v5, %v5494_v60  ;;  %v5537_v38 = vpop.f32.mrb[33].mxu0 }
 0x329   :  { %v5538_v7 = vadd.f32 %v5537_v38, %v5496_v61  ;;  %v5539_v11 = vpop.f32.mrb[34].mxu0 }
 0x32a   :  { %v5542_v10 = vadd.f32 %v5536_v6, %v5043_v58  ;;  %v5540_v12 = vpop.f32.mrb[35].mxu0 }
 0x32b   :  { %v5543_v9 = vadd.f32 %v5538_v7, %v5045_v57 }
 0x32c   :  { %v5556_v13 = vadd.f32 %v5549_v43, %v5542_v10 }
 0x32d   :  { %v5557_v51 = vadd.f32 %v5553_v44, %v5543_v9 }
 0x32f   :  { %v5560_v14 = vcombine.low %v5556_v13, %v5557_v51 }
 0x331   :  { %6128 = vst.sshfl [vmem:[#allocation2] sm:$0x33 pattern:$0x76325410] %v5560_v14 }
 0x332   :  { %6959 = shalt.err (!%p6956_p4)
}
 0x333   :  { %s6960_s28 = scalar_lea.hbm %s10086_s5, 64 }
 0x334   :  { %p6961_p5 = scmp.ne.s32.totalorder %s10086_s5, %s6960_s28  ;;  %p6964_p6 = scmp.lt.u32.totalorder %s6960_s28, %s10086_s5 }
 0x336   :  { %p6966_p7 = pnand %p6964_p6, %p6961_p5 }
 0x338   :  { %6969 = shalt.err (!%p6966_p7)
}
 0x339   :  { %5579 = dma.vmem_to_hbm [thread:$0]  %s5577_s0, 64, %s10086_s5, [#allocation3]  }
 0x33a   :  { %6970 = dma.done.wait [#allocation3], 64  }
 0x33b   :  { %6971 = vsyncadd [#allocation3], 4294967232 }
 0x33c   :  { %5583 = vsyncpa [#allocation3], 1 }

</bundles_post_ra>
